<compile_context>
chip_gen: v7x
topology: tpu7x:2x2x1
jax: 0.10.0
libtpu: 0.0.40
codegen_flags: <defaults>
</compile_context>

<pallas_src>
import functools

import numpy as np
import jax
import jax.numpy as jnp
from jax.experimental import pallas as pl
from jax.experimental.pallas import tpu as pltpu


# ----------------------------------------------------------------------------
# Small test-size config (structure identical to the PyTorch module)
# ----------------------------------------------------------------------------
class SmallConfig:
    seq_length = 64
    gen_filters = [8, 16, 32]
    residual_blocks = 2


# ----------------------------------------------------------------------------
# Host-side constants: fused weights + gather matrices, packed into one slab.
# ----------------------------------------------------------------------------
def _strided_gather(l_in, l_out, k_size=3, stride=2, pad=1):
    """S[k*l_in + i, m] = 1  iff  i == stride*m + k - pad   (zero padding)."""
    s = np.zeros((k_size * l_in, l_out), np.float32)
    for k in range(k_size):
        for m in range(l_out):
            i = stride * m + k - pad
            if 0 <= i < l_in:
                s[k * l_in + i, m] = 1.0
    return s


def _transposed_gather(l_in, l_out, k_size=3, stride=2, pad=1):
    """T[k*l_in + i, j] = 1  iff  j == stride*i + k - pad   (ConvTranspose1d)."""
    t = np.zeros((k_size * l_in, l_out), np.float32)
    for k in range(k_size):
        for i in range(l_in):
            j = stride * i + k - pad
            if 0 <= j < l_out:
                t[k * l_in + i, j] = 1.0
    return t


def _fuse_conv_weight(w):
    """PyTorch Conv1d weight (C_out, C_in, K) -> fused (C_out, K*C_in)."""
    c_out, c_in, k = w.shape
    return np.transpose(w, (0, 2, 1)).reshape(c_out, k * c_in)


def _fuse_convT_weight(w):
    """PyTorch ConvTranspose1d weight (C_in, C_out, K) -> fused (C_out, K*C_in)."""
    c_in, c_out, k = w.shape
    return np.transpose(w, (1, 2, 0)).reshape(c_out, k * c_in)


def _uniform(key, shape, bound):
    return np.asarray(jax.random.uniform(key, shape, jnp.float32, -bound, bound))


def init_params(key, cfg):
    """PyTorch-like init.  Biases of convs feeding InstanceNorm are mathematically
    dead (cancelled by the mean subtraction) and therefore not materialized."""
    f0, f1, f2 = cfg.gen_filters
    n_res = cfg.residual_blocks
    keys = iter(jax.random.split(key, 2 * (6 + 2 * n_res)))

    def conv(c_out, c_in, k):
        bound = 1.0 / np.sqrt(c_in * k)
        w = _uniform(next(keys), (c_out, c_in, k), bound)
        b = _uniform(next(keys), (c_out,), bound)
        return _fuse_conv_weight(w), b

    def convT(c_in, c_out, k):
        bound = 1.0 / np.sqrt(c_out * k)
        w = _uniform(next(keys), (c_in, c_out, k), bound)
        b = _uniform(next(keys), (c_out,), bound)
        return _fuse_convT_weight(w), b

    params = {}
    params["d0"], _ = conv(f0, 1, 7)
    params["d1"], _ = conv(f1, f0, 3)
    params["d2"], _ = conv(f2, f1, 3)
    for i in range(n_res):
        params[f"res{i}a"], _ = conv(f2, f2, 7)
        params[f"res{i}b"], _ = conv(f2, f2, 7)
    params["u0"], _ = convT(f2, f1, 3)
    params["u1"], _ = convT(f1, f0, 3)
    params["final"], final_b = conv(1, f0, 7)
    return params, np.asarray(final_b, np.float32).reshape(1, 1)


def pack_constants(params, cfg, seq_len):
    """Pack all fused weights + gather matrices into one bf16 lane-dense slab."""
    n_res = cfg.residual_blocks
    L = seq_len
    L1 = (L - 1) // 2 + 1
    L2 = (L1 - 1) // 2 + 1

    named = [("d0", params["d0"]), ("d1", params["d1"]), ("d2", params["d2"])]
    for i in range(n_res):
        named += [(f"res{i}a", params[f"res{i}a"]),
                  (f"res{i}b", params[f"res{i}b"])]
    named += [("u0", params["u0"]), ("u1", params["u1"]), ("final", params["final"])]
    named += [("Sd1", _strided_gather(L, L1)),
              ("Sd2", _strided_gather(L1, L2)),
              ("Tu0", _transposed_gather(L2, 2 * L2)),
              ("Tu1", _transposed_gather(2 * L2, 4 * L2))]

    width = max(int(a.shape[1]) for _, a in named)
    width = ((width + 127) // 128) * 128              # lane-dense
    layout = {}
    off = 0
    for name, a in named:
        r, c = int(a.shape[0]), int(a.shape[1])
        layout[name] = (off, r, c)
        off += ((r + 7) // 8) * 8                     # keep row offsets 8-aligned
    rows = ((off + 7) // 8) * 8
    slab = np.zeros((rows, width), np.float32)
    for name, a in named:
        o, r, c = layout[name]
        slab[o:o + r, :c] = a
    return jnp.asarray(slab, dtype=jnp.bfloat16), layout


# ----------------------------------------------------------------------------
# Whole-network fused kernel
# ----------------------------------------------------------------------------
def _make_generator_kernel(cfg, layout):
    n_res = cfg.residual_blocks

    def kernel(x_ref, slab_ref, fbias_ref, o_ref):
        def wslice(name):
            off, r, c = layout[name]
            return slab_ref[off:off + r, :c]                      # bf16 (r, c)

        def fused_conv(wname, patch):
            # one MXU matmul per layer, bf16 operands, f32 accumulate
            return jnp.dot(wslice(wname), patch.astype(jnp.bfloat16),
                           preferred_element_type=jnp.float32)

        def reflect_conv7(h, wname):
            """ReflectionPad1d(3) + Conv1d(k=7): roll-built patch, one matmul."""
            l = h.shape[1]
            rolled = {r: (h if r == 0 else pltpu.roll(h, shift=r % l, axis=1))
                      for r in range(-3, 4)}
            lane = jax.lax.broadcasted_iota(jnp.int32, (1, l), 1)
            blocks = []
            for k in range(7):
                s = k - 3
                blk = rolled[-s]
                # The reflected boundary value at each (<=3) edge column is
                # exactly another rolled copy at that column -> cheap selects.
                if s < 0:
                    for j in range(-s):               # left edge: want x[-(j+s)]
                        blk = jnp.where(lane == j, rolled[2 * j + s], blk)
                elif s > 0:
                    for j in range(l - s, l):         # right edge: want x[2l-2-j-s]
                        blk = jnp.where(lane == j, rolled[2 * (j - l + 1) + s], blk)
                blocks.append(blk)
            patch = jnp.concatenate(blocks, axis=0)               # (7*C_in, l)
            return fused_conv(wname, patch)

        def gathered_conv3(h, wname, gname):
            """Stride-2 Conv1d / ConvTranspose1d via precomputed 0/1 gathers."""
            l_in = h.shape[1]
            goff, _, l_out = layout[gname]
            hb = h.astype(jnp.bfloat16)
            blocks = [
                jnp.dot(hb,
                        slab_ref[goff + k * l_in:goff + (k + 1) * l_in, :l_out],
                        preferred_element_type=jnp.float32)
                for k in range(3)
            ]
            patch = jnp.concatenate(blocks, axis=0)               # (3*C_in, l_out)
            return fused_conv(wname, patch)

        def inorm(y, eps=1e-5):
            # single-pass statistics: var = E[y^2] - mean^2 (biased, as PyTorch)
            mean = jnp.mean(y, axis=1, keepdims=True)
            var = jnp.maximum(jnp.mean(y * y, axis=1, keepdims=True) - mean * mean,
                              0.0)
            return (y - mean) * jax.lax.rsqrt(var + eps)

        relu = lambda v: jnp.maximum(v, 0.0)

        x = x_ref[0]                                              # (1, L)  f32

        # ---------------- downsample ----------------
        h = relu(inorm(reflect_conv7(x, "d0")))                   # (f0, L)
        h = relu(inorm(gathered_conv3(h, "d1", "Sd1")))           # (f1, L/2)
        h = relu(inorm(gathered_conv3(h, "d2", "Sd2")))           # (f2, L/4)

        # ---------------- residual blocks ----------------
        for i in range(n_res):
            t = relu(inorm(reflect_conv7(h, f"res{i}a")))
            h = h + inorm(reflect_conv7(t, f"res{i}b"))

        # ---------------- upsample ----------------
        h = relu(inorm(gathered_conv3(h, "u0", "Tu0")))           # (f1, L/2)
        h = relu(inorm(gathered_conv3(h, "u1", "Tu1")))           # (f0, L)
        y = jnp.tanh(reflect_conv7(h, "final") + fbias_ref[...])  # (1, L)

        o_ref[0] = y

    return kernel


# ----------------------------------------------------------------------------
# Full generator forward (matches TimeSeriesGenerator.forward), one pallas_call.
# ----------------------------------------------------------------------------
def generator_forward(slab, final_bias, x_ncl, *, layout, cfg):
    B, _, L = x_ncl.shape
    assert L == cfg.seq_length
    f0, f1, f2 = cfg.gen_filters
    n_res = cfg.residual_blocks
    L1 = (L - 1) // 2 + 1
    L2 = (L1 - 1) // 2 + 1
    L_out = 4 * L2

    # Advisory cost estimate (fused weight matmuls + constant-gather matmuls).
    dims = [(7, 1, f0, L, L), (3, f0, f1, L, L1), (3, f1, f2, L1, L2)]
    dims += [(7, f2, f2, L2, L2)] * (2 * n_res)
    dims += [(3, f2, f1, L2, 2 * L2), (3, f1, f0, 2 * L2, L_out),
             (7, f0, 1, L_out, L_out)]
    macs = 0
    for k, ci, co, li, lo in dims:
        macs += co * k * ci * lo
        if k == 3:
            macs += k * ci * li * lo
    flops = int(2 * B * macs)
    transcendentals = int(B * (L_out + sum(co for _, _, co, _, _ in dims)))
    bytes_accessed = int(4 * (x_ncl.size + B * L_out + final_bias.size)
                         + 2 * slab.size)

    out = pl.pallas_call(
        _make_generator_kernel(cfg, layout),
        out_shape=jax.ShapeDtypeStruct((B, 1, L_out), jnp.float32),
        grid=(B,),
        in_specs=[
            pl.BlockSpec((1, 1, L), lambda b: (b, 0, 0)),
            pl.BlockSpec(slab.shape, lambda b: (0, 0)),     # resident constants
            pl.BlockSpec((1, 1), lambda b: (0, 0)),          # final conv bias
        ],
        out_specs=pl.BlockSpec((1, 1, L_out), lambda b: (b, 0, 0)),
        compiler_params=pltpu.CompilerParams(dimension_semantics=("parallel",)),
        cost_estimate=pl.CostEstimate(flops=flops,
                                      transcendentals=transcendentals,
                                      bytes_accessed=bytes_accessed),
    )(x_ncl.astype(jnp.float32), slab, final_bias)

    # PyTorch: return x[:, :, :seq_length]
    return out[:, :, :cfg.seq_length]


# ----------------------------------------------------------------------------
if __name__ == "__main__":
    cfg = SmallConfig()
    key = jax.random.PRNGKey(0)
    kparams, kdata = jax.random.split(key)

    params, final_bias_np = init_params(kparams, cfg)
    slab, layout = pack_constants(params, cfg, cfg.seq_length)
    final_bias = jnp.asarray(final_bias_np)

    x = jax.random.normal(kdata, (2, 1, cfg.seq_length), dtype=jnp.float32)

    fwd = jax.jit(functools.partial(generator_forward, layout=layout, cfg=cfg))
    y = fwd(slab, final_bias, x)
    y = jax.block_until_ready(y)

    assert y.shape == (2, 1, cfg.seq_length), y.shape
    assert bool(jnp.all(jnp.isfinite(y)))
    print("KERNEL_OK")
</pallas_src>

<mosaic_0001>
module attributes {stable_mosaic.version = 11 : i64} {
  func.func @kernel(%arg0: i32, %arg1: memref<1x1x64xf32, #tpu.memory_space<vmem>>, %arg2: memref<648x256xbf16, #tpu.memory_space<vmem>>, %arg3: memref<1x1xf32, #tpu.memory_space<vmem>>, %arg4: memref<1x1x64xf32, #tpu.memory_space<vmem>>) attributes {dimension_semantics = [#tpu.dimension_semantics<parallel>], iteration_bounds = array<i64: 2>, scalar_prefetch = 0 : i64, scratch_operands = 0 : i64, tpu.core_type = #tpu.core_type<tc>, window_params = [{transform_indices = @transform_0, window_bounds = array<i64: 1, 1, 64>}, {pipeline_mode = #tpu.pipeline_mode<synchronous>, transform_indices = @transform_1, window_bounds = array<i64: 648, 256>}, {pipeline_mode = #tpu.pipeline_mode<synchronous>, transform_indices = @transform_2, window_bounds = array<i64: 1, 1>}, {transform_indices = @transform_3, window_bounds = array<i64: 1, 1, 64>}]} {
    %c0 = arith.constant 0 : index
    %c0_0 = arith.constant 0 : index
    %c0_1 = arith.constant 0 : index
    %0 = vector.load %arg1[%c0, %c0_0, %c0_1] : memref<1x1x64xf32, #tpu.memory_space<vmem>>, vector<1x1x64xf32>
    %1 = vector.shape_cast %0 : vector<1x1x64xf32> to vector<1x64xf32>
    %c61_i32 = arith.constant 61 : i32
    %2 = tpu.dynamic_rotate %1 by %c61_i32 dim 1 : vector<1x64xf32>, i32 -> vector<1x64xf32>
    %c62_i32 = arith.constant 62 : i32
    %3 = tpu.dynamic_rotate %1 by %c62_i32 dim 1 : vector<1x64xf32>, i32 -> vector<1x64xf32>
    %c63_i32 = arith.constant 63 : i32
    %4 = tpu.dynamic_rotate %1 by %c63_i32 dim 1 : vector<1x64xf32>, i32 -> vector<1x64xf32>
    %c1_i32 = arith.constant 1 : i32
    %5 = tpu.dynamic_rotate %1 by %c1_i32 dim 1 : vector<1x64xf32>, i32 -> vector<1x64xf32>
    %c2_i32 = arith.constant 2 : i32
    %6 = tpu.dynamic_rotate %1 by %c2_i32 dim 1 : vector<1x64xf32>, i32 -> vector<1x64xf32>
    %c3_i32 = arith.constant 3 : i32
    %7 = tpu.dynamic_rotate %1 by %c3_i32 dim 1 : vector<1x64xf32>, i32 -> vector<1x64xf32>
    %8 = tpu.iota {dimensions = array<i32: 1>} : vector<1x64xi32>
    %c0_i32 = arith.constant 0 : i32
    %9 = vector.broadcast %c0_i32 : i32 to vector<1x64xi32>
    %10 = arith.cmpi eq, %8, %9 : vector<1x64xi32>
    %11 = arith.select %10, %2, %7 : vector<1x64xi1>, vector<1x64xf32>
    %c1_i32_2 = arith.constant 1 : i32
    %12 = vector.broadcast %c1_i32_2 : i32 to vector<1x64xi32>
    %13 = arith.cmpi eq, %8, %12 : vector<1x64xi32>
    %14 = arith.select %13, %4, %11 : vector<1x64xi1>, vector<1x64xf32>
    %c2_i32_3 = arith.constant 2 : i32
    %15 = vector.broadcast %c2_i32_3 : i32 to vector<1x64xi32>
    %16 = arith.cmpi eq, %8, %15 : vector<1x64xi32>
    %17 = arith.select %16, %5, %14 : vector<1x64xi1>, vector<1x64xf32>
    %c0_i32_4 = arith.constant 0 : i32
    %18 = vector.broadcast %c0_i32_4 : i32 to vector<1x64xi32>
    %19 = arith.cmpi eq, %8, %18 : vector<1x64xi32>
    %20 = arith.select %19, %3, %6 : vector<1x64xi1>, vector<1x64xf32>
    %c1_i32_5 = arith.constant 1 : i32
    %21 = vector.broadcast %c1_i32_5 : i32 to vector<1x64xi32>
    %22 = arith.cmpi eq, %8, %21 : vector<1x64xi32>
    %23 = arith.select %22, %1, %20 : vector<1x64xi1>, vector<1x64xf32>
    %c0_i32_6 = arith.constant 0 : i32
    %24 = vector.broadcast %c0_i32_6 : i32 to vector<1x64xi32>
    %25 = arith.cmpi eq, %8, %24 : vector<1x64xi32>
    %26 = arith.select %25, %4, %5 : vector<1x64xi1>, vector<1x64xf32>
    %c63_i32_7 = arith.constant 63 : i32
    %27 = vector.broadcast %c63_i32_7 : i32 to vector<1x64xi32>
    %28 = arith.cmpi eq, %8, %27 : vector<1x64xi32>
    %29 = arith.select %28, %5, %4 : vector<1x64xi1>, vector<1x64xf32>
    %c62_i32_8 = arith.constant 62 : i32
    %30 = vector.broadcast %c62_i32_8 : i32 to vector<1x64xi32>
    %31 = arith.cmpi eq, %8, %30 : vector<1x64xi32>
    %32 = arith.select %31, %1, %3 : vector<1x64xi1>, vector<1x64xf32>
    %c63_i32_9 = arith.constant 63 : i32
    %33 = vector.broadcast %c63_i32_9 : i32 to vector<1x64xi32>
    %34 = arith.cmpi eq, %8, %33 : vector<1x64xi32>
    %35 = arith.select %34, %6, %32 : vector<1x64xi1>, vector<1x64xf32>
    %c61_i32_10 = arith.constant 61 : i32
    %36 = vector.broadcast %c61_i32_10 : i32 to vector<1x64xi32>
    %37 = arith.cmpi eq, %8, %36 : vector<1x64xi32>
    %38 = arith.select %37, %4, %2 : vector<1x64xi1>, vector<1x64xf32>
    %c62_i32_11 = arith.constant 62 : i32
    %39 = vector.broadcast %c62_i32_11 : i32 to vector<1x64xi32>
    %40 = arith.cmpi eq, %8, %39 : vector<1x64xi32>
    %41 = arith.select %40, %5, %38 : vector<1x64xi1>, vector<1x64xf32>
    %c63_i32_12 = arith.constant 63 : i32
    %42 = vector.broadcast %c63_i32_12 : i32 to vector<1x64xi32>
    %43 = arith.cmpi eq, %8, %42 : vector<1x64xi32>
    %44 = arith.select %43, %7, %41 : vector<1x64xi1>, vector<1x64xf32>
    %45 = tpu.concatenate %17, %23, %26, %1, %29, %35, %44 in 0 : vector<1x64xf32>, vector<1x64xf32>, vector<1x64xf32>, vector<1x64xf32>, vector<1x64xf32>, vector<1x64xf32>, vector<1x64xf32> -> vector<7x64xf32>
    %c0_13 = arith.constant 0 : index
    %c0_14 = arith.constant 0 : index
    %46 = vector.load %arg2[%c0_13, %c0_14] : memref<648x256xbf16, #tpu.memory_space<vmem>>, vector<8x7xbf16>
    %47 = arith.truncf %45 : vector<7x64xf32> to vector<7x64xbf16>
    %cst = arith.constant dense<0.000000e+00> : vector<8x64xf32>
    %48 = tpu.matmul %46, %47, %cst {dimension_numbers = #tpu.dot_dimension_numbers<[1], [0], [0], [1], [0, 0, 1, 1], [], []>} : vector<8x7xbf16>, vector<7x64xbf16>, vector<8x64xf32> -> vector<8x64xf32>
    %cst_15 = arith.constant dense<0.000000e+00> : vector<8xf32>
    %49 = vector.multi_reduction <add>, %48, %cst_15 [1] : vector<8x64xf32> to vector<8xf32>
    %50 = vector.shape_cast %49 : vector<8xf32> to vector<8x1xf32>
    %cst_16 = arith.constant 6.400000e+01 : f32
    %51 = vector.broadcast %cst_16 : f32 to vector<8x1xf32>
    %52 = arith.divf %50, %51 : vector<8x1xf32>
    %53 = arith.mulf %48, %48 : vector<8x64xf32>
    %cst_17 = arith.constant dense<0.000000e+00> : vector<8xf32>
    %54 = vector.multi_reduction <add>, %53, %cst_17 [1] : vector<8x64xf32> to vector<8xf32>
    %55 = vector.shape_cast %54 : vector<8xf32> to vector<8x1xf32>
    %cst_18 = arith.constant 6.400000e+01 : f32
    %56 = vector.broadcast %cst_18 : f32 to vector<8x1xf32>
    %57 = arith.divf %55, %56 : vector<8x1xf32>
    %58 = arith.mulf %52, %52 : vector<8x1xf32>
    %59 = arith.subf %57, %58 : vector<8x1xf32>
    %cst_19 = arith.constant 0.000000e+00 : f32
    %60 = vector.broadcast %cst_19 : f32 to vector<8x1xf32>
    %61 = arith.maximumf %59, %60 : vector<8x1xf32>
    %62 = vector.broadcast %52 : vector<8x1xf32> to vector<8x64xf32>
    %63 = arith.subf %48, %62 : vector<8x64xf32>
    %cst_20 = arith.constant 9.99999974E-6 : f32
    %64 = vector.broadcast %cst_20 : f32 to vector<8x1xf32>
    %65 = arith.addf %61, %64 : vector<8x1xf32>
    %66 = math.rsqrt %65 : vector<8x1xf32>
    %67 = vector.broadcast %66 : vector<8x1xf32> to vector<8x64xf32>
    %68 = arith.mulf %63, %67 : vector<8x64xf32>
    %cst_21 = arith.constant 0.000000e+00 : f32
    %69 = vector.broadcast %cst_21 : f32 to vector<8x64xf32>
    %70 = arith.maximumf %68, %69 : vector<8x64xf32>
    %71 = arith.truncf %70 : vector<8x64xf32> to vector<8x64xbf16>
    %c216 = arith.constant 216 : index
    %c0_22 = arith.constant 0 : index
    %72 = vector.load %arg2[%c216, %c0_22] : memref<648x256xbf16, #tpu.memory_space<vmem>>, vector<64x32xbf16>
    %cst_23 = arith.constant dense<0.000000e+00> : vector<8x32xf32>
    %73 = tpu.matmul %71, %72, %cst_23 {dimension_numbers = #tpu.dot_dimension_numbers<[1], [0], [0], [1], [0, 0, 1, 1], [], []>} : vector<8x64xbf16>, vector<64x32xbf16>, vector<8x32xf32> -> vector<8x32xf32>
    %c280 = arith.constant 280 : index
    %c0_24 = arith.constant 0 : index
    %74 = vector.load %arg2[%c280, %c0_24] : memref<648x256xbf16, #tpu.memory_space<vmem>>, vector<64x32xbf16>
    %cst_25 = arith.constant dense<0.000000e+00> : vector<8x32xf32>
    %75 = tpu.matmul %71, %74, %cst_25 {dimension_numbers = #tpu.dot_dimension_numbers<[1], [0], [0], [1], [0, 0, 1, 1], [], []>} : vector<8x64xbf16>, vector<64x32xbf16>, vector<8x32xf32> -> vector<8x32xf32>
    %c344 = arith.constant 344 : index
    %c0_26 = arith.constant 0 : index
    %76 = vector.load %arg2[%c344, %c0_26] : memref<648x256xbf16, #tpu.memory_space<vmem>>, vector<64x32xbf16>
    %cst_27 = arith.constant dense<0.000000e+00> : vector<8x32xf32>
    %77 = tpu.matmul %71, %76, %cst_27 {dimension_numbers = #tpu.dot_dimension_numbers<[1], [0], [0], [1], [0, 0, 1, 1], [], []>} : vector<8x64xbf16>, vector<64x32xbf16>, vector<8x32xf32> -> vector<8x32xf32>
    %78 = tpu.concatenate %73, %75, %77 in 0 : vector<8x32xf32>, vector<8x32xf32>, vector<8x32xf32> -> vector<24x32xf32>
    %c8 = arith.constant 8 : index
    %c0_28 = arith.constant 0 : index
    %79 = vector.load %arg2[%c8, %c0_28] : memref<648x256xbf16, #tpu.memory_space<vmem>>, vector<16x24xbf16>
    %80 = arith.truncf %78 : vector<24x32xf32> to vector<24x32xbf16>
    %cst_29 = arith.constant dense<0.000000e+00> : vector<16x32xf32>
    %81 = tpu.matmul %79, %80, %cst_29 {dimension_numbers = #tpu.dot_dimension_numbers<[1], [0], [0], [1], [0, 0, 1, 1], [], []>} : vector<16x24xbf16>, vector<24x32xbf16>, vector<16x32xf32> -> vector<16x32xf32>
    %cst_30 = arith.constant dense<0.000000e+00> : vector<16xf32>
    %82 = vector.multi_reduction <add>, %81, %cst_30 [1] : vector<16x32xf32> to vector<16xf32>
    %83 = vector.shape_cast %82 : vector<16xf32> to vector<16x1xf32>
    %cst_31 = arith.constant 3.200000e+01 : f32
    %84 = vector.broadcast %cst_31 : f32 to vector<16x1xf32>
    %85 = arith.divf %83, %84 : vector<16x1xf32>
    %86 = arith.mulf %81, %81 : vector<16x32xf32>
    %cst_32 = arith.constant dense<0.000000e+00> : vector<16xf32>
    %87 = vector.multi_reduction <add>, %86, %cst_32 [1] : vector<16x32xf32> to vector<16xf32>
    %88 = vector.shape_cast %87 : vector<16xf32> to vector<16x1xf32>
    %cst_33 = arith.constant 3.200000e+01 : f32
    %89 = vector.broadcast %cst_33 : f32 to vector<16x1xf32>
    %90 = arith.divf %88, %89 : vector<16x1xf32>
    %91 = arith.mulf %85, %85 : vector<16x1xf32>
    %92 = arith.subf %90, %91 : vector<16x1xf32>
    %cst_34 = arith.constant 0.000000e+00 : f32
    %93 = vector.broadcast %cst_34 : f32 to vector<16x1xf32>
    %94 = arith.maximumf %92, %93 : vector<16x1xf32>
    %95 = vector.broadcast %85 : vector<16x1xf32> to vector<16x32xf32>
    %96 = arith.subf %81, %95 : vector<16x32xf32>
    %cst_35 = arith.constant 9.99999974E-6 : f32
    %97 = vector.broadcast %cst_35 : f32 to vector<16x1xf32>
    %98 = arith.addf %94, %97 : vector<16x1xf32>
    %99 = math.rsqrt %98 : vector<16x1xf32>
    %100 = vector.broadcast %99 : vector<16x1xf32> to vector<16x32xf32>
    %101 = arith.mulf %96, %100 : vector<16x32xf32>
    %cst_36 = arith.constant 0.000000e+00 : f32
    %102 = vector.broadcast %cst_36 : f32 to vector<16x32xf32>
    %103 = arith.maximumf %101, %102 : vector<16x32xf32>
    %104 = arith.truncf %103 : vector<16x32xf32> to vector<16x32xbf16>
    %c408 = arith.constant 408 : index
    %c0_37 = arith.constant 0 : index
    %105 = vector.load %arg2[%c408, %c0_37] : memref<648x256xbf16, #tpu.memory_space<vmem>>, vector<32x16xbf16>
    %cst_38 = arith.constant dense<0.000000e+00> : vector<16x16xf32>
    %106 = tpu.matmul %104, %105, %cst_38 {dimension_numbers = #tpu.dot_dimension_numbers<[1], [0], [0], [1], [0, 0, 1, 1], [], []>} : vector<16x32xbf16>, vector<32x16xbf16>, vector<16x16xf32> -> vector<16x16xf32>
    %c440 = arith.constant 440 : index
    %c0_39 = arith.constant 0 : index
    %107 = vector.load %arg2[%c440, %c0_39] : memref<648x256xbf16, #tpu.memory_space<vmem>>, vector<32x16xbf16>
    %cst_40 = arith.constant dense<0.000000e+00> : vector<16x16xf32>
    %108 = tpu.matmul %104, %107, %cst_40 {dimension_numbers = #tpu.dot_dimension_numbers<[1], [0], [0], [1], [0, 0, 1, 1], [], []>} : vector<16x32xbf16>, vector<32x16xbf16>, vector<16x16xf32> -> vector<16x16xf32>
    %c472 = arith.constant 472 : index
    %c0_41 = arith.constant 0 : index
    %109 = vector.load %arg2[%c472, %c0_41] : memref<648x256xbf16, #tpu.memory_space<vmem>>, vector<32x16xbf16>
    %cst_42 = arith.constant dense<0.000000e+00> : vector<16x16xf32>
    %110 = tpu.matmul %104, %109, %cst_42 {dimension_numbers = #tpu.dot_dimension_numbers<[1], [0], [0], [1], [0, 0, 1, 1], [], []>} : vector<16x32xbf16>, vector<32x16xbf16>, vector<16x16xf32> -> vector<16x16xf32>
    %111 = tpu.concatenate %106, %108, %110 in 0 : vector<16x16xf32>, vector<16x16xf32>, vector<16x16xf32> -> vector<48x16xf32>
    %c24 = arith.constant 24 : index
    %c0_43 = arith.constant 0 : index
    %112 = vector.load %arg2[%c24, %c0_43] : memref<648x256xbf16, #tpu.memory_space<vmem>>, vector<32x48xbf16>
    %113 = arith.truncf %111 : vector<48x16xf32> to vector<48x16xbf16>
    %cst_44 = arith.constant dense<0.000000e+00> : vector<32x16xf32>
    %114 = tpu.matmul %112, %113, %cst_44 {dimension_numbers = #tpu.dot_dimension_numbers<[1], [0], [0], [1], [0, 0, 1, 1], [], []>} : vector<32x48xbf16>, vector<48x16xbf16>, vector<32x16xf32> -> vector<32x16xf32>
    %cst_45 = arith.constant dense<0.000000e+00> : vector<32xf32>
    %115 = vector.multi_reduction <add>, %114, %cst_45 [1] : vector<32x16xf32> to vector<32xf32>
    %116 = vector.shape_cast %115 : vector<32xf32> to vector<32x1xf32>
    %cst_46 = arith.constant 1.600000e+01 : f32
    %117 = vector.broadcast %cst_46 : f32 to vector<32x1xf32>
    %118 = arith.divf %116, %117 : vector<32x1xf32>
    %119 = arith.mulf %114, %114 : vector<32x16xf32>
    %cst_47 = arith.constant dense<0.000000e+00> : vector<32xf32>
    %120 = vector.multi_reduction <add>, %119, %cst_47 [1] : vector<32x16xf32> to vector<32xf32>
    %121 = vector.shape_cast %120 : vector<32xf32> to vector<32x1xf32>
    %cst_48 = arith.constant 1.600000e+01 : f32
    %122 = vector.broadcast %cst_48 : f32 to vector<32x1xf32>
    %123 = arith.divf %121, %122 : vector<32x1xf32>
    %124 = arith.mulf %118, %118 : vector<32x1xf32>
    %125 = arith.subf %123, %124 : vector<32x1xf32>
    %cst_49 = arith.constant 0.000000e+00 : f32
    %126 = vector.broadcast %cst_49 : f32 to vector<32x1xf32>
    %127 = arith.maximumf %125, %126 : vector<32x1xf32>
    %128 = vector.broadcast %118 : vector<32x1xf32> to vector<32x16xf32>
    %129 = arith.subf %114, %128 : vector<32x16xf32>
    %cst_50 = arith.constant 9.99999974E-6 : f32
    %130 = vector.broadcast %cst_50 : f32 to vector<32x1xf32>
    %131 = arith.addf %127, %130 : vector<32x1xf32>
    %132 = math.rsqrt %131 : vector<32x1xf32>
    %133 = vector.broadcast %132 : vector<32x1xf32> to vector<32x16xf32>
    %134 = arith.mulf %129, %133 : vector<32x16xf32>
    %cst_51 = arith.constant 0.000000e+00 : f32
    %135 = vector.broadcast %cst_51 : f32 to vector<32x16xf32>
    %136 = arith.maximumf %134, %135 : vector<32x16xf32>
    %c13_i32 = arith.constant 13 : i32
    %137 = tpu.dynamic_rotate %136 by %c13_i32 dim 1 : vector<32x16xf32>, i32 -> vector<32x16xf32>
    %c14_i32 = arith.constant 14 : i32
    %138 = tpu.dynamic_rotate %136 by %c14_i32 dim 1 : vector<32x16xf32>, i32 -> vector<32x16xf32>
    %c15_i32 = arith.constant 15 : i32
    %139 = tpu.dynamic_rotate %136 by %c15_i32 dim 1 : vector<32x16xf32>, i32 -> vector<32x16xf32>
    %c1_i32_52 = arith.constant 1 : i32
    %140 = tpu.dynamic_rotate %136 by %c1_i32_52 dim 1 : vector<32x16xf32>, i32 -> vector<32x16xf32>
    %c2_i32_53 = arith.constant 2 : i32
    %141 = tpu.dynamic_rotate %136 by %c2_i32_53 dim 1 : vector<32x16xf32>, i32 -> vector<32x16xf32>
    %c3_i32_54 = arith.constant 3 : i32
    %142 = tpu.dynamic_rotate %136 by %c3_i32_54 dim 1 : vector<32x16xf32>, i32 -> vector<32x16xf32>
    %143 = tpu.iota {dimensions = array<i32: 1>} : vector<1x16xi32>
    %c0_i32_55 = arith.constant 0 : i32
    %144 = vector.broadcast %c0_i32_55 : i32 to vector<1x16xi32>
    %145 = arith.cmpi eq, %143, %144 : vector<1x16xi32>
    %146 = vector.shape_cast %145 : vector<1x16xi1> to vector<1x16xi1>
    %147 = vector.broadcast %146 : vector<1x16xi1> to vector<32x16xi1>
    %148 = arith.select %147, %137, %142 : vector<32x16xi1>, vector<32x16xf32>
    %c1_i32_56 = arith.constant 1 : i32
    %149 = vector.broadcast %c1_i32_56 : i32 to vector<1x16xi32>
    %150 = arith.cmpi eq, %143, %149 : vector<1x16xi32>
    %151 = vector.shape_cast %150 : vector<1x16xi1> to vector<1x16xi1>
    %152 = vector.broadcast %151 : vector<1x16xi1> to vector<32x16xi1>
    %153 = arith.select %152, %139, %148 : vector<32x16xi1>, vector<32x16xf32>
    %c2_i32_57 = arith.constant 2 : i32
    %154 = vector.broadcast %c2_i32_57 : i32 to vector<1x16xi32>
    %155 = arith.cmpi eq, %143, %154 : vector<1x16xi32>
    %156 = vector.shape_cast %155 : vector<1x16xi1> to vector<1x16xi1>
    %157 = vector.broadcast %156 : vector<1x16xi1> to vector<32x16xi1>
    %158 = arith.select %157, %140, %153 : vector<32x16xi1>, vector<32x16xf32>
    %c0_i32_58 = arith.constant 0 : i32
    %159 = vector.broadcast %c0_i32_58 : i32 to vector<1x16xi32>
    %160 = arith.cmpi eq, %143, %159 : vector<1x16xi32>
    %161 = vector.shape_cast %160 : vector<1x16xi1> to vector<1x16xi1>
    %162 = vector.broadcast %161 : vector<1x16xi1> to vector<32x16xi1>
    %163 = arith.select %162, %138, %141 : vector<32x16xi1>, vector<32x16xf32>
    %c1_i32_59 = arith.constant 1 : i32
    %164 = vector.broadcast %c1_i32_59 : i32 to vector<1x16xi32>
    %165 = arith.cmpi eq, %143, %164 : vector<1x16xi32>
    %166 = vector.shape_cast %165 : vector<1x16xi1> to vector<1x16xi1>
    %167 = vector.broadcast %166 : vector<1x16xi1> to vector<32x16xi1>
    %168 = arith.select %167, %136, %163 : vector<32x16xi1>, vector<32x16xf32>
    %c0_i32_60 = arith.constant 0 : i32
    %169 = vector.broadcast %c0_i32_60 : i32 to vector<1x16xi32>
    %170 = arith.cmpi eq, %143, %169 : vector<1x16xi32>
    %171 = vector.shape_cast %170 : vector<1x16xi1> to vector<1x16xi1>
    %172 = vector.broadcast %171 : vector<1x16xi1> to vector<32x16xi1>
    %173 = arith.select %172, %139, %140 : vector<32x16xi1>, vector<32x16xf32>
    %c15_i32_61 = arith.constant 15 : i32
    %174 = vector.broadcast %c15_i32_61 : i32 to vector<1x16xi32>
    %175 = arith.cmpi eq, %143, %174 : vector<1x16xi32>
    %176 = vector.shape_cast %175 : vector<1x16xi1> to vector<1x16xi1>
    %177 = vector.broadcast %176 : vector<1x16xi1> to vector<32x16xi1>
    %178 = arith.select %177, %140, %139 : vector<32x16xi1>, vector<32x16xf32>
    %c14_i32_62 = arith.constant 14 : i32
    %179 = vector.broadcast %c14_i32_62 : i32 to vector<1x16xi32>
    %180 = arith.cmpi eq, %143, %179 : vector<1x16xi32>
    %181 = vector.shape_cast %180 : vector<1x16xi1> to vector<1x16xi1>
    %182 = vector.broadcast %181 : vector<1x16xi1> to vector<32x16xi1>
    %183 = arith.select %182, %136, %138 : vector<32x16xi1>, vector<32x16xf32>
    %c15_i32_63 = arith.constant 15 : i32
    %184 = vector.broadcast %c15_i32_63 : i32 to vector<1x16xi32>
    %185 = arith.cmpi eq, %143, %184 : vector<1x16xi32>
    %186 = vector.shape_cast %185 : vector<1x16xi1> to vector<1x16xi1>
    %187 = vector.broadcast %186 : vector<1x16xi1> to vector<32x16xi1>
    %188 = arith.select %187, %141, %183 : vector<32x16xi1>, vector<32x16xf32>
    %c13_i32_64 = arith.constant 13 : i32
    %189 = vector.broadcast %c13_i32_64 : i32 to vector<1x16xi32>
    %190 = arith.cmpi eq, %143, %189 : vector<1x16xi32>
    %191 = vector.shape_cast %190 : vector<1x16xi1> to vector<1x16xi1>
    %192 = vector.broadcast %191 : vector<1x16xi1> to vector<32x16xi1>
    %193 = arith.select %192, %139, %137 : vector<32x16xi1>, vector<32x16xf32>
    %c14_i32_65 = arith.constant 14 : i32
    %194 = vector.broadcast %c14_i32_65 : i32 to vector<1x16xi32>
    %195 = arith.cmpi eq, %143, %194 : vector<1x16xi32>
    %196 = vector.shape_cast %195 : vector<1x16xi1> to vector<1x16xi1>
    %197 = vector.broadcast %196 : vector<1x16xi1> to vector<32x16xi1>
    %198 = arith.select %197, %140, %193 : vector<32x16xi1>, vector<32x16xf32>
    %c15_i32_66 = arith.constant 15 : i32
    %199 = vector.broadcast %c15_i32_66 : i32 to vector<1x16xi32>
    %200 = arith.cmpi eq, %143, %199 : vector<1x16xi32>
    %201 = vector.shape_cast %200 : vector<1x16xi1> to vector<1x16xi1>
    %202 = vector.broadcast %201 : vector<1x16xi1> to vector<32x16xi1>
    %203 = arith.select %202, %142, %198 : vector<32x16xi1>, vector<32x16xf32>
    %204 = tpu.concatenate %158, %168, %173, %136, %178, %188, %203 in 0 : vector<32x16xf32>, vector<32x16xf32>, vector<32x16xf32>, vector<32x16xf32>, vector<32x16xf32>, vector<32x16xf32>, vector<32x16xf32> -> vector<224x16xf32>
    %c56 = arith.constant 56 : index
    %c0_67 = arith.constant 0 : index
    %205 = vector.load %arg2[%c56, %c0_67] : memref<648x256xbf16, #tpu.memory_space<vmem>>, vector<32x224xbf16>
    %206 = arith.truncf %204 : vector<224x16xf32> to vector<224x16xbf16>
    %cst_68 = arith.constant dense<0.000000e+00> : vector<32x16xf32>
    %207 = tpu.matmul %205, %206, %cst_68 {dimension_numbers = #tpu.dot_dimension_numbers<[1], [0], [0], [1], [0, 0, 1, 1], [], []>} : vector<32x224xbf16>, vector<224x16xbf16>, vector<32x16xf32> -> vector<32x16xf32>
    %cst_69 = arith.constant dense<0.000000e+00> : vector<32xf32>
    %208 = vector.multi_reduction <add>, %207, %cst_69 [1] : vector<32x16xf32> to vector<32xf32>
    %209 = vector.shape_cast %208 : vector<32xf32> to vector<32x1xf32>
    %cst_70 = arith.constant 1.600000e+01 : f32
    %210 = vector.broadcast %cst_70 : f32 to vector<32x1xf32>
    %211 = arith.divf %209, %210 : vector<32x1xf32>
    %212 = arith.mulf %207, %207 : vector<32x16xf32>
    %cst_71 = arith.constant dense<0.000000e+00> : vector<32xf32>
    %213 = vector.multi_reduction <add>, %212, %cst_71 [1] : vector<32x16xf32> to vector<32xf32>
    %214 = vector.shape_cast %213 : vector<32xf32> to vector<32x1xf32>
    %cst_72 = arith.constant 1.600000e+01 : f32
    %215 = vector.broadcast %cst_72 : f32 to vector<32x1xf32>
    %216 = arith.divf %214, %215 : vector<32x1xf32>
    %217 = arith.mulf %211, %211 : vector<32x1xf32>
    %218 = arith.subf %216, %217 : vector<32x1xf32>
    %cst_73 = arith.constant 0.000000e+00 : f32
    %219 = vector.broadcast %cst_73 : f32 to vector<32x1xf32>
    %220 = arith.maximumf %218, %219 : vector<32x1xf32>
    %221 = vector.broadcast %211 : vector<32x1xf32> to vector<32x16xf32>
    %222 = arith.subf %207, %221 : vector<32x16xf32>
    %cst_74 = arith.constant 9.99999974E-6 : f32
    %223 = vector.broadcast %cst_74 : f32 to vector<32x1xf32>
    %224 = arith.addf %220, %223 : vector<32x1xf32>
    %225 = math.rsqrt %224 : vector<32x1xf32>
    %226 = vector.broadcast %225 : vector<32x1xf32> to vector<32x16xf32>
    %227 = arith.mulf %222, %226 : vector<32x16xf32>
    %cst_75 = arith.constant 0.000000e+00 : f32
    %228 = vector.broadcast %cst_75 : f32 to vector<32x16xf32>
    %229 = arith.maximumf %227, %228 : vector<32x16xf32>
    %c13_i32_76 = arith.constant 13 : i32
    %230 = tpu.dynamic_rotate %229 by %c13_i32_76 dim 1 : vector<32x16xf32>, i32 -> vector<32x16xf32>
    %c14_i32_77 = arith.constant 14 : i32
    %231 = tpu.dynamic_rotate %229 by %c14_i32_77 dim 1 : vector<32x16xf32>, i32 -> vector<32x16xf32>
    %c15_i32_78 = arith.constant 15 : i32
    %232 = tpu.dynamic_rotate %229 by %c15_i32_78 dim 1 : vector<32x16xf32>, i32 -> vector<32x16xf32>
    %c1_i32_79 = arith.constant 1 : i32
    %233 = tpu.dynamic_rotate %229 by %c1_i32_79 dim 1 : vector<32x16xf32>, i32 -> vector<32x16xf32>
    %c2_i32_80 = arith.constant 2 : i32
    %234 = tpu.dynamic_rotate %229 by %c2_i32_80 dim 1 : vector<32x16xf32>, i32 -> vector<32x16xf32>
    %c3_i32_81 = arith.constant 3 : i32
    %235 = tpu.dynamic_rotate %229 by %c3_i32_81 dim 1 : vector<32x16xf32>, i32 -> vector<32x16xf32>
    %236 = tpu.iota {dimensions = array<i32: 1>} : vector<1x16xi32>
    %c0_i32_82 = arith.constant 0 : i32
    %237 = vector.broadcast %c0_i32_82 : i32 to vector<1x16xi32>
    %238 = arith.cmpi eq, %236, %237 : vector<1x16xi32>
    %239 = vector.shape_cast %238 : vector<1x16xi1> to vector<1x16xi1>
    %240 = vector.broadcast %239 : vector<1x16xi1> to vector<32x16xi1>
    %241 = arith.select %240, %230, %235 : vector<32x16xi1>, vector<32x16xf32>
    %c1_i32_83 = arith.constant 1 : i32
    %242 = vector.broadcast %c1_i32_83 : i32 to vector<1x16xi32>
    %243 = arith.cmpi eq, %236, %242 : vector<1x16xi32>
    %244 = vector.shape_cast %243 : vector<1x16xi1> to vector<1x16xi1>
    %245 = vector.broadcast %244 : vector<1x16xi1> to vector<32x16xi1>
    %246 = arith.select %245, %232, %241 : vector<32x16xi1>, vector<32x16xf32>
    %c2_i32_84 = arith.constant 2 : i32
    %247 = vector.broadcast %c2_i32_84 : i32 to vector<1x16xi32>
    %248 = arith.cmpi eq, %236, %247 : vector<1x16xi32>
    %249 = vector.shape_cast %248 : vector<1x16xi1> to vector<1x16xi1>
    %250 = vector.broadcast %249 : vector<1x16xi1> to vector<32x16xi1>
    %251 = arith.select %250, %233, %246 : vector<32x16xi1>, vector<32x16xf32>
    %c0_i32_85 = arith.constant 0 : i32
    %252 = vector.broadcast %c0_i32_85 : i32 to vector<1x16xi32>
    %253 = arith.cmpi eq, %236, %252 : vector<1x16xi32>
    %254 = vector.shape_cast %253 : vector<1x16xi1> to vector<1x16xi1>
    %255 = vector.broadcast %254 : vector<1x16xi1> to vector<32x16xi1>
    %256 = arith.select %255, %231, %234 : vector<32x16xi1>, vector<32x16xf32>
    %c1_i32_86 = arith.constant 1 : i32
    %257 = vector.broadcast %c1_i32_86 : i32 to vector<1x16xi32>
    %258 = arith.cmpi eq, %236, %257 : vector<1x16xi32>
    %259 = vector.shape_cast %258 : vector<1x16xi1> to vector<1x16xi1>
    %260 = vector.broadcast %259 : vector<1x16xi1> to vector<32x16xi1>
    %261 = arith.select %260, %229, %256 : vector<32x16xi1>, vector<32x16xf32>
    %c0_i32_87 = arith.constant 0 : i32
    %262 = vector.broadcast %c0_i32_87 : i32 to vector<1x16xi32>
    %263 = arith.cmpi eq, %236, %262 : vector<1x16xi32>
    %264 = vector.shape_cast %263 : vector<1x16xi1> to vector<1x16xi1>
    %265 = vector.broadcast %264 : vector<1x16xi1> to vector<32x16xi1>
    %266 = arith.select %265, %232, %233 : vector<32x16xi1>, vector<32x16xf32>
    %c15_i32_88 = arith.constant 15 : i32
    %267 = vector.broadcast %c15_i32_88 : i32 to vector<1x16xi32>
    %268 = arith.cmpi eq, %236, %267 : vector<1x16xi32>
    %269 = vector.shape_cast %268 : vector<1x16xi1> to vector<1x16xi1>
    %270 = vector.broadcast %269 : vector<1x16xi1> to vector<32x16xi1>
    %271 = arith.select %270, %233, %232 : vector<32x16xi1>, vector<32x16xf32>
    %c14_i32_89 = arith.constant 14 : i32
    %272 = vector.broadcast %c14_i32_89 : i32 to vector<1x16xi32>
    %273 = arith.cmpi eq, %236, %272 : vector<1x16xi32>
    %274 = vector.shape_cast %273 : vector<1x16xi1> to vector<1x16xi1>
    %275 = vector.broadcast %274 : vector<1x16xi1> to vector<32x16xi1>
    %276 = arith.select %275, %229, %231 : vector<32x16xi1>, vector<32x16xf32>
    %c15_i32_90 = arith.constant 15 : i32
    %277 = vector.broadcast %c15_i32_90 : i32 to vector<1x16xi32>
    %278 = arith.cmpi eq, %236, %277 : vector<1x16xi32>
    %279 = vector.shape_cast %278 : vector<1x16xi1> to vector<1x16xi1>
    %280 = vector.broadcast %279 : vector<1x16xi1> to vector<32x16xi1>
    %281 = arith.select %280, %234, %276 : vector<32x16xi1>, vector<32x16xf32>
    %c13_i32_91 = arith.constant 13 : i32
    %282 = vector.broadcast %c13_i32_91 : i32 to vector<1x16xi32>
    %283 = arith.cmpi eq, %236, %282 : vector<1x16xi32>
    %284 = vector.shape_cast %283 : vector<1x16xi1> to vector<1x16xi1>
    %285 = vector.broadcast %284 : vector<1x16xi1> to vector<32x16xi1>
    %286 = arith.select %285, %232, %230 : vector<32x16xi1>, vector<32x16xf32>
    %c14_i32_92 = arith.constant 14 : i32
    %287 = vector.broadcast %c14_i32_92 : i32 to vector<1x16xi32>
    %288 = arith.cmpi eq, %236, %287 : vector<1x16xi32>
    %289 = vector.shape_cast %288 : vector<1x16xi1> to vector<1x16xi1>
    %290 = vector.broadcast %289 : vector<1x16xi1> to vector<32x16xi1>
    %291 = arith.select %290, %233, %286 : vector<32x16xi1>, vector<32x16xf32>
    %c15_i32_93 = arith.constant 15 : i32
    %292 = vector.broadcast %c15_i32_93 : i32 to vector<1x16xi32>
    %293 = arith.cmpi eq, %236, %292 : vector<1x16xi32>
    %294 = vector.shape_cast %293 : vector<1x16xi1> to vector<1x16xi1>
    %295 = vector.broadcast %294 : vector<1x16xi1> to vector<32x16xi1>
    %296 = arith.select %295, %235, %291 : vector<32x16xi1>, vector<32x16xf32>
    %297 = tpu.concatenate %251, %261, %266, %229, %271, %281, %296 in 0 : vector<32x16xf32>, vector<32x16xf32>, vector<32x16xf32>, vector<32x16xf32>, vector<32x16xf32>, vector<32x16xf32>, vector<32x16xf32> -> vector<224x16xf32>
    %c88 = arith.constant 88 : index
    %c0_94 = arith.constant 0 : index
    %298 = vector.load %arg2[%c88, %c0_94] : memref<648x256xbf16, #tpu.memory_space<vmem>>, vector<32x224xbf16>
    %299 = arith.truncf %297 : vector<224x16xf32> to vector<224x16xbf16>
    %cst_95 = arith.constant dense<0.000000e+00> : vector<32x16xf32>
    %300 = tpu.matmul %298, %299, %cst_95 {dimension_numbers = #tpu.dot_dimension_numbers<[1], [0], [0], [1], [0, 0, 1, 1], [], []>} : vector<32x224xbf16>, vector<224x16xbf16>, vector<32x16xf32> -> vector<32x16xf32>
    %cst_96 = arith.constant dense<0.000000e+00> : vector<32xf32>
    %301 = vector.multi_reduction <add>, %300, %cst_96 [1] : vector<32x16xf32> to vector<32xf32>
    %302 = vector.shape_cast %301 : vector<32xf32> to vector<32x1xf32>
    %cst_97 = arith.constant 1.600000e+01 : f32
    %303 = vector.broadcast %cst_97 : f32 to vector<32x1xf32>
    %304 = arith.divf %302, %303 : vector<32x1xf32>
    %305 = arith.mulf %300, %300 : vector<32x16xf32>
    %cst_98 = arith.constant dense<0.000000e+00> : vector<32xf32>
    %306 = vector.multi_reduction <add>, %305, %cst_98 [1] : vector<32x16xf32> to vector<32xf32>
    %307 = vector.shape_cast %306 : vector<32xf32> to vector<32x1xf32>
    %cst_99 = arith.constant 1.600000e+01 : f32
    %308 = vector.broadcast %cst_99 : f32 to vector<32x1xf32>
    %309 = arith.divf %307, %308 : vector<32x1xf32>
    %310 = arith.mulf %304, %304 : vector<32x1xf32>
    %311 = arith.subf %309, %310 : vector<32x1xf32>
    %cst_100 = arith.constant 0.000000e+00 : f32
    %312 = vector.broadcast %cst_100 : f32 to vector<32x1xf32>
    %313 = arith.maximumf %311, %312 : vector<32x1xf32>
    %314 = vector.broadcast %304 : vector<32x1xf32> to vector<32x16xf32>
    %315 = arith.subf %300, %314 : vector<32x16xf32>
    %cst_101 = arith.constant 9.99999974E-6 : f32
    %316 = vector.broadcast %cst_101 : f32 to vector<32x1xf32>
    %317 = arith.addf %313, %316 : vector<32x1xf32>
    %318 = math.rsqrt %317 : vector<32x1xf32>
    %319 = vector.broadcast %318 : vector<32x1xf32> to vector<32x16xf32>
    %320 = arith.mulf %315, %319 : vector<32x16xf32>
    %321 = arith.addf %136, %320 : vector<32x16xf32>
    %c13_i32_102 = arith.constant 13 : i32
    %322 = tpu.dynamic_rotate %321 by %c13_i32_102 dim 1 : vector<32x16xf32>, i32 -> vector<32x16xf32>
    %c14_i32_103 = arith.constant 14 : i32
    %323 = tpu.dynamic_rotate %321 by %c14_i32_103 dim 1 : vector<32x16xf32>, i32 -> vector<32x16xf32>
    %c15_i32_104 = arith.constant 15 : i32
    %324 = tpu.dynamic_rotate %321 by %c15_i32_104 dim 1 : vector<32x16xf32>, i32 -> vector<32x16xf32>
    %c1_i32_105 = arith.constant 1 : i32
    %325 = tpu.dynamic_rotate %321 by %c1_i32_105 dim 1 : vector<32x16xf32>, i32 -> vector<32x16xf32>
    %c2_i32_106 = arith.constant 2 : i32
    %326 = tpu.dynamic_rotate %321 by %c2_i32_106 dim 1 : vector<32x16xf32>, i32 -> vector<32x16xf32>
    %c3_i32_107 = arith.constant 3 : i32
    %327 = tpu.dynamic_rotate %321 by %c3_i32_107 dim 1 : vector<32x16xf32>, i32 -> vector<32x16xf32>
    %328 = tpu.iota {dimensions = array<i32: 1>} : vector<1x16xi32>
    %c0_i32_108 = arith.constant 0 : i32
    %329 = vector.broadcast %c0_i32_108 : i32 to vector<1x16xi32>
    %330 = arith.cmpi eq, %328, %329 : vector<1x16xi32>
    %331 = vector.shape_cast %330 : vector<1x16xi1> to vector<1x16xi1>
    %332 = vector.broadcast %331 : vector<1x16xi1> to vector<32x16xi1>
    %333 = arith.select %332, %322, %327 : vector<32x16xi1>, vector<32x16xf32>
    %c1_i32_109 = arith.constant 1 : i32
    %334 = vector.broadcast %c1_i32_109 : i32 to vector<1x16xi32>
    %335 = arith.cmpi eq, %328, %334 : vector<1x16xi32>
    %336 = vector.shape_cast %335 : vector<1x16xi1> to vector<1x16xi1>
    %337 = vector.broadcast %336 : vector<1x16xi1> to vector<32x16xi1>
    %338 = arith.select %337, %324, %333 : vector<32x16xi1>, vector<32x16xf32>
    %c2_i32_110 = arith.constant 2 : i32
    %339 = vector.broadcast %c2_i32_110 : i32 to vector<1x16xi32>
    %340 = arith.cmpi eq, %328, %339 : vector<1x16xi32>
    %341 = vector.shape_cast %340 : vector<1x16xi1> to vector<1x16xi1>
    %342 = vector.broadcast %341 : vector<1x16xi1> to vector<32x16xi1>
    %343 = arith.select %342, %325, %338 : vector<32x16xi1>, vector<32x16xf32>
    %c0_i32_111 = arith.constant 0 : i32
    %344 = vector.broadcast %c0_i32_111 : i32 to vector<1x16xi32>
    %345 = arith.cmpi eq, %328, %344 : vector<1x16xi32>
    %346 = vector.shape_cast %345 : vector<1x16xi1> to vector<1x16xi1>
    %347 = vector.broadcast %346 : vector<1x16xi1> to vector<32x16xi1>
    %348 = arith.select %347, %323, %326 : vector<32x16xi1>, vector<32x16xf32>
    %c1_i32_112 = arith.constant 1 : i32
    %349 = vector.broadcast %c1_i32_112 : i32 to vector<1x16xi32>
    %350 = arith.cmpi eq, %328, %349 : vector<1x16xi32>
    %351 = vector.shape_cast %350 : vector<1x16xi1> to vector<1x16xi1>
    %352 = vector.broadcast %351 : vector<1x16xi1> to vector<32x16xi1>
    %353 = arith.select %352, %321, %348 : vector<32x16xi1>, vector<32x16xf32>
    %c0_i32_113 = arith.constant 0 : i32
    %354 = vector.broadcast %c0_i32_113 : i32 to vector<1x16xi32>
    %355 = arith.cmpi eq, %328, %354 : vector<1x16xi32>
    %356 = vector.shape_cast %355 : vector<1x16xi1> to vector<1x16xi1>
    %357 = vector.broadcast %356 : vector<1x16xi1> to vector<32x16xi1>
    %358 = arith.select %357, %324, %325 : vector<32x16xi1>, vector<32x16xf32>
    %c15_i32_114 = arith.constant 15 : i32
    %359 = vector.broadcast %c15_i32_114 : i32 to vector<1x16xi32>
    %360 = arith.cmpi eq, %328, %359 : vector<1x16xi32>
    %361 = vector.shape_cast %360 : vector<1x16xi1> to vector<1x16xi1>
    %362 = vector.broadcast %361 : vector<1x16xi1> to vector<32x16xi1>
    %363 = arith.select %362, %325, %324 : vector<32x16xi1>, vector<32x16xf32>
    %c14_i32_115 = arith.constant 14 : i32
    %364 = vector.broadcast %c14_i32_115 : i32 to vector<1x16xi32>
    %365 = arith.cmpi eq, %328, %364 : vector<1x16xi32>
    %366 = vector.shape_cast %365 : vector<1x16xi1> to vector<1x16xi1>
    %367 = vector.broadcast %366 : vector<1x16xi1> to vector<32x16xi1>
    %368 = arith.select %367, %321, %323 : vector<32x16xi1>, vector<32x16xf32>
    %c15_i32_116 = arith.constant 15 : i32
    %369 = vector.broadcast %c15_i32_116 : i32 to vector<1x16xi32>
    %370 = arith.cmpi eq, %328, %369 : vector<1x16xi32>
    %371 = vector.shape_cast %370 : vector<1x16xi1> to vector<1x16xi1>
    %372 = vector.broadcast %371 : vector<1x16xi1> to vector<32x16xi1>
    %373 = arith.select %372, %326, %368 : vector<32x16xi1>, vector<32x16xf32>
    %c13_i32_117 = arith.constant 13 : i32
    %374 = vector.broadcast %c13_i32_117 : i32 to vector<1x16xi32>
    %375 = arith.cmpi eq, %328, %374 : vector<1x16xi32>
    %376 = vector.shape_cast %375 : vector<1x16xi1> to vector<1x16xi1>
    %377 = vector.broadcast %376 : vector<1x16xi1> to vector<32x16xi1>
    %378 = arith.select %377, %324, %322 : vector<32x16xi1>, vector<32x16xf32>
    %c14_i32_118 = arith.constant 14 : i32
    %379 = vector.broadcast %c14_i32_118 : i32 to vector<1x16xi32>
    %380 = arith.cmpi eq, %328, %379 : vector<1x16xi32>
    %381 = vector.shape_cast %380 : vector<1x16xi1> to vector<1x16xi1>
    %382 = vector.broadcast %381 : vector<1x16xi1> to vector<32x16xi1>
    %383 = arith.select %382, %325, %378 : vector<32x16xi1>, vector<32x16xf32>
    %c15_i32_119 = arith.constant 15 : i32
    %384 = vector.broadcast %c15_i32_119 : i32 to vector<1x16xi32>
    %385 = arith.cmpi eq, %328, %384 : vector<1x16xi32>
    %386 = vector.shape_cast %385 : vector<1x16xi1> to vector<1x16xi1>
    %387 = vector.broadcast %386 : vector<1x16xi1> to vector<32x16xi1>
    %388 = arith.select %387, %327, %383 : vector<32x16xi1>, vector<32x16xf32>
    %389 = tpu.concatenate %343, %353, %358, %321, %363, %373, %388 in 0 : vector<32x16xf32>, vector<32x16xf32>, vector<32x16xf32>, vector<32x16xf32>, vector<32x16xf32>, vector<32x16xf32>, vector<32x16xf32> -> vector<224x16xf32>
    %c120 = arith.constant 120 : index
    %c0_120 = arith.constant 0 : index
    %390 = vector.load %arg2[%c120, %c0_120] : memref<648x256xbf16, #tpu.memory_space<vmem>>, vector<32x224xbf16>
    %391 = arith.truncf %389 : vector<224x16xf32> to vector<224x16xbf16>
    %cst_121 = arith.constant dense<0.000000e+00> : vector<32x16xf32>
    %392 = tpu.matmul %390, %391, %cst_121 {dimension_numbers = #tpu.dot_dimension_numbers<[1], [0], [0], [1], [0, 0, 1, 1], [], []>} : vector<32x224xbf16>, vector<224x16xbf16>, vector<32x16xf32> -> vector<32x16xf32>
    %cst_122 = arith.constant dense<0.000000e+00> : vector<32xf32>
    %393 = vector.multi_reduction <add>, %392, %cst_122 [1] : vector<32x16xf32> to vector<32xf32>
    %394 = vector.shape_cast %393 : vector<32xf32> to vector<32x1xf32>
    %cst_123 = arith.constant 1.600000e+01 : f32
    %395 = vector.broadcast %cst_123 : f32 to vector<32x1xf32>
    %396 = arith.divf %394, %395 : vector<32x1xf32>
    %397 = arith.mulf %392, %392 : vector<32x16xf32>
    %cst_124 = arith.constant dense<0.000000e+00> : vector<32xf32>
    %398 = vector.multi_reduction <add>, %397, %cst_124 [1] : vector<32x16xf32> to vector<32xf32>
    %399 = vector.shape_cast %398 : vector<32xf32> to vector<32x1xf32>
    %cst_125 = arith.constant 1.600000e+01 : f32
    %400 = vector.broadcast %cst_125 : f32 to vector<32x1xf32>
    %401 = arith.divf %399, %400 : vector<32x1xf32>
    %402 = arith.mulf %396, %396 : vector<32x1xf32>
    %403 = arith.subf %401, %402 : vector<32x1xf32>
    %cst_126 = arith.constant 0.000000e+00 : f32
    %404 = vector.broadcast %cst_126 : f32 to vector<32x1xf32>
    %405 = arith.maximumf %403, %404 : vector<32x1xf32>
    %406 = vector.broadcast %396 : vector<32x1xf32> to vector<32x16xf32>
    %407 = arith.subf %392, %406 : vector<32x16xf32>
    %cst_127 = arith.constant 9.99999974E-6 : f32
    %408 = vector.broadcast %cst_127 : f32 to vector<32x1xf32>
    %409 = arith.addf %405, %408 : vector<32x1xf32>
    %410 = math.rsqrt %409 : vector<32x1xf32>
    %411 = vector.broadcast %410 : vector<32x1xf32> to vector<32x16xf32>
    %412 = arith.mulf %407, %411 : vector<32x16xf32>
    %cst_128 = arith.constant 0.000000e+00 : f32
    %413 = vector.broadcast %cst_128 : f32 to vector<32x16xf32>
    %414 = arith.maximumf %412, %413 : vector<32x16xf32>
    %c13_i32_129 = arith.constant 13 : i32
    %415 = tpu.dynamic_rotate %414 by %c13_i32_129 dim 1 : vector<32x16xf32>, i32 -> vector<32x16xf32>
    %c14_i32_130 = arith.constant 14 : i32
    %416 = tpu.dynamic_rotate %414 by %c14_i32_130 dim 1 : vector<32x16xf32>, i32 -> vector<32x16xf32>
    %c15_i32_131 = arith.constant 15 : i32
    %417 = tpu.dynamic_rotate %414 by %c15_i32_131 dim 1 : vector<32x16xf32>, i32 -> vector<32x16xf32>
    %c1_i32_132 = arith.constant 1 : i32
    %418 = tpu.dynamic_rotate %414 by %c1_i32_132 dim 1 : vector<32x16xf32>, i32 -> vector<32x16xf32>
    %c2_i32_133 = arith.constant 2 : i32
    %419 = tpu.dynamic_rotate %414 by %c2_i32_133 dim 1 : vector<32x16xf32>, i32 -> vector<32x16xf32>
    %c3_i32_134 = arith.constant 3 : i32
    %420 = tpu.dynamic_rotate %414 by %c3_i32_134 dim 1 : vector<32x16xf32>, i32 -> vector<32x16xf32>
    %421 = tpu.iota {dimensions = array<i32: 1>} : vector<1x16xi32>
    %c0_i32_135 = arith.constant 0 : i32
    %422 = vector.broadcast %c0_i32_135 : i32 to vector<1x16xi32>
    %423 = arith.cmpi eq, %421, %422 : vector<1x16xi32>
    %424 = vector.shape_cast %423 : vector<1x16xi1> to vector<1x16xi1>
    %425 = vector.broadcast %424 : vector<1x16xi1> to vector<32x16xi1>
    %426 = arith.select %425, %415, %420 : vector<32x16xi1>, vector<32x16xf32>
    %c1_i32_136 = arith.constant 1 : i32
    %427 = vector.broadcast %c1_i32_136 : i32 to vector<1x16xi32>
    %428 = arith.cmpi eq, %421, %427 : vector<1x16xi32>
    %429 = vector.shape_cast %428 : vector<1x16xi1> to vector<1x16xi1>
    %430 = vector.broadcast %429 : vector<1x16xi1> to vector<32x16xi1>
    %431 = arith.select %430, %417, %426 : vector<32x16xi1>, vector<32x16xf32>
    %c2_i32_137 = arith.constant 2 : i32
    %432 = vector.broadcast %c2_i32_137 : i32 to vector<1x16xi32>
    %433 = arith.cmpi eq, %421, %432 : vector<1x16xi32>
    %434 = vector.shape_cast %433 : vector<1x16xi1> to vector<1x16xi1>
    %435 = vector.broadcast %434 : vector<1x16xi1> to vector<32x16xi1>
    %436 = arith.select %435, %418, %431 : vector<32x16xi1>, vector<32x16xf32>
    %c0_i32_138 = arith.constant 0 : i32
    %437 = vector.broadcast %c0_i32_138 : i32 to vector<1x16xi32>
    %438 = arith.cmpi eq, %421, %437 : vector<1x16xi32>
    %439 = vector.shape_cast %438 : vector<1x16xi1> to vector<1x16xi1>
    %440 = vector.broadcast %439 : vector<1x16xi1> to vector<32x16xi1>
    %441 = arith.select %440, %416, %419 : vector<32x16xi1>, vector<32x16xf32>
    %c1_i32_139 = arith.constant 1 : i32
    %442 = vector.broadcast %c1_i32_139 : i32 to vector<1x16xi32>
    %443 = arith.cmpi eq, %421, %442 : vector<1x16xi32>
    %444 = vector.shape_cast %443 : vector<1x16xi1> to vector<1x16xi1>
    %445 = vector.broadcast %444 : vector<1x16xi1> to vector<32x16xi1>
    %446 = arith.select %445, %414, %441 : vector<32x16xi1>, vector<32x16xf32>
    %c0_i32_140 = arith.constant 0 : i32
    %447 = vector.broadcast %c0_i32_140 : i32 to vector<1x16xi32>
    %448 = arith.cmpi eq, %421, %447 : vector<1x16xi32>
    %449 = vector.shape_cast %448 : vector<1x16xi1> to vector<1x16xi1>
    %450 = vector.broadcast %449 : vector<1x16xi1> to vector<32x16xi1>
    %451 = arith.select %450, %417, %418 : vector<32x16xi1>, vector<32x16xf32>
    %c15_i32_141 = arith.constant 15 : i32
    %452 = vector.broadcast %c15_i32_141 : i32 to vector<1x16xi32>
    %453 = arith.cmpi eq, %421, %452 : vector<1x16xi32>
    %454 = vector.shape_cast %453 : vector<1x16xi1> to vector<1x16xi1>
    %455 = vector.broadcast %454 : vector<1x16xi1> to vector<32x16xi1>
    %456 = arith.select %455, %418, %417 : vector<32x16xi1>, vector<32x16xf32>
    %c14_i32_142 = arith.constant 14 : i32
    %457 = vector.broadcast %c14_i32_142 : i32 to vector<1x16xi32>
    %458 = arith.cmpi eq, %421, %457 : vector<1x16xi32>
    %459 = vector.shape_cast %458 : vector<1x16xi1> to vector<1x16xi1>
    %460 = vector.broadcast %459 : vector<1x16xi1> to vector<32x16xi1>
    %461 = arith.select %460, %414, %416 : vector<32x16xi1>, vector<32x16xf32>
    %c15_i32_143 = arith.constant 15 : i32
    %462 = vector.broadcast %c15_i32_143 : i32 to vector<1x16xi32>
    %463 = arith.cmpi eq, %421, %462 : vector<1x16xi32>
    %464 = vector.shape_cast %463 : vector<1x16xi1> to vector<1x16xi1>
    %465 = vector.broadcast %464 : vector<1x16xi1> to vector<32x16xi1>
    %466 = arith.select %465, %419, %461 : vector<32x16xi1>, vector<32x16xf32>
    %c13_i32_144 = arith.constant 13 : i32
    %467 = vector.broadcast %c13_i32_144 : i32 to vector<1x16xi32>
    %468 = arith.cmpi eq, %421, %467 : vector<1x16xi32>
    %469 = vector.shape_cast %468 : vector<1x16xi1> to vector<1x16xi1>
    %470 = vector.broadcast %469 : vector<1x16xi1> to vector<32x16xi1>
    %471 = arith.select %470, %417, %415 : vector<32x16xi1>, vector<32x16xf32>
    %c14_i32_145 = arith.constant 14 : i32
    %472 = vector.broadcast %c14_i32_145 : i32 to vector<1x16xi32>
    %473 = arith.cmpi eq, %421, %472 : vector<1x16xi32>
    %474 = vector.shape_cast %473 : vector<1x16xi1> to vector<1x16xi1>
    %475 = vector.broadcast %474 : vector<1x16xi1> to vector<32x16xi1>
    %476 = arith.select %475, %418, %471 : vector<32x16xi1>, vector<32x16xf32>
    %c15_i32_146 = arith.constant 15 : i32
    %477 = vector.broadcast %c15_i32_146 : i32 to vector<1x16xi32>
    %478 = arith.cmpi eq, %421, %477 : vector<1x16xi32>
    %479 = vector.shape_cast %478 : vector<1x16xi1> to vector<1x16xi1>
    %480 = vector.broadcast %479 : vector<1x16xi1> to vector<32x16xi1>
    %481 = arith.select %480, %420, %476 : vector<32x16xi1>, vector<32x16xf32>
    %482 = tpu.concatenate %436, %446, %451, %414, %456, %466, %481 in 0 : vector<32x16xf32>, vector<32x16xf32>, vector<32x16xf32>, vector<32x16xf32>, vector<32x16xf32>, vector<32x16xf32>, vector<32x16xf32> -> vector<224x16xf32>
    %c152 = arith.constant 152 : index
    %c0_147 = arith.constant 0 : index
    %483 = vector.load %arg2[%c152, %c0_147] : memref<648x256xbf16, #tpu.memory_space<vmem>>, vector<32x224xbf16>
    %484 = arith.truncf %482 : vector<224x16xf32> to vector<224x16xbf16>
    %cst_148 = arith.constant dense<0.000000e+00> : vector<32x16xf32>
    %485 = tpu.matmul %483, %484, %cst_148 {dimension_numbers = #tpu.dot_dimension_numbers<[1], [0], [0], [1], [0, 0, 1, 1], [], []>} : vector<32x224xbf16>, vector<224x16xbf16>, vector<32x16xf32> -> vector<32x16xf32>
    %cst_149 = arith.constant dense<0.000000e+00> : vector<32xf32>
    %486 = vector.multi_reduction <add>, %485, %cst_149 [1] : vector<32x16xf32> to vector<32xf32>
    %487 = vector.shape_cast %486 : vector<32xf32> to vector<32x1xf32>
    %cst_150 = arith.constant 1.600000e+01 : f32
    %488 = vector.broadcast %cst_150 : f32 to vector<32x1xf32>
    %489 = arith.divf %487, %488 : vector<32x1xf32>
    %490 = arith.mulf %485, %485 : vector<32x16xf32>
    %cst_151 = arith.constant dense<0.000000e+00> : vector<32xf32>
    %491 = vector.multi_reduction <add>, %490, %cst_151 [1] : vector<32x16xf32> to vector<32xf32>
    %492 = vector.shape_cast %491 : vector<32xf32> to vector<32x1xf32>
    %cst_152 = arith.constant 1.600000e+01 : f32
    %493 = vector.broadcast %cst_152 : f32 to vector<32x1xf32>
    %494 = arith.divf %492, %493 : vector<32x1xf32>
    %495 = arith.mulf %489, %489 : vector<32x1xf32>
    %496 = arith.subf %494, %495 : vector<32x1xf32>
    %cst_153 = arith.constant 0.000000e+00 : f32
    %497 = vector.broadcast %cst_153 : f32 to vector<32x1xf32>
    %498 = arith.maximumf %496, %497 : vector<32x1xf32>
    %499 = vector.broadcast %489 : vector<32x1xf32> to vector<32x16xf32>
    %500 = arith.subf %485, %499 : vector<32x16xf32>
    %cst_154 = arith.constant 9.99999974E-6 : f32
    %501 = vector.broadcast %cst_154 : f32 to vector<32x1xf32>
    %502 = arith.addf %498, %501 : vector<32x1xf32>
    %503 = math.rsqrt %502 : vector<32x1xf32>
    %504 = vector.broadcast %503 : vector<32x1xf32> to vector<32x16xf32>
    %505 = arith.mulf %500, %504 : vector<32x16xf32>
    %506 = arith.addf %321, %505 : vector<32x16xf32>
    %507 = arith.truncf %506 : vector<32x16xf32> to vector<32x16xbf16>
    %c504 = arith.constant 504 : index
    %c0_155 = arith.constant 0 : index
    %508 = vector.load %arg2[%c504, %c0_155] : memref<648x256xbf16, #tpu.memory_space<vmem>>, vector<16x32xbf16>
    %cst_156 = arith.constant dense<0.000000e+00> : vector<32x32xf32>
    %509 = tpu.matmul %507, %508, %cst_156 {dimension_numbers = #tpu.dot_dimension_numbers<[1], [0], [0], [1], [0, 0, 1, 1], [], []>} : vector<32x16xbf16>, vector<16x32xbf16>, vector<32x32xf32> -> vector<32x32xf32>
    %c520 = arith.constant 520 : index
    %c0_157 = arith.constant 0 : index
    %510 = vector.load %arg2[%c520, %c0_157] : memref<648x256xbf16, #tpu.memory_space<vmem>>, vector<16x32xbf16>
    %cst_158 = arith.constant dense<0.000000e+00> : vector<32x32xf32>
    %511 = tpu.matmul %507, %510, %cst_158 {dimension_numbers = #tpu.dot_dimension_numbers<[1], [0], [0], [1], [0, 0, 1, 1], [], []>} : vector<32x16xbf16>, vector<16x32xbf16>, vector<32x32xf32> -> vector<32x32xf32>
    %c536 = arith.constant 536 : index
    %c0_159 = arith.constant 0 : index
    %512 = vector.load %arg2[%c536, %c0_159] : memref<648x256xbf16, #tpu.memory_space<vmem>>, vector<16x32xbf16>
    %cst_160 = arith.constant dense<0.000000e+00> : vector<32x32xf32>
    %513 = tpu.matmul %507, %512, %cst_160 {dimension_numbers = #tpu.dot_dimension_numbers<[1], [0], [0], [1], [0, 0, 1, 1], [], []>} : vector<32x16xbf16>, vector<16x32xbf16>, vector<32x32xf32> -> vector<32x32xf32>
    %514 = tpu.concatenate %509, %511, %513 in 0 : vector<32x32xf32>, vector<32x32xf32>, vector<32x32xf32> -> vector<96x32xf32>
    %c184 = arith.constant 184 : index
    %c0_161 = arith.constant 0 : index
    %515 = vector.load %arg2[%c184, %c0_161] : memref<648x256xbf16, #tpu.memory_space<vmem>>, vector<16x96xbf16>
    %516 = arith.truncf %514 : vector<96x32xf32> to vector<96x32xbf16>
    %cst_162 = arith.constant dense<0.000000e+00> : vector<16x32xf32>
    %517 = tpu.matmul %515, %516, %cst_162 {dimension_numbers = #tpu.dot_dimension_numbers<[1], [0], [0], [1], [0, 0, 1, 1], [], []>} : vector<16x96xbf16>, vector<96x32xbf16>, vector<16x32xf32> -> vector<16x32xf32>
    %cst_163 = arith.constant dense<0.000000e+00> : vector<16xf32>
    %518 = vector.multi_reduction <add>, %517, %cst_163 [1] : vector<16x32xf32> to vector<16xf32>
    %519 = vector.shape_cast %518 : vector<16xf32> to vector<16x1xf32>
    %cst_164 = arith.constant 3.200000e+01 : f32
    %520 = vector.broadcast %cst_164 : f32 to vector<16x1xf32>
    %521 = arith.divf %519, %520 : vector<16x1xf32>
    %522 = arith.mulf %517, %517 : vector<16x32xf32>
    %cst_165 = arith.constant dense<0.000000e+00> : vector<16xf32>
    %523 = vector.multi_reduction <add>, %522, %cst_165 [1] : vector<16x32xf32> to vector<16xf32>
    %524 = vector.shape_cast %523 : vector<16xf32> to vector<16x1xf32>
    %cst_166 = arith.constant 3.200000e+01 : f32
    %525 = vector.broadcast %cst_166 : f32 to vector<16x1xf32>
    %526 = arith.divf %524, %525 : vector<16x1xf32>
    %527 = arith.mulf %521, %521 : vector<16x1xf32>
    %528 = arith.subf %526, %527 : vector<16x1xf32>
    %cst_167 = arith.constant 0.000000e+00 : f32
    %529 = vector.broadcast %cst_167 : f32 to vector<16x1xf32>
    %530 = arith.maximumf %528, %529 : vector<16x1xf32>
    %531 = vector.broadcast %521 : vector<16x1xf32> to vector<16x32xf32>
    %532 = arith.subf %517, %531 : vector<16x32xf32>
    %cst_168 = arith.constant 9.99999974E-6 : f32
    %533 = vector.broadcast %cst_168 : f32 to vector<16x1xf32>
    %534 = arith.addf %530, %533 : vector<16x1xf32>
    %535 = math.rsqrt %534 : vector<16x1xf32>
    %536 = vector.broadcast %535 : vector<16x1xf32> to vector<16x32xf32>
    %537 = arith.mulf %532, %536 : vector<16x32xf32>
    %cst_169 = arith.constant 0.000000e+00 : f32
    %538 = vector.broadcast %cst_169 : f32 to vector<16x32xf32>
    %539 = arith.maximumf %537, %538 : vector<16x32xf32>
    %540 = arith.truncf %539 : vector<16x32xf32> to vector<16x32xbf16>
    %c552 = arith.constant 552 : index
    %c0_170 = arith.constant 0 : index
    %541 = vector.load %arg2[%c552, %c0_170] : memref<648x256xbf16, #tpu.memory_space<vmem>>, vector<32x64xbf16>
    %cst_171 = arith.constant dense<0.000000e+00> : vector<16x64xf32>
    %542 = tpu.matmul %540, %541, %cst_171 {dimension_numbers = #tpu.dot_dimension_numbers<[1], [0], [0], [1], [0, 0, 1, 1], [], []>} : vector<16x32xbf16>, vector<32x64xbf16>, vector<16x64xf32> -> vector<16x64xf32>
    %c584 = arith.constant 584 : index
    %c0_172 = arith.constant 0 : index
    %543 = vector.load %arg2[%c584, %c0_172] : memref<648x256xbf16, #tpu.memory_space<vmem>>, vector<32x64xbf16>
    %cst_173 = arith.constant dense<0.000000e+00> : vector<16x64xf32>
    %544 = tpu.matmul %540, %543, %cst_173 {dimension_numbers = #tpu.dot_dimension_numbers<[1], [0], [0], [1], [0, 0, 1, 1], [], []>} : vector<16x32xbf16>, vector<32x64xbf16>, vector<16x64xf32> -> vector<16x64xf32>
    %c616 = arith.constant 616 : index
    %c0_174 = arith.constant 0 : index
    %545 = vector.load %arg2[%c616, %c0_174] : memref<648x256xbf16, #tpu.memory_space<vmem>>, vector<32x64xbf16>
    %cst_175 = arith.constant dense<0.000000e+00> : vector<16x64xf32>
    %546 = tpu.matmul %540, %545, %cst_175 {dimension_numbers = #tpu.dot_dimension_numbers<[1], [0], [0], [1], [0, 0, 1, 1], [], []>} : vector<16x32xbf16>, vector<32x64xbf16>, vector<16x64xf32> -> vector<16x64xf32>
    %547 = tpu.concatenate %542, %544, %546 in 0 : vector<16x64xf32>, vector<16x64xf32>, vector<16x64xf32> -> vector<48x64xf32>
    %c200 = arith.constant 200 : index
    %c0_176 = arith.constant 0 : index
    %548 = vector.load %arg2[%c200, %c0_176] : memref<648x256xbf16, #tpu.memory_space<vmem>>, vector<8x48xbf16>
    %549 = arith.truncf %547 : vector<48x64xf32> to vector<48x64xbf16>
    %cst_177 = arith.constant dense<0.000000e+00> : vector<8x64xf32>
    %550 = tpu.matmul %548, %549, %cst_177 {dimension_numbers = #tpu.dot_dimension_numbers<[1], [0], [0], [1], [0, 0, 1, 1], [], []>} : vector<8x48xbf16>, vector<48x64xbf16>, vector<8x64xf32> -> vector<8x64xf32>
    %cst_178 = arith.constant dense<0.000000e+00> : vector<8xf32>
    %551 = vector.multi_reduction <add>, %550, %cst_178 [1] : vector<8x64xf32> to vector<8xf32>
    %552 = vector.shape_cast %551 : vector<8xf32> to vector<8x1xf32>
    %cst_179 = arith.constant 6.400000e+01 : f32
    %553 = vector.broadcast %cst_179 : f32 to vector<8x1xf32>
    %554 = arith.divf %552, %553 : vector<8x1xf32>
    %555 = arith.mulf %550, %550 : vector<8x64xf32>
    %cst_180 = arith.constant dense<0.000000e+00> : vector<8xf32>
    %556 = vector.multi_reduction <add>, %555, %cst_180 [1] : vector<8x64xf32> to vector<8xf32>
    %557 = vector.shape_cast %556 : vector<8xf32> to vector<8x1xf32>
    %cst_181 = arith.constant 6.400000e+01 : f32
    %558 = vector.broadcast %cst_181 : f32 to vector<8x1xf32>
    %559 = arith.divf %557, %558 : vector<8x1xf32>
    %560 = arith.mulf %554, %554 : vector<8x1xf32>
    %561 = arith.subf %559, %560 : vector<8x1xf32>
    %cst_182 = arith.constant 0.000000e+00 : f32
    %562 = vector.broadcast %cst_182 : f32 to vector<8x1xf32>
    %563 = arith.maximumf %561, %562 : vector<8x1xf32>
    %564 = vector.broadcast %554 : vector<8x1xf32> to vector<8x64xf32>
    %565 = arith.subf %550, %564 : vector<8x64xf32>
    %cst_183 = arith.constant 9.99999974E-6 : f32
    %566 = vector.broadcast %cst_183 : f32 to vector<8x1xf32>
    %567 = arith.addf %563, %566 : vector<8x1xf32>
    %568 = math.rsqrt %567 : vector<8x1xf32>
    %569 = vector.broadcast %568 : vector<8x1xf32> to vector<8x64xf32>
    %570 = arith.mulf %565, %569 : vector<8x64xf32>
    %cst_184 = arith.constant 0.000000e+00 : f32
    %571 = vector.broadcast %cst_184 : f32 to vector<8x64xf32>
    %572 = arith.maximumf %570, %571 : vector<8x64xf32>
    %c61_i32_185 = arith.constant 61 : i32
    %573 = tpu.dynamic_rotate %572 by %c61_i32_185 dim 1 : vector<8x64xf32>, i32 -> vector<8x64xf32>
    %c62_i32_186 = arith.constant 62 : i32
    %574 = tpu.dynamic_rotate %572 by %c62_i32_186 dim 1 : vector<8x64xf32>, i32 -> vector<8x64xf32>
    %c63_i32_187 = arith.constant 63 : i32
    %575 = tpu.dynamic_rotate %572 by %c63_i32_187 dim 1 : vector<8x64xf32>, i32 -> vector<8x64xf32>
    %c1_i32_188 = arith.constant 1 : i32
    %576 = tpu.dynamic_rotate %572 by %c1_i32_188 dim 1 : vector<8x64xf32>, i32 -> vector<8x64xf32>
    %c2_i32_189 = arith.constant 2 : i32
    %577 = tpu.dynamic_rotate %572 by %c2_i32_189 dim 1 : vector<8x64xf32>, i32 -> vector<8x64xf32>
    %c3_i32_190 = arith.constant 3 : i32
    %578 = tpu.dynamic_rotate %572 by %c3_i32_190 dim 1 : vector<8x64xf32>, i32 -> vector<8x64xf32>
    %579 = tpu.iota {dimensions = array<i32: 1>} : vector<1x64xi32>
    %c0_i32_191 = arith.constant 0 : i32
    %580 = vector.broadcast %c0_i32_191 : i32 to vector<1x64xi32>
    %581 = arith.cmpi eq, %579, %580 : vector<1x64xi32>
    %582 = vector.shape_cast %581 : vector<1x64xi1> to vector<1x64xi1>
    %583 = vector.broadcast %582 : vector<1x64xi1> to vector<8x64xi1>
    %584 = arith.select %583, %573, %578 : vector<8x64xi1>, vector<8x64xf32>
    %c1_i32_192 = arith.constant 1 : i32
    %585 = vector.broadcast %c1_i32_192 : i32 to vector<1x64xi32>
    %586 = arith.cmpi eq, %579, %585 : vector<1x64xi32>
    %587 = vector.shape_cast %586 : vector<1x64xi1> to vector<1x64xi1>
    %588 = vector.broadcast %587 : vector<1x64xi1> to vector<8x64xi1>
    %589 = arith.select %588, %575, %584 : vector<8x64xi1>, vector<8x64xf32>
    %c2_i32_193 = arith.constant 2 : i32
    %590 = vector.broadcast %c2_i32_193 : i32 to vector<1x64xi32>
    %591 = arith.cmpi eq, %579, %590 : vector<1x64xi32>
    %592 = vector.shape_cast %591 : vector<1x64xi1> to vector<1x64xi1>
    %593 = vector.broadcast %592 : vector<1x64xi1> to vector<8x64xi1>
    %594 = arith.select %593, %576, %589 : vector<8x64xi1>, vector<8x64xf32>
    %c0_i32_194 = arith.constant 0 : i32
    %595 = vector.broadcast %c0_i32_194 : i32 to vector<1x64xi32>
    %596 = arith.cmpi eq, %579, %595 : vector<1x64xi32>
    %597 = vector.shape_cast %596 : vector<1x64xi1> to vector<1x64xi1>
    %598 = vector.broadcast %597 : vector<1x64xi1> to vector<8x64xi1>
    %599 = arith.select %598, %574, %577 : vector<8x64xi1>, vector<8x64xf32>
    %c1_i32_195 = arith.constant 1 : i32
    %600 = vector.broadcast %c1_i32_195 : i32 to vector<1x64xi32>
    %601 = arith.cmpi eq, %579, %600 : vector<1x64xi32>
    %602 = vector.shape_cast %601 : vector<1x64xi1> to vector<1x64xi1>
    %603 = vector.broadcast %602 : vector<1x64xi1> to vector<8x64xi1>
    %604 = arith.select %603, %572, %599 : vector<8x64xi1>, vector<8x64xf32>
    %c0_i32_196 = arith.constant 0 : i32
    %605 = vector.broadcast %c0_i32_196 : i32 to vector<1x64xi32>
    %606 = arith.cmpi eq, %579, %605 : vector<1x64xi32>
    %607 = vector.shape_cast %606 : vector<1x64xi1> to vector<1x64xi1>
    %608 = vector.broadcast %607 : vector<1x64xi1> to vector<8x64xi1>
    %609 = arith.select %608, %575, %576 : vector<8x64xi1>, vector<8x64xf32>
    %c63_i32_197 = arith.constant 63 : i32
    %610 = vector.broadcast %c63_i32_197 : i32 to vector<1x64xi32>
    %611 = arith.cmpi eq, %579, %610 : vector<1x64xi32>
    %612 = vector.shape_cast %611 : vector<1x64xi1> to vector<1x64xi1>
    %613 = vector.broadcast %612 : vector<1x64xi1> to vector<8x64xi1>
    %614 = arith.select %613, %576, %575 : vector<8x64xi1>, vector<8x64xf32>
    %c62_i32_198 = arith.constant 62 : i32
    %615 = vector.broadcast %c62_i32_198 : i32 to vector<1x64xi32>
    %616 = arith.cmpi eq, %579, %615 : vector<1x64xi32>
    %617 = vector.shape_cast %616 : vector<1x64xi1> to vector<1x64xi1>
    %618 = vector.broadcast %617 : vector<1x64xi1> to vector<8x64xi1>
    %619 = arith.select %618, %572, %574 : vector<8x64xi1>, vector<8x64xf32>
    %c63_i32_199 = arith.constant 63 : i32
    %620 = vector.broadcast %c63_i32_199 : i32 to vector<1x64xi32>
    %621 = arith.cmpi eq, %579, %620 : vector<1x64xi32>
    %622 = vector.shape_cast %621 : vector<1x64xi1> to vector<1x64xi1>
    %623 = vector.broadcast %622 : vector<1x64xi1> to vector<8x64xi1>
    %624 = arith.select %623, %577, %619 : vector<8x64xi1>, vector<8x64xf32>
    %c61_i32_200 = arith.constant 61 : i32
    %625 = vector.broadcast %c61_i32_200 : i32 to vector<1x64xi32>
    %626 = arith.cmpi eq, %579, %625 : vector<1x64xi32>
    %627 = vector.shape_cast %626 : vector<1x64xi1> to vector<1x64xi1>
    %628 = vector.broadcast %627 : vector<1x64xi1> to vector<8x64xi1>
    %629 = arith.select %628, %575, %573 : vector<8x64xi1>, vector<8x64xf32>
    %c62_i32_201 = arith.constant 62 : i32
    %630 = vector.broadcast %c62_i32_201 : i32 to vector<1x64xi32>
    %631 = arith.cmpi eq, %579, %630 : vector<1x64xi32>
    %632 = vector.shape_cast %631 : vector<1x64xi1> to vector<1x64xi1>
    %633 = vector.broadcast %632 : vector<1x64xi1> to vector<8x64xi1>
    %634 = arith.select %633, %576, %629 : vector<8x64xi1>, vector<8x64xf32>
    %c63_i32_202 = arith.constant 63 : i32
    %635 = vector.broadcast %c63_i32_202 : i32 to vector<1x64xi32>
    %636 = arith.cmpi eq, %579, %635 : vector<1x64xi32>
    %637 = vector.shape_cast %636 : vector<1x64xi1> to vector<1x64xi1>
    %638 = vector.broadcast %637 : vector<1x64xi1> to vector<8x64xi1>
    %639 = arith.select %638, %578, %634 : vector<8x64xi1>, vector<8x64xf32>
    %640 = tpu.concatenate %594, %604, %609, %572, %614, %624, %639 in 0 : vector<8x64xf32>, vector<8x64xf32>, vector<8x64xf32>, vector<8x64xf32>, vector<8x64xf32>, vector<8x64xf32>, vector<8x64xf32> -> vector<56x64xf32>
    %c208 = arith.constant 208 : index
    %c0_203 = arith.constant 0 : index
    %641 = vector.load %arg2[%c208, %c0_203] : memref<648x256xbf16, #tpu.memory_space<vmem>>, vector<1x56xbf16>
    %642 = arith.truncf %640 : vector<56x64xf32> to vector<56x64xbf16>
    %cst_204 = arith.constant dense<0.000000e+00> : vector<1x64xf32>
    %643 = tpu.matmul %641, %642, %cst_204 {dimension_numbers = #tpu.dot_dimension_numbers<[1], [0], [0], [1], [0, 0, 1, 1], [], []>} : vector<1x56xbf16>, vector<56x64xbf16>, vector<1x64xf32> -> vector<1x64xf32>
    %c0_205 = arith.constant 0 : index
    %c0_206 = arith.constant 0 : index
    %644 = vector.load %arg3[%c0_205, %c0_206] : memref<1x1xf32, #tpu.memory_space<vmem>>, vector<1x1xf32>
    %645 = vector.broadcast %644 : vector<1x1xf32> to vector<1x64xf32>
    %646 = arith.addf %643, %645 : vector<1x64xf32>
    %647 = math.tanh %646 : vector<1x64xf32>
    %c0_207 = arith.constant 0 : index
    %c0_208 = arith.constant 0 : index
    %c0_209 = arith.constant 0 : index
    %648 = vector.load %arg4[%c0_207, %c0_208, %c0_209] : memref<1x1x64xf32, #tpu.memory_space<vmem>>, vector<1x1x64xf32>
    %649 = vector.shape_cast %648 : vector<1x1x64xf32> to vector<1x64xf32>
    %650 = vector.shape_cast %647 : vector<1x64xf32> to vector<1x1x64xf32>
    tpu.vector_store %arg4[%c0_207, %c0_208, %c0_209], %650 {strides = array<i32>} : memref<1x1x64xf32, #tpu.memory_space<vmem>>, vector<1x1x64xf32>,
    return
  }
  func.func @transform_0(%arg0: i32) -> (i32, i32, i32) {
    %c0_i32 = arith.constant 0 : i32
    %c0_i32_0 = arith.constant 0 : i32
    %c0_i32_1 = arith.constant 0 : i32
    return %arg0, %c0_i32, %c0_i32_0 : i32, i32, i32
  }
  func.func @transform_1(%arg0: i32) -> (i32, i32) {
    %c0_i32 = arith.constant 0 : i32
    %c0_i32_0 = arith.constant 0 : i32
    %c0_i32_1 = arith.constant 0 : i32
    return %c0_i32, %c0_i32_0 : i32, i32
  }
  func.func @transform_2(%arg0: i32) -> (i32, i32) {
    %c0_i32 = arith.constant 0 : i32
    %c0_i32_0 = arith.constant 0 : i32
    %c0_i32_1 = arith.constant 0 : i32
    return %c0_i32, %c0_i32_0 : i32, i32
  }
  func.func @transform_3(%arg0: i32) -> (i32, i32, i32) {
    %c0_i32 = arith.constant 0 : i32
    %c0_i32_0 = arith.constant 0 : i32
    %c0_i32_1 = arith.constant 0 : i32
    return %arg0, %c0_i32, %c0_i32_0 : i32, i32, i32
  }
}

</mosaic_0001>

<bundles_post_ra>
// kernel: generator_forward.1
= control target key start
LH: loop header
LB: loop body
LE: loop exit
PB: predicated region body
PF: predicated region fallthrough
CT: control target
= control target key end

     0   :  { %s5385_s0 = inlined_call_operand.vmem [shape: f32[2,1,64], index: 0, kind: input, shape index: {}]   ;;  %s5386_s1 = inlined_call_operand.hbm [shape: bf16[648,256], index: 1, kind: input, shape index: {}]   ;;  %s5387_s2 = inlined_call_operand.<no memory space> [shape: f32[1,1], index: 2, kind: input, shape index: {}]   ;;  %s5388_s3 = inlined_call_operand.hbm [shape: f32[2,1,64], index: 3, kind: output, shape index: {}]  }
   0x1   :  { %v8_v0 = vstv %s5387_s2 }
   0x2   :  { %9 = vst [vmem:[#allocation2] sm:$0x1] %v8_v0 }
   0x3   :  { %10 = vsyncpa [#allocation4], 0 }
   0x4   :  { %11 = vsyncpa [#allocation5], 0 }
   0x5   :  { %13 = vsyncpa [#allocation5 + $0x1], 0  ;;  %s3853_s14 = smov 0   ;;  %s3855_s15 = smov 0  }
   0x6   :  { %s3857_s16 = smov 0   ;;  %s3859_s17 = smov 0  }
   0x7 LB: > { %s3874_s2 = sadd.s32 4294967295, %s3809_s17   ;;  %s2900_s18 = sadd.s32 4294967294, %s3809_s17   ;;  %s3809_s17 = sphi %s3859_s17, %s5410_s17   ;;  %s3805_s16 = sphi %s3857_s16, %s5409_s16   ;;  %s3801_s15 = sphi %s3855_s15, %s5408_s15   ;;  %s3797_s14 = sphi %s3853_s14, %s5407_s14  }
   0x8   : > { %s3878_s19 = sadd.s32 1, %s3809_s17   ;;  %s94_s20 = sadd.s32 1, %s3805_s16 }
   0x9   : > { %s91_s21 = ssub.s32 %s3809_s17, %s3878_s19  ;;  %p104_p0 = scmp.ne.s32.totalorder %s3805_s16, %s3801_s15 }
   0xa   : > { %p92_p1 = scmp.eq.s32.totalorder %s91_s21, 0  ;;  %p105_p2 = scmp.eq.s32.totalorder %s3874_s2, 1 }
   0xb   : > { %p110_p3 = scmp.ne.s32.totalorder %s3801_s15, %s3797_s14  ;;  %p111_p4 = scmp.eq.s32.totalorder %s2900_s18, 1 }
   0xc   : > { %s3889_s22 = scalar_select %p92_p1, %s3805_s16, %s94_s20  }
   0xd   : > { %p3891_p5 = por %p105_p2, %p104_p0  ;;  %p3895_p6 = por %p111_p4, %p110_p3 }
   0xe   : > { %p2901_p7 = scmp.ge.s32.totalorder %s3809_s17, 1  ;;  %p118_p8 = scmp.lt.s32.totalorder %s3809_s17, 3 }
   0xf   : > { %s5394_s23 = scalar_select %p3891_p5, 1, 0 }
  0x10   : > { %s5395_s24 = scalar_select %p3895_p6, 1, 0 }
  0x11   : > { %p5389_p9 = scmp.eq.s32.totalorder %s3874_s2, 0  ;;  %p3902_p10 = pnand %p2901_p7, %p118_p8 }
  0x12   : > { %s3811_s26 = smov [#allocation3]   ;;  %s3715_s4 = scalar_lea.hbm %s5386_s1, 10368 }
  0x13   : > { %s5396_s25 = scalar_select %p3902_p10, 1, 0 }
  0x14   : > { %s130_s27 = sshll.u32 %s3811_s26, 4  ;;  %p3224_p11 = pneg %p3902_p10  ;;  %s131_s27 = int_to_ptr.vmem [resolvable:$true] %s130_s27 }
  0x15   : > { %p3716_p13 = scmp.ne.s32.totalorder %s5386_s1, %s3715_s4  ;;  %p3722_p3 = scmp.lt.u32.totalorder %s3715_s4, %s5386_s1 }
  0x16   : > { %p3910_p12 = pnand %p5389_p9, %p3224_p11 }
  0x18   : > { %p3717_p0 = pneg %p3910_p12 }
  0x1a   : > { %p3718_p1 = pnand %p3717_p0, %p3716_p13 }
  0x1c   : > { %p3719_p2 = pneg %p3718_p1 }
  0x1e   : > { %p3724_p4 = pnand %p3722_p3, %p3719_p2 }
  0x20   : > { %3727 = shalt.err (!%p3724_p4)
}
  0x21   : > { %s3728_s9 = scalar_lea.vmem %s131_s27, 10368  ;;  %p3736_p9 = scmp.lt.s32.totalorder %s131_s27, %s131_s27 }
  0x22   : > { %p3729_p7 = scmp.ne.s32.totalorder %s131_s27, %s3728_s9  ;;  %p3737_p6 = scmp.lt.s32.totalorder %s3728_s9, %s3728_s9 }
  0x24   : > { %p3731_p8 = pnand %p3729_p7, %p3717_p0  ;;  %p3738_p5 = por %p3737_p6, %p3736_p9 }
  0x26   : > { %p3732_p11 = pneg %p3731_p8 }
  0x28   : > { %p3739_p10 = pnand %p3738_p5, %p3732_p11 }
  0x2a   : > { %3742 = shalt.err (!%p3739_p10)
}
  0x2b   : > { %s3812_s10 = smov 128   ;;  %s3813_s11 = smov 8  }
  0x2c   : > { %3227 = dma.hbm_to_vmem [thread:$0]  (!%p3910_p12), %s5386_s1, 10368, %s131_s27, [#allocation4], %s3812_s10, %s3812_s10, %s3813_s11  }
  0x2d   : > { %p5398_p13 = scmp.ne.s32.totalorder %s5396_s25, 0 }
  0x2e   : > { %p5399_p1 = scmp.eq.s32.totalorder (!%p5398_p13), %s3874_s2, 0 }
  0x2f   : > { %155 = sbr.rel (%p5398_p13) target bundleno = 7178 (0x1c0a), region = 32 }
  0x36   : > { %3788 = dma.done.wait (%p5399_p1), [#allocation4], 10368   ;;  %p5400_p0 = pmov %p5399_p1 }
  0x37   : > { %p176_p5 = scmp.lt.s32.totalorder %s3874_s2, 1  ;;  %s3814_s28 = smov 64   ;;  %vm181_vm0 = vcmask 1048064   ;;  %v3817_v6 = vmov 0.0   ;;  %vm3822_vm1 = vmmov 0   ;;  %v188_v7 = vlaneseq }
  0x38   : > { %3790 = vsyncadd (%p5400_p0), [#allocation4], 4294956928  ;;  %s3815_s25 = smov 125   ;;  %s3816_s27 = smov 126   ;;  %3054 = vmatprep.subr.bf16.mxu0 %v3817_v6  ;;  %3060 = vmatprep.subr.bf16.mxu1 %v3817_v6  ;;  %vm248_vm8 = vcmask 1040384   ;;  %vm250_vm9 = vcmask 1041408  }
  0x39   : > { %s177_s18 = scalar_select %p176_p5, %s3874_s2, 1  ;;  %3056 = vmatprep.mubr.msk.bf16.mxu0 %vm3822_vm1, %v3817_v6  ;;  %3068 = vmatprep.mubr.msk.bf16.mxu1 %vm3822_vm1, %v3817_v6  ;;  %v3957_v9 = vand.u32 127, %v188_v7  ;;  %v3960_v11 = vshrl.u32 %v188_v7, 7  ;;  %vm252_vm10 = vcmask 1042432   ;;  %vm5392_vm11 = vcmask 1043456  }
  0x3a   : > { %s3818_s29 = smov 127   ;;  %s3819_s30 = smov 66   ;;  %vm256_vm12 = vcmask 1044480   ;;  %vm258_vm13 = vcmask 1045504   ;;  %v3823_v37 = vmov 65535   ;;  %vm262_vm14 = vcmask 56320  }
  0x3b   : > { %s178_s26 = scalar_lea.vmem %s5385_s0, %s177_s18  ;;  %s3820_s4 = smov 67   ;;  %vm190_vm2 = vcmp.eq.s32.totalorder %v3957_v9, 0  ;;  %vm199_vm3 = vcmp.eq.s32.totalorder %v3957_v9, 1  ;;  %v236_v14 = vsub.s32 0, %v3960_v11  ;;  %vm220_vm4 = vcmp.eq.s32.totalorder %v3957_v9, 62 }
  0x3c   : > { %v180_v1 = vld [vmem:[%s178_s26] sm:$0x1]  ;;  %s3821_s5 = smov 65   ;;  %vm223_vm5 = vcmp.eq.s32.totalorder %v3957_v9, 61  ;;  %vm204_vm6 = vcmp.eq.s32.totalorder %v3957_v9, 2  ;;  %vm5393_vm7 = vcmp.eq.s32.totalorder %v3957_v9, 63 }
  0x3d   : > { %182 = vrot.lane.b32.xlu0 %v180_v1, %s3814_s28  ;;  %v237_v19 = vrot.slane %v180_v1, %v236_v14  ;;  %v266_v38 = vsel %vm252_vm10, 4294967295, %v3823_v37  ;;  %v260_v46 = vld [vmem:[#allocation3] sm:$0xf]  ;;  %vm311_vm15 = vcmask 523264   ;;  %v3608_v56 = vld [vmem:[#allocation3 + $0xe8] ss:$8 sps:$4 sm:$0xff]  }
  0x3e   : > { %v267_v43 = vsel %vm5392_vm11, %v266_v38, 0  ;;  %v3606_v54 = vld [vmem:[#allocation3 + $0xd8] ss:$8 sps:$4 sm:$0xff]   ;;  %v3609_v57 = vld [vmem:[#allocation3 + $0x128] ss:$8 sps:$4 sm:$0xff]   ;;  %s3824_s6 = smov 16  }
  0x3f   : > { %v3607_v55 = vld [vmem:[#allocation3 + $0x118] ss:$8 sps:$4 sm:$0xff]   ;;  %3061 = vmatpush3.bf16.msra.mxu1 %v3606_v54  ;;  %v3612_v60 = vld [vmem:[#allocation3 + $0x108] ss:$8 sps:$4 sm:$0xff]   ;;  %s3825_s7 = smov 115   ;;  %s3827_s8 = smov 113  }
  0x40   : > { %3062 = vmatprep.subr.bf16.mxu1 %v3817_v6  ;;  %v3610_v58 = vld [vmem:[#allocation3 + $0xf8] ss:$8 sps:$4 sm:$0xff]   ;;  %v3613_v61 = vld [vmem:[#allocation3 + $0x148] ss:$8 sps:$4 sm:$0xff]   ;;  %s3828_s9 = smov 114   ;;  %s174_s10 = sand.u32 1, %s3801_s15  }
  0x41   : > { %v3611_v59 = vld [vmem:[#allocation3 + $0x138] ss:$8 sps:$4 sm:$0xff]   ;;  %s2983_s11 = sshll.u32 %s3874_s2, 4  ;;  %s175_s12 = scalar_lea.vmem [#allocation6], %s174_s10 }
  0x42   : > { %s2836_s13 = sshll.u32 %s175_s12, 4  ;;  %s5343_s21 = scalar_lea.hbm %s5388_s3, %s2983_s11  ;;  %s5345_s13 = int_to_ptr.vmem [resolvable:$true] %s2836_s13 }
  0x43   : > { %3063 = vmatpush3.bf16.msra.mxu1 %v3608_v56  ;;  %s2824_s26 = scalar_lea.sflag [#allocation5], %s174_s10  ;;  %p5405_p9 = scmp.ne.s32.totalorder %s5394_s23, 0 }
  0x44   : > { %3064 = vmatprep.subr.bf16.mxu1 %v3817_v6  ;;  %s3829_s2 = smov [#allocation6]  }
  0x47   : > { %3065 = vmatpush3.bf16.msra.mxu1 %v3610_v58 }
  0x48   : > { %3066 = vmatprep.subr.bf16.mxu1 %v3817_v6 }
  0x4b   : > { %3067 = vmatpush3.bf16.msra.mxu1 %v3612_v60 }
  0x4c   : > { %3084 = vmatprep.subr.bf16.mxu1 %v3817_v6 }
  0xaf   : > { %v183_v2 = vpop.permute.xlu0 %182 }
  0xb0   : > { %v184_v3 = vsel %vm181_vm0, %v183_v2, %v180_v1 }
  0xb1   : > { %185 = vrot.lane.b32.xlu0 %v184_v3, %s3814_s28 }
 0x123   : > { %v186_v4 = vpop.permute.xlu0 %185 }
 0x124   : > { %v187_v5 = vsel %vm181_vm0, %v186_v4, %v180_v1 }
 0x125   : > { %192 = vrot.lane.b32.xlu0 %v187_v5, %s3815_s25  ;;  %209 = vrot.lane.b32.xlu1 %v187_v5, %s3816_s27 }
 0x129   : > { %200 = vrot.lane.b32.xlu0 %v187_v5, %s3818_s29  ;;  %212 = vrot.lane.b32.xlu1 %v187_v5, %s3819_s30 }
 0x12d   : > { %195 = vrot.lane.b32.xlu1 %v187_v5, %s3820_s4 }
 0x131   : > { %205 = vrot.lane.b32.xlu1 %v187_v5, %s3821_s5 }
 0x197   : > { %v210_v8 = vpop.permute.xlu1 %209  ;;  %v193_v10 = vpop.permute.xlu0 %192 }
 0x198   : > { %v221_v20 = vsel %vm220_vm4, %v180_v1, %v210_v8 }
 0x19b   : > { %v213_v12 = vpop.permute.xlu1 %212  ;;  %v201_v16 = vpop.permute.xlu0 %200 }
 0x19c   : > { %v215_v13 = vsel %vm190_vm2, %v210_v8, %v213_v12  ;;  %v224_v21 = vsel %vm223_vm5, %v201_v16, %v193_v10  ;;  %v222_v29 = vsel %vm5393_vm7, %v213_v12, %v221_v20 }
 0x19d   : > { %v216_v17 = vsel %vm199_vm3, %v180_v1, %v215_v13  ;;  %v243_v35 = vrot.slane %v222_v29, 3  ;;  %v3614_v13 = vld [vmem:[#allocation3 + $0x158] ss:$8 sps:$4 sm:$0xff]  }
 0x19e   : > { %v228_v22 = vrot.slane %v216_v17, 7  ;;  %v3616_v17 = vld [vmem:[#allocation3 + $0x178] ss:$8 sps:$4 sm:$0xff]  }
 0x19f   : > { %v196_v15 = vpop.permute.xlu1 %195 }
 0x1a0   : > { %v198_v18 = vsel %vm190_vm2, %v193_v10, %v196_v15 }
 0x1a1   : > { %v203_v23 = vsel %vm199_vm3, %v201_v16, %v198_v18  ;;  %v3617_v18 = vld [vmem:[#allocation3 + $0x188] ss:$8 sps:$4 sm:$0xff]  }
 0x1a3   : > { %v206_v24 = vpop.permute.xlu1 %205 }
 0x1a4   : > { %v208_v25 = vsel %vm204_vm6, %v206_v24, %v203_v23  ;;  %v217_v26 = vsel %vm190_vm2, %v201_v16, %v206_v24  ;;  %v219_v27 = vsel %vm5393_vm7, %v206_v24, %v201_v16  ;;  %v225_v28 = vsel %vm220_vm4, %v206_v24, %v224_v21  ;;  %v3615_v16 = vld [vmem:[#allocation3 + $0x168] ss:$8 sps:$4 sm:$0xff]  }
 0x1a5   : > { %v231_v30 = vrot.slane %v217_v26, 6  ;;  %v249_v31 = vsel %vm248_vm8, %v208_v25, %v228_v22  ;;  %v226_v32 = vsel %vm5393_vm7, %v196_v15, %v225_v28  ;;  %v240_v33 = vrot.slane %v219_v27, 4 }
 0x1a6   : > { %v246_v39 = vrot.slane %v226_v32, 2  ;;  %vm559_vm8 = vcmask 195584   ;;  %vm1110_vm7 = vcmp.eq.s32.totalorder %v3957_v9, 13 }
 0x1a7   : > { %v251_v34 = vsel %vm250_vm9, %v249_v31, %v231_v30  ;;  %vm607_vm9 = vcmask 261120  }
 0x1a8   : > { %v253_v36 = vsel %vm252_vm10, %v251_v34, %v237_v19  ;;  %v3618_v34 = vld [vmem:[#allocation3 + $0x8] ss:$8 sps:$4 sm:$0xff]   ;;  %vm835_vm10 = vcmask 392192  }
 0x1a9   : > { %v255_v40 = vsel %vm5392_vm11, %v253_v36, %v240_v33 }
 0x1aa   : > { %v257_v41 = vsel %vm256_vm12, %v255_v40, %v243_v35  ;;  %vm891_vm12 = vcmask 130048  }
 0x1ab   : > { %v259_v42 = vsel %vm258_vm13, %v257_v41, %v246_v39  ;;  %vm961_vm13 = vcmask 1047680  }
 0x1ac   : > { %v261_v44 = vpack.c.bf16 %v259_v42, %v259_v42 }
 0x1ae   : > { %v269_v45 = vand.u32 %v267_v43, %v261_v44 }
 0x1b0   : > { %3055 = vmatpush3.bf16.msra.mxu0 %v269_v45  ;;  %v3619_v45 = vld [vmem:[#allocation3 + $0x198] ss:$8 sps:$4 sm:$0xff]  }
 0x1b1   : > { %3072 = vmatprep.subr.bf16.mxu0 %v3817_v6 }
 0x1b3   : > { %3057 = vmatmul.mubr.msk.bf16.vlgmr.msra.gmra.mrb[0].mxu0 %vm262_vm14, %v260_v46  ;;  %v3620_v46 = vld [vmem:[#allocation3 + $0x1b8] ss:$8 sps:$4 sm:$0xff]   ;;  %vm1161_vm14 = vcmask 785408  }
 0x1b4   : > { %3080 = vmatprep.mubr.msk.bf16.mxu0 %vm3822_vm1, %v3817_v6  ;;  %3073 = vmatpush3.bf16.msra.mxu0 %v3607_v55 }
 0x1b5   : > { %3074 = vmatprep.subr.bf16.mxu0 %v3817_v6 }
 0x1b8   : > { %3075 = vmatpush3.bf16.msra.mxu0 %v3609_v57 }
 0x1b9   : > { %3076 = vmatprep.subr.bf16.mxu0 %v3817_v6 }
 0x1bc   : > { %3077 = vmatpush3.bf16.msra.mxu0 %v3611_v59 }
 0x1bd   : > { %3078 = vmatprep.subr.bf16.mxu0 %v3817_v6 }
 0x1c0   : > { %3079 = vmatpush3.bf16.msra.mxu0 %v3613_v61 }
 0x1c1   : > { %3096 = vmatprep.subr.bf16.mxu0 %v3817_v6 }
 0x286   : > { %v305_v47 = vpop.f32.mrb[0].mxu0 }
 0x287   : > { %v3058_v48 = vpop.f32.mrb[1].mxu0  ;;  %v312_v49 = vsel %vm311_vm15, %v305_v47, 0.0  ;;  %v317_v50 = vmul.f32 %v305_v47, %v305_v47 }
 0x288   : > { %313 = vadd.xlane.f32.xlu0 %v312_v49  ;;  %v308_v51 = vpop.f32.mrb[2].mxu0  ;;  %v3622_v48 = vld [vmem:[#allocation3 + $0x1c8] ss:$8 sps:$4 sm:$0xff]  }
 0x289   : > { %v3059_v52 = vpop.f32.mrb[3].mxu0  ;;  %v318_v53 = vsel %vm311_vm15, %v317_v50, 0.0 }
 0x28a   : > { %319 = vadd.xlane.f32.xlu1 %v318_v53 }
 0x315   : > { %v314_v62 = vpop.xlane.xlu0 %313 }
 0x316   : > { %v316_v63 = vmul.f32 0.015625, %v314_v62 }
 0x317   : > { %v320_v0 = vpop.xlane.xlu1 %319 }
 0x318   : > { %v322_v1 = vmul.f32 %v316_v63, %v316_v63  ;;  %v321_v2 = vmul.f32 0.015625, %v320_v0  ;;  %v325_v7 = vsub.f32 %v305_v47, %v316_v63  ;;  %v3621_v47 = vld [vmem:[#allocation3 + $0x1a8] ss:$8 sps:$4 sm:$0xff]  }
 0x31a   : > { %v323_v3 = vsub.f32 %v321_v2, %v322_v1 }
 0x31c   : > { %v324_v4 = vmax.f32 %v323_v3, 0.0 }
 0x31e   : > { %v326_v5 = vadd.f32 1e-05, %v324_v4 }
 0x320   : > { %3661 = vrsqrt.f32 %v326_v5 }
 0x32a   : > { %v3662_v8 = vpop.eup %3661 }
 0x32b   : > { %v328_v10 = vmul.f32 %v3662_v8, %v325_v7 }
 0x32d   : > { %v329_v12 = vmax.f32 %v328_v10, 0.0 }
 0x32f   : > { %v330_v15 = vpack.c.bf16 %v329_v12, %v329_v12  ;;  %v3623_v12 = vld [vmem:[#allocation3 + $0x1d8] ss:$8 sps:$4 sm:$0xff]  }
 0x331   : > { %3069 = vmatmul.mubr.msk.bf16.vlgmr.msra.gmra.mrb[0].mxu1 %vm311_vm15, %v330_v15  ;;  %3081 = vmatmul.mubr.msk.bf16.vlgmr.msra.gmra.mrb[4].mxu0 %vm311_vm15, %v330_v15 }
 0x332   : > { %3085 = vmatpush3.bf16.msra.mxu1 %v3614_v13  ;;  %3092 = vmatprep.mubr.msk.bf16.mxu1 %vm3822_vm1, %v3817_v6 }
 0x333   : > { %3086 = vmatprep.subr.bf16.mxu1 %v3817_v6  ;;  %3100 = vmatprep.mubr.msk.bf16.mxu0 %vm3822_vm1, %v3817_v6 }
 0x336   : > { %3087 = vmatpush3.bf16.msra.mxu1 %v3615_v16  ;;  %v3625_v16 = vld [vmem:[#allocation3 + $0x18] ss:$8 sps:$4 sm:$0xff]  }
 0x337   : > { %3088 = vmatprep.subr.bf16.mxu1 %v3817_v6 }
 0x33a   : > { %3089 = vmatpush3.bf16.msra.mxu1 %v3616_v17 }
 0x33b   : > { %3090 = vmatprep.subr.bf16.mxu1 %v3817_v6 }
 0x33e   : > { %3091 = vmatpush3.bf16.msra.mxu1 %v3617_v18 }
 0x33f   : > { %3112 = vmatprep.subr.bf16.mxu1 %v3817_v6 }
 0x341   : > { %3093 = vmatmul.mubr.msk.bf16.vlgmr.msra.gmra.mrb[4].mxu1 %vm311_vm15, %v330_v15  ;;  %v3624_v15 = vld [vmem:[#allocation3 + $0x1e8] ss:$8 sps:$4 sm:$0xff]  }
 0x342   : > { %3116 = vmatprep.mubr.msk.bf16.mxu1 %vm3822_vm1, %v3817_v6  ;;  %3113 = vmatpush3.bf16.msra.mxu1 %v3620_v46 }
 0x343   : > { %3114 = vmatprep.subr.bf16.mxu1 %v3817_v6 }
 0x346   : > { %3115 = vmatpush3.bf16.msra.mxu1 %v3622_v48 }
 0x404   : > { %v400_v19 = vpop.f32.mrb[0].mxu1  ;;  %v472_v20 = vpop.f32.mrb[4].mxu0 }
 0x405   : > { %v552_v21 = vpack.c.bf16 %v472_v20, %v400_v19  ;;  %v3070_v22 = vpop.f32.mrb[1].mxu1  ;;  %v3082_v23 = vpop.f32.mrb[5].mxu0 }
 0x406   : > { %v403_v24 = vpop.f32.mrb[2].mxu1  ;;  %v475_v25 = vpop.f32.mrb[6].mxu0 }
 0x407   : > { %v3071_v26 = vpop.f32.mrb[3].mxu1  ;;  %v3083_v27 = vpop.f32.mrb[7].mxu0  ;;  %3097 = vmatpush3.bf16.msra.mxu0 %v552_v21 }
 0x408   : > { %3098 = vmatprep.subr.bf16.mxu0 %v3817_v6 }
 0x414   : > { %v544_v28 = vpop.f32.mrb[4].mxu1 }
 0x415   : > { %v553_v29 = vpack.c.bf16 %v544_v28, %v544_v28  ;;  %v3094_v30 = vpop.f32.mrb[5].mxu1 }
 0x416   : > { %v547_v31 = vpop.f32.mrb[6].mxu1 }
 0x417   : > { %v564_v32 = vsel %vm5392_vm11, %v553_v29, 0  ;;  %v3095_v33 = vpop.f32.mrb[7].mxu1  ;;  %vm1099_vm11 = vcmp.eq.s32.totalorder %v3957_v9, 14 }
 0x418   : > { %3099 = vmatpush3.bf16.msra.mxu0 %v564_v32  ;;  %v3626_v32 = vld [vmem:[#allocation3 + $0x28] ss:$8 sps:$4 sm:$0xff]  }
 0x419   : > { %3104 = vmatprep.subr.bf16.mxu0 %v3817_v6 }
 0x41b   : > { %3101 = vmatmul.mubr.msk.bf16.vlgmr.msra.gmra.mrb[8].mxu0 %vm559_vm8, %v3618_v34  ;;  %vm1092_vm8 = vcmp.eq.s32.totalorder %v3957_v9, 15 }
 0x41c   : > { %3108 = vmatprep.mubr.msk.bf16.mxu0 %vm3822_vm1, %v3817_v6  ;;  %3105 = vmatpush3.bf16.msra.mxu0 %v3619_v45 }
 0x41d   : > { %3106 = vmatprep.subr.bf16.mxu0 %v3817_v6 }
 0x420   : > { %3107 = vmatpush3.bf16.msra.mxu0 %v3621_v47 }
 0x421   : > { %3120 = vmatprep.subr.bf16.mxu0 %v3817_v6 }
 0x4ee   : > { %v600_v35 = vpop.f32.mrb[8].mxu0 }
 0x4ef   : > { %v3102_v36 = vpop.f32.mrb[9].mxu0  ;;  %v608_v37 = vsel %vm607_vm9, %v600_v35, 0.0  ;;  %v617_v38 = vmul.f32 %v600_v35, %v600_v35 }
 0x4f0   : > { %609 = vadd.xlane.f32.xlu0 %v608_v37  ;;  %v603_v39 = vpop.f32.mrb[10].mxu0 }
 0x4f1   : > { %v3103_v40 = vpop.f32.mrb[11].mxu0  ;;  %v619_v41 = vsel %vm607_vm9, %v617_v38, 0.0  ;;  %v611_v42 = vsel %vm607_vm9, %v603_v39, 0.0  ;;  %v618_v43 = vmul.f32 %v603_v39, %v603_v39 }
 0x4f2   : > { %620 = vadd.xlane.f32.xlu1 %v619_v41 }
 0x4f3   : > { %v622_v44 = vsel %vm607_vm9, %v618_v43, 0.0 }
 0x4f4   : > { %612 = vadd.xlane.f32.xlu0 %v611_v42 }
 0x4f8   : > { %623 = vadd.xlane.f32.xlu0 %v622_v44 }
 0x57d   : > { %v610_v49 = vpop.xlane.xlu0 %609 }
 0x57e   : > { %v615_v50 = vmul.f32 0.03125, %v610_v49 }
 0x57f   : > { %v621_v51 = vpop.xlane.xlu1 %620 }
 0x580   : > { %v627_v52 = vmul.f32 %v615_v50, %v615_v50  ;;  %v625_v53 = vmul.f32 0.03125, %v621_v51  ;;  %v633_v2 = vsub.f32 %v600_v35, %v615_v50 }
 0x581   : > { %v613_v54 = vpop.xlane.xlu0 %612 }
 0x582   : > { %v629_v55 = vsub.f32 %v625_v53, %v627_v52  ;;  %v616_v56 = vmul.f32 0.03125, %v613_v54 }
 0x584   : > { %v631_v57 = vmax.f32 %v629_v55, 0.0  ;;  %v628_v60 = vmul.f32 %v616_v56, %v616_v56  ;;  %v634_v3 = vsub.f32 %v603_v39, %v616_v56 }
 0x585   : > { %v624_v58 = vpop.xlane.xlu0 %623 }
 0x586   : > { %v635_v59 = vadd.f32 1e-05, %v631_v57  ;;  %v626_v61 = vmul.f32 0.03125, %v624_v58 }
 0x588   : > { %v630_v62 = vsub.f32 %v626_v61, %v628_v60  ;;  %3663 = vrsqrt.f32 %v635_v59 }
 0x58a   : > { %v632_v63 = vmax.f32 %v630_v62, 0.0 }
 0x58c   : > { %v636_v0 = vadd.f32 1e-05, %v632_v63 }
 0x58e   : > { %3665 = vrsqrt.f32 %v636_v0 }
 0x592   : > { %v3664_v1 = vpop.eup %3663 }
 0x593   : > { %v639_v4 = vmul.f32 %v3664_v1, %v633_v2 }
 0x595   : > { %v641_v8 = vmax.f32 %v639_v4, 0.0 }
 0x598   : > { %v3666_v5 = vpop.eup %3665 }
 0x599   : > { %v640_v7 = vmul.f32 %v3666_v5, %v634_v3 }
 0x59b   : > { %v642_v10 = vmax.f32 %v640_v7, 0.0 }
 0x59d   : > { %v643_v13 = vpack.c.bf16 %v642_v10, %v641_v8 }
 0x59f   : > { %3109 = vmatmul.mubr.msk.bf16.vlgmr.msra.gmra.mrb[12].mxu0 %vm607_vm9, %v643_v13  ;;  %3117 = vmatmul.mubr.msk.bf16.vlgmr.msra.gmra.mrb[8].mxu1 %vm607_vm9, %v643_v13 }
 0x5a0   : > { %3121 = vmatpush3.bf16.msra.mxu0 %v3623_v12  ;;  %3124 = vmatprep.mubr.msk.bf16.mxu0 %vm3822_vm1, %v3817_v6 }
 0x5a1   : > { %3122 = vmatprep.subr.bf16.mxu0 %v3817_v6  ;;  %3134 = vmatprep.mubr.msk.bf16.mxu1 %vm835_vm10, %v3625_v16 }
 0x5a4   : > { %3123 = vmatpush3.bf16.msra.mxu0 %v3624_v15 }
 0x5a7   : > { %3125 = vmatmul.mubr.msk.bf16.vlgmr.msra.gmra.mrb[16].mxu0 %vm607_vm9, %v643_v13 }
 0x672   : > { %v697_v17 = vpop.f32.mrb[12].mxu0  ;;  %v754_v18 = vpop.f32.mrb[8].mxu1 }
 0x673   : > { %v3110_v19 = vpop.f32.mrb[13].mxu0  ;;  %v3118_v20 = vpop.f32.mrb[9].mxu1 }
 0x674   : > { %v700_v21 = vpop.f32.mrb[14].mxu0  ;;  %v757_v22 = vpop.f32.mrb[10].mxu1 }
 0x675   : > { %v822_v23 = vpack.c.bf16 %v700_v21, %v697_v17  ;;  %v823_v24 = vpack.c.bf16 %v757_v22, %v754_v18  ;;  %v3111_v25 = vpop.f32.mrb[15].mxu0  ;;  %v3119_v26 = vpop.f32.mrb[11].mxu1 }
 0x677   : > { %3128 = vmatprep.subr.bf16.mxu1 %v822_v23 }
 0x678   : > { %3129 = vmatpush3.bf16.msra.mxu1 %v822_v23 }
 0x679   : > { %3130 = vmatprep.subr.bf16.mxu1 %v823_v24 }
 0x67a   : > { %v811_v27 = vpop.f32.mrb[16].mxu0 }
 0x67b   : > { %v3126_v28 = vpop.f32.mrb[17].mxu0 }
 0x67c   : > { %v814_v29 = vpop.f32.mrb[18].mxu0  ;;  %3131 = vmatpush3.bf16.msra.mxu1 %v823_v24 }
 0x67d   : > { %v824_v30 = vpack.c.bf16 %v814_v29, %v811_v27  ;;  %v3127_v31 = vpop.f32.mrb[19].mxu0 }
 0x67f   : > { %3132 = vmatprep.subr.bf16.mxu1 %v824_v30 }
 0x680   : > { %3133 = vmatpush3.bf16.msra.mxu1 %v824_v30 }
 0x683   : > { %3135 = vmatmul.mubr.msk.bf16.vlgmr.msra.gmra.mrb[12].mxu1 %vm835_vm10, %v3626_v32 }
 0x756   : > { %v4045_v33 = vpop.f32.mrb[12].mxu1 }
 0x757   : > { %v4047_v34 = vpop.f32.mrb[13].mxu1  ;;  %v898_v35 = vsel %vm891_vm12, %v4045_v33, 0.0  ;;  %v911_v44 = vmul.f32 %v4045_v33, %v4045_v33 }
 0x758   : > { %899 = vadd.xlane.f32.xlu1 %v898_v35  ;;  %v4051_v36 = vpop.f32.mrb[14].mxu1  ;;  %v892_v39 = vsel %vm891_vm12, %v4047_v34, 0.0  ;;  %v909_v40 = vmul.f32 %v4047_v34, %v4047_v34 }
 0x759   : > { %v879_v37 = vpop.f32.mrb[15].mxu1  ;;  %v901_v38 = vsel %vm891_vm12, %v4051_v36, 0.0  ;;  %v912_v46 = vmul.f32 %v4051_v36, %v4051_v36  ;;  %v919_v47 = vsel %vm891_vm12, %v911_v44, 0.0 }
 0x75a   : > { %902 = vadd.xlane.f32.xlu0 %v901_v38  ;;  %v895_v41 = vsel %vm891_vm12, %v879_v37, 0.0  ;;  %v910_v42 = vmul.f32 %v879_v37, %v879_v37  ;;  %v913_v43 = vsel %vm891_vm12, %v909_v40, 0.0 }
 0x75b   : > { %v922_v48 = vsel %vm891_vm12, %v912_v46, 0.0 }
 0x75c   : > { %893 = vadd.xlane.f32.xlu1 %v892_v39  ;;  %v916_v45 = vsel %vm891_vm12, %v910_v42, 0.0 }
 0x75e   : > { %896 = vadd.xlane.f32.xlu0 %v895_v41 }
 0x760   : > { %914 = vadd.xlane.f32.xlu1 %v913_v43 }
 0x762   : > { %917 = vadd.xlane.f32.xlu0 %v916_v45 }
 0x764   : > { %920 = vadd.xlane.f32.xlu1 %v919_v47 }
 0x766   : > { %923 = vadd.xlane.f32.xlu0 %v922_v48 }
 0x7e5   : > { %v900_v49 = vpop.xlane.xlu1 %899 }
 0x7e6   : > { %v907_v56 = vmul.f32 0.0625, %v900_v49 }
 0x7e7   : > { %v903_v50 = vpop.xlane.xlu0 %902 }
 0x7e8   : > { %v908_v59 = vmul.f32 0.0625, %v903_v50  ;;  %v931_v1 = vmul.f32 %v907_v56, %v907_v56  ;;  %v943_v26 = vsub.f32 %v4045_v33, %v907_v56 }
 0x7e9   : > { %v894_v51 = vpop.xlane.xlu1 %893 }
 0x7ea   : > { %v905_v52 = vmul.f32 0.0625, %v894_v51  ;;  %v932_v5 = vmul.f32 %v908_v59, %v908_v59  ;;  %v944_v29 = vsub.f32 %v4051_v36, %v908_v59 }
 0x7eb   : > { %v897_v53 = vpop.xlane.xlu0 %896 }
 0x7ec   : > { %v906_v54 = vmul.f32 0.0625, %v897_v53  ;;  %v929_v57 = vmul.f32 %v905_v52, %v905_v52  ;;  %v941_v21 = vsub.f32 %v4047_v34, %v905_v52 }
 0x7ed   : > { %v915_v55 = vpop.xlane.xlu1 %914 }
 0x7ee   : > { %v925_v58 = vmul.f32 0.0625, %v915_v55  ;;  %v930_v61 = vmul.f32 %v906_v54, %v906_v54  ;;  %v942_v23 = vsub.f32 %v879_v37, %v906_v54 }
 0x7ef   : > { %v918_v60 = vpop.xlane.xlu0 %917 }
 0x7f0   : > { %v933_v62 = vsub.f32 %v925_v58, %v929_v57  ;;  %v926_v63 = vmul.f32 0.0625, %v918_v60 }
 0x7f1   : > { %v921_v0 = vpop.xlane.xlu1 %920 }
 0x7f2   : > { %v937_v2 = vmax.f32 %v933_v62, 0.0  ;;  %v934_v3 = vsub.f32 %v926_v63, %v930_v61  ;;  %v927_v4 = vmul.f32 0.0625, %v921_v0  ;;  %v3826_v62 = vmov 0   ;;  %v3627_v0 = vld [vmem:[#allocation3 + $0x3c] ss:$8 sps:$4 sm:$0xff]  }
 0x7f3   : > { %v924_v7 = vpop.xlane.xlu0 %923  ;;  %1168 = vmatprep.subr.bf16.mxu0 %v3826_v62  ;;  %1475 = vmatprep.subr.bf16.mxu1 %v3826_v62 }
 0x7f4   : > { %v945_v8 = vadd.f32 1e-05, %v937_v2  ;;  %v938_v10 = vmax.f32 %v934_v3, 0.0  ;;  %v935_v12 = vsub.f32 %v927_v4, %v931_v1  ;;  %v928_v13 = vmul.f32 0.0625, %v924_v7  ;;  %3605 = vset.pattern.permute.xlu0 %v3826_v62  ;;  %2941 = vmatprep.mubr.msk.bf16.mxu0 %vm1161_vm14, %v3627_v0 }
 0x7f6   : > { %3667 = vrsqrt.f32 %v945_v8  ;;  %v946_v15 = vadd.f32 1e-05, %v938_v10  ;;  %v939_v16 = vmax.f32 %v935_v12, 0.0  ;;  %v936_v17 = vsub.f32 %v928_v13, %v932_v5 }
 0x7f8   : > { %3669 = vrsqrt.f32 %v946_v15  ;;  %v947_v18 = vadd.f32 1e-05, %v939_v16  ;;  %v940_v19 = vmax.f32 %v936_v17, 0.0 }
 0x7fa   : > { %3671 = vrsqrt.f32 %v947_v18  ;;  %v948_v20 = vadd.f32 1e-05, %v940_v19 }
 0x7fc   : > { %3673 = vrsqrt.f32 %v948_v20 }
 0x800   : > { %v3668_v22 = vpop.eup %3667 }
 0x801   : > { %v953_v24 = vmul.f32 %v3668_v22, %v941_v21 }
 0x802   : > { %v3670_v25 = vpop.eup %3669 }
 0x803   : > { %v954_v27 = vmul.f32 %v3670_v25, %v942_v23  ;;  %v4071_v30 = vmax.f32 %v953_v24, 0.0 }
 0x804   : > { %v3672_v28 = vpop.eup %3671 }
 0x805   : > { %v4073_v31 = vmax.f32 %v954_v27, 0.0  ;;  %v955_v32 = vmul.f32 %v3672_v28, %v943_v26 }
 0x806   : > { %v3674_v35 = vpop.eup %3673 }
 0x807   : > { %v956_v38 = vmul.f32 %v3674_v35, %v944_v29  ;;  %v3285_v34 = vpack.i.bf16 %v4073_v31, %v4071_v30  ;;  %v4077_v39 = vmax.f32 %v955_v32, 0.0 }
 0x809   : > { %v4079_v37 = vmax.f32 %v956_v38, 0.0  ;;  %3286 = vrot.lane.b32.xlu1 %v3285_v34, %s3824_s6 }
 0x80b   : > { %v3290_v33 = vpack.i.bf16 %v4079_v37, %v4077_v39 }
 0x80d   : > { %3291 = vrot.lane.b32.xlu0 %v3290_v33, %s3824_s6 }
 0x87b   : > { %v3287_v36 = vpop.permute.xlu1 %3286 }
 0x87c   : > { %v3289_v40 = vunpack.i.h.bf16 %v3287_v36  ;;  %v3288_v41 = vunpack.i.l.bf16 %v3287_v36 }
 0x87e   : > { %v964_v42 = vsel %vm961_vm13, %v3288_v41, %v4071_v30  ;;  %v967_v43 = vsel %vm961_vm13, %v3289_v40, %v4073_v31 }
 0x87f   : > { %v3292_v44 = vpop.permute.xlu0 %3291  ;;  %v3295_v45 = vpack.i.bf16 %v967_v43, %v964_v42 }
 0x880   : > { %v3294_v46 = vunpack.i.h.bf16 %v3292_v44  ;;  %v3293_v47 = vunpack.i.l.bf16 %v3292_v44 }
 0x881   : > { %3296 = vrot.lane.b32.xlu1 %v3295_v45, %s3824_s6 }
 0x882   : > { %v970_v48 = vsel %vm961_vm13, %v3293_v47, %v4077_v39  ;;  %v973_v49 = vsel %vm961_vm13, %v3294_v46, %v4079_v37 }
 0x883   : > { %v3300_v50 = vpack.i.bf16 %v973_v49, %v970_v48 }
 0x885   : > { %3301 = vrot.lane.b32.xlu1 %v3300_v50, %s3824_s6 }
 0x8f3   : > { %v3297_v51 = vpop.permute.xlu1 %3296 }
 0x8f4   : > { %v3299_v53 = vunpack.i.h.bf16 %v3297_v51  ;;  %v3298_v54 = vunpack.i.l.bf16 %v3297_v51 }
 0x8f6   : > { %v983_v60 = vsel %vm961_vm13, %v3299_v53, %v4073_v31  ;;  %v982_v61 = vsel %vm961_vm13, %v3298_v54, %v4071_v30 }
 0x8f7   : > { %v3302_v52 = vpop.permute.xlu1 %3301  ;;  %v3320_v63 = vpack.i.bf16 %v983_v60, %v982_v61 }
 0x8f8   : > { %v3304_v55 = vunpack.i.h.bf16 %v3302_v52  ;;  %v3303_v56 = vunpack.i.l.bf16 %v3302_v52 }
 0x8fa   : > { %v985_v57 = vsel %vm961_vm13, %v3304_v55, %v4079_v37  ;;  %v984_v58 = vsel %vm961_vm13, %v3303_v56, %v4077_v39 }
 0x8fb   : > { %v3310_v59 = vpack.i.bf16 %v985_v57, %v984_v58 }
 0x8fd   : > { %3311 = vrot.lane.b32.xlu1 %v3310_v59, %s3825_s7  ;;  %3306 = vrot.lane.b32.xlu0 %v3310_v59, %s3815_s25 }
 0x901   : > { %3321 = vrot.lane.b32.xlu1 %v3320_v63, %s3825_s7  ;;  %3316 = vrot.lane.b32.xlu0 %v3320_v63, %s3815_s25 }
 0x905   : > { %3336 = vrot.lane.b32.xlu1 %v3320_v63, %s3827_s8  ;;  %3326 = vrot.lane.b32.xlu0 %v3320_v63, %s3818_s29 }
 0x909   : > { %3341 = vrot.lane.b32.xlu1 %v3310_v59, %s3827_s8  ;;  %3331 = vrot.lane.b32.xlu0 %v3310_v59, %s3818_s29 }
 0x90d   : > { %3356 = vrot.lane.b32.xlu1 %v3320_v63, %s3828_s9  ;;  %3346 = vrot.lane.b32.xlu0 %v3320_v63, %s3816_s27 }
 0x911   : > { %3361 = vrot.lane.b32.xlu1 %v3310_v59, %s3828_s9  ;;  %3351 = vrot.lane.b32.xlu0 %v3310_v59, %s3816_s27 }
 0x96f   : > { %v4119_v1 = vpop.permute.xlu1 %3311  ;;  %v4121_v2 = vpop.permute.xlu0 %3306 }
 0x970   : > { %v3314_v12 = vunpack.i.h.bf16 %v4119_v1  ;;  %v3313_v13 = vunpack.i.l.bf16 %v4119_v1  ;;  %v3309_v21 = vunpack.i.h.bf16 %v4121_v2  ;;  %v3308_v22 = vunpack.i.l.bf16 %v4121_v2 }
 0x972   : > { %v1019_v36 = vsel %vm190_vm2, %v3309_v21, %v3314_v12  ;;  %v1018_v40 = vsel %vm190_vm2, %v3308_v22, %v3313_v13 }
 0x973   : > { %v4123_v3 = vpop.permute.xlu1 %3321  ;;  %v4125_v4 = vpop.permute.xlu0 %3316 }
 0x974   : > { %v3324_v5 = vunpack.i.h.bf16 %v4123_v3  ;;  %v3323_v7 = vunpack.i.l.bf16 %v4123_v3  ;;  %v3319_v8 = vunpack.i.h.bf16 %v4125_v4  ;;  %v3318_v10 = vunpack.i.l.bf16 %v4125_v4 }
 0x976   : > { %v1017_v23 = vsel %vm190_vm2, %v3319_v8, %v3324_v5  ;;  %v1016_v24 = vsel %vm190_vm2, %v3318_v10, %v3323_v7 }
 0x977   : > { %v3337_v15 = vpop.permute.xlu1 %3336  ;;  %v3327_v16 = vpop.permute.xlu0 %3326 }
 0x978   : > { %v4133_v17 = vunpack.i.h.bf16 %v3337_v15  ;;  %v4135_v18 = vunpack.i.l.bf16 %v3337_v15  ;;  %v4137_v19 = vunpack.i.h.bf16 %v3327_v16  ;;  %v4139_v20 = vunpack.i.l.bf16 %v3327_v16 }
 0x97a   : > { %v1034_v25 = vsel %vm199_vm3, %v4139_v20, %v1016_v24  ;;  %v1035_v26 = vsel %vm199_vm3, %v4137_v19, %v1017_v23 }
 0x97b   : > { %v3342_v27 = vpop.permute.xlu1 %3341  ;;  %v3332_v28 = vpop.permute.xlu0 %3331  ;;  %v1052_v29 = vsel %vm204_vm6, %v4135_v18, %v1034_v25  ;;  %v1053_v32 = vsel %vm204_vm6, %v4133_v17, %v1035_v26  ;;  %v1088_v26 = vsel %vm190_vm2, %v4139_v20, %v4135_v18 }
 0x97c   : > { %v4167_v35 = vunpack.i.h.bf16 %v3342_v27  ;;  %v4169_v38 = vunpack.i.l.bf16 %v3342_v27  ;;  %v4171_v34 = vunpack.i.h.bf16 %v3332_v28  ;;  %v4173_v33 = vunpack.i.l.bf16 %v3332_v28 }
 0x97d   : > { %v1129_v41 = vpack.c.bf16 %v1053_v32, %v1052_v29  ;;  %v1089_v27 = vsel %vm190_vm2, %v4137_v19, %v4133_v17 }
 0x97e   : > { %v1036_v42 = vsel %vm199_vm3, %v4173_v33, %v1018_v40  ;;  %v1037_v43 = vsel %vm199_vm3, %v4171_v34, %v1019_v36  ;;  %v1133_v28 = vpack.c.bf16 %v1089_v27, %v1088_v26  ;;  %v1090_v29 = vsel %vm190_vm2, %v4173_v33, %v4169_v38 }
 0x97f   : > { %1169 = vmatpush1.bf16.msra.mxu0 %v1129_v41  ;;  %v4193_v44 = vpop.permute.xlu1 %3356  ;;  %v3347_v45 = vpop.permute.xlu0 %3346  ;;  %v1054_v46 = vsel %vm204_vm6, %v4169_v38, %v1036_v42  ;;  %v1055_v47 = vsel %vm204_vm6, %v4167_v35, %v1037_v43  ;;  %v1091_v32 = vsel %vm190_vm2, %v4171_v34, %v4167_v35  ;;  %v1135_v40 = vpack.c.bf16 %v4073_v31, %v4071_v30 }
 0x980   : > { %v3359_v48 = vunpack.i.h.bf16 %v4193_v44  ;;  %v3358_v49 = vunpack.i.l.bf16 %v4193_v44  ;;  %v3349_v50 = vunpack.i.h.bf16 %v3347_v45  ;;  %v3348_v51 = vunpack.i.l.bf16 %v3347_v45  ;;  %1170 = vmatprep.subr.bf16.mxu0 %v3826_v62 }
 0x981   : > { %v1130_v52 = vpack.c.bf16 %v1055_v47, %v1054_v46  ;;  %v1134_v36 = vpack.c.bf16 %v1091_v32, %v1090_v29  ;;  %v1136_v41 = vpack.c.bf16 %v4079_v37, %v4077_v39  ;;  %v1095_v42 = vsel %vm1092_vm8, %v4135_v18, %v4139_v20 }
 0x982   : > { %v1081_v53 = vsel %vm190_vm2, %v3349_v50, %v3359_v48  ;;  %v1080_v54 = vsel %vm190_vm2, %v3348_v51, %v3358_v49  ;;  %v1096_v43 = vsel %vm1092_vm8, %v4133_v17, %v4137_v19  ;;  %v1097_v45 = vsel %vm1092_vm8, %v4169_v38, %v4173_v33 }
 0x983   : > { %1171 = vmatpush1.bf16.msra.mxu0 %v1130_v52  ;;  %v3362_v55 = vpop.permute.xlu1 %3361  ;;  %v3352_v56 = vpop.permute.xlu0 %3351  ;;  %v1084_v57 = vsel %vm199_vm3, %v4071_v30, %v1080_v54  ;;  %v1085_v58 = vsel %vm199_vm3, %v4073_v31, %v1081_v53  ;;  %v1137_v44 = vpack.c.bf16 %v1096_v43, %v1095_v42  ;;  %v1098_v46 = vsel %vm1092_vm8, %v4167_v35, %v4171_v34 }
 0x984   : > { %v3364_v59 = vunpack.i.h.bf16 %v3362_v55  ;;  %v3363_v60 = vunpack.i.l.bf16 %v3362_v55  ;;  %v3354_v61 = vunpack.i.h.bf16 %v3352_v56  ;;  %v3353_v63 = vunpack.i.l.bf16 %v3352_v56  ;;  %1172 = vmatprep.subr.bf16.mxu0 %v3826_v62 }
 0x985   : > { %v1131_v0 = vpack.c.bf16 %v1085_v58, %v1084_v57  ;;  %v1103_v47 = vsel %vm1099_vm11, %v4073_v31, %v3349_v50  ;;  %v1102_v52 = vsel %vm1099_vm11, %v4071_v30, %v3348_v51  ;;  %v1138_v53 = vpack.c.bf16 %v1098_v46, %v1097_v45 }
 0x986   : > { %v1083_v15 = vsel %vm190_vm2, %v3354_v61, %v3364_v59  ;;  %v1082_v16 = vsel %vm190_vm2, %v3353_v63, %v3363_v60  ;;  %v1106_v54 = vsel %vm1092_vm8, %v3358_v49, %v1102_v52  ;;  %v1107_v55 = vsel %vm1092_vm8, %v3359_v48, %v1103_v47 }
 0x987   : > { %1173 = vmatpush1.bf16.msra.mxu0 %v1131_v0  ;;  %v1086_v23 = vsel %vm199_vm3, %v4077_v39, %v1082_v16  ;;  %v1087_v24 = vsel %vm199_vm3, %v4079_v37, %v1083_v15  ;;  %v1105_v50 = vsel %vm1099_vm11, %v4079_v37, %v3354_v61  ;;  %v1104_v51 = vsel %vm1099_vm11, %v4077_v39, %v3353_v63 }
 0x988   : > { %1174 = vmatprep.subr.bf16.mxu0 %v3826_v62  ;;  %v1132_v25 = vpack.c.bf16 %v1087_v24, %v1086_v23  ;;  %v1113_v56 = vsel %vm1110_vm7, %v4139_v20, %v3318_v10  ;;  %v1114_v48 = vsel %vm1110_vm7, %v4137_v19, %v3319_v8  ;;  %v1139_v49 = vpack.c.bf16 %v1107_v55, %v1106_v54 }
 0x989   : > { %v1108_v57 = vsel %vm1092_vm8, %v3363_v60, %v1104_v51  ;;  %v1109_v58 = vsel %vm1092_vm8, %v3364_v59, %v1105_v50  ;;  %v1117_v10 = vsel %vm1099_vm11, %v4135_v18, %v1113_v56  ;;  %v1118_v4 = vsel %vm1099_vm11, %v4133_v17, %v1114_v48 }
 0x98a   : > { %v1115_v8 = vsel %vm1110_vm7, %v4173_v33, %v3308_v22  ;;  %v1116_v19 = vsel %vm1110_vm7, %v4171_v34, %v3309_v21  ;;  %v1140_v20 = vpack.c.bf16 %v1109_v58, %v1108_v57  ;;  %v1121_v17 = vsel %vm1092_vm8, %v3323_v7, %v1117_v10  ;;  %v3632_v34 = vld [vmem:[#allocation3 + $0x48] ss:$8 sps:$4 sm:$0xff]  }
 0x98b   : > { %1175 = vmatpush1.bf16.msra.mxu0 %v1132_v25  ;;  %v1122_v18 = vsel %vm1092_vm8, %v3324_v5, %v1118_v4  ;;  %v1119_v2 = vsel %vm1099_vm11, %v4169_v38, %v1115_v8  ;;  %v1120_v21 = vsel %vm1099_vm11, %v4167_v35, %v1116_v19  ;;  %v3629_v38 = vld [vmem:[#allocation3 + $0x38] ss:$8 sps:$4 sm:$0xff]   ;;  %v3630_v35 = vld [vmem:[#allocation3 + $0x4c] ss:$8 sps:$4 sm:$0xff]  }
 0x98c   : > { %1176 = vmatprep.subr.bf16.mxu0 %v3826_v62  ;;  %v1141_v22 = vpack.c.bf16 %v1122_v18, %v1121_v17  ;;  %v1123_v3 = vsel %vm1092_vm8, %v3313_v13, %v1119_v2  ;;  %v1124_v5 = vsel %vm1092_vm8, %v3314_v12, %v1120_v21 }
 0x98d   : > { %v1142_v7 = vpack.c.bf16 %v1124_v5, %v1123_v3 }
 0x98f   : > { %1177 = vmatpush1.bf16.msra.mxu0 %v1133_v28 }
 0x990   : > { %1178 = vmatprep.subr.bf16.mxu0 %v3826_v62 }
 0x993   : > { %1179 = vmatpush1.bf16.msra.mxu0 %v1134_v36 }
 0x994   : > { %1180 = vmatprep.subr.bf16.mxu0 %v3826_v62 }
 0x997   : > { %1181 = vmatpush1.bf16.msra.mxu0 %v1135_v40 }
 0x998   : > { %1182 = vmatprep.subr.bf16.mxu0 %v3826_v62 }
 0x99b   : > { %1183 = vmatpush1.bf16.msra.mxu0 %v1136_v41 }
 0x99c   : > { %1184 = vmatprep.subr.bf16.mxu0 %v3826_v62 }
 0x99f   : > { %1185 = vmatpush1.bf16.msra.mxu0 %v1137_v44 }
 0x9a0   : > { %1186 = vmatprep.subr.bf16.mxu0 %v3826_v62 }
 0x9a3   : > { %1187 = vmatpush1.bf16.msra.mxu0 %v1138_v53 }
 0x9a4   : > { %1188 = vmatprep.subr.bf16.mxu0 %v3826_v62 }
 0x9a7   : > { %1189 = vmatpush1.bf16.msra.mxu0 %v1139_v49 }
 0x9a8   : > { %1190 = vmatprep.subr.bf16.mxu0 %v3826_v62 }
 0x9ab   : > { %1191 = vmatpush1.bf16.msra.mxu0 %v1140_v20 }
 0x9ac   : > { %1192 = vmatprep.subr.bf16.mxu0 %v3826_v62 }
 0x9af   : > { %1193 = vmatpush1.bf16.msra.mxu0 %v1141_v22 }
 0x9b0   : > { %1194 = vmatprep.subr.bf16.mxu0 %v3826_v62 }
 0x9b3   : > { %1195 = vmatpush1.bf16.msra.mxu0 %v1142_v7 }
 0x9b4   : > { %1782 = vmatprep.subr.bf16.mxu0 %v3826_v62 }
 0x9b6   : > { %1201 = vmatmul.mubr.bf16.vlgmr.msra.gmra.mrb[20].mxu0 %v3629_v38 }
 0x9b7   : > { %2942 = vmatprep.mubr.msk.bf16.mxu0 %vm1161_vm14, %v3630_v35 }
 0x9be   : > { %1209 = vmatmul.mubr.bf16.gmra.mrb[24].mxu0 %v3632_v34 }
 0xa89   : > { %v4345_v13 = vpop.f32.mrb[20].mxu0 }
 0xa8a   : > { %v1204_v1 = vpop.f32.mrb[21].mxu0  ;;  %v1217_v12 = vsel %vm891_vm12, %v4345_v13, 0.0  ;;  %v1233_v33 = vmul.f32 %v4345_v13, %v4345_v13 }
 0xa8b   : > { %1218 = vadd.xlane.f32.xlu0 %v1217_v12  ;;  %v4351_v59 = vpop.f32.mrb[22].mxu0 }
 0xa8c   : > { %v1207_v60 = vpop.f32.mrb[23].mxu0  ;;  %v1220_v61 = vsel %vm891_vm12, %v4351_v59, 0.0  ;;  %v1237_v63 = vsel %vm891_vm12, %v1233_v33, 0.0  ;;  %v1234_v0 = vmul.f32 %v4351_v59, %v4351_v59 }
 0xa8d   : > { %1221 = vadd.xlane.f32.xlu1 %v1220_v61 }
 0xa8e   : > { %v1240_v23 = vsel %vm891_vm12, %v1234_v0, 0.0 }
 0xa8f   : > { %1238 = vadd.xlane.f32.xlu0 %v1237_v63 }
 0xa91   : > { %v4358_v15 = vpop.f32.mrb[24].mxu0 }
 0xa92   : > { %v1212_v16 = vpop.f32.mrb[25].mxu0  ;;  %v1223_v24 = vsel %vm891_vm12, %v4358_v15, 0.0  ;;  %v1235_v25 = vmul.f32 %v4358_v15, %v4358_v15 }
 0xa93   : > { %1241 = vadd.xlane.f32.xlu0 %v1240_v23  ;;  %1224 = vadd.xlane.f32.xlu1 %v1223_v24  ;;  %v1213_v26 = vpop.f32.mrb[26].mxu0 }
 0xa94   : > { %v1215_v27 = vpop.f32.mrb[27].mxu0  ;;  %v1243_v28 = vsel %vm891_vm12, %v1235_v25, 0.0  ;;  %v1226_v29 = vsel %vm891_vm12, %v1213_v26, 0.0  ;;  %v1236_v32 = vmul.f32 %v1213_v26, %v1213_v26 }
 0xa96   : > { %v1246_v36 = vsel %vm891_vm12, %v1236_v32, 0.0 }
 0xa97   : > { %1244 = vadd.xlane.f32.xlu1 %v1243_v28  ;;  %1227 = vadd.xlane.f32.xlu0 %v1226_v29 }
 0xa9b   : > { %1247 = vadd.xlane.f32.xlu0 %v1246_v36 }
 0xb18   : > { %v1219_v40 = vpop.xlane.xlu0 %1218 }
 0xb19   : > { %v1229_v41 = vmul.f32 0.0625, %v1219_v40 }
 0xb1a   : > { %v1222_v42 = vpop.xlane.xlu1 %1221 }
 0xb1b   : > { %v1253_v44 = vmul.f32 %v1229_v41, %v1229_v41  ;;  %v1230_v45 = vmul.f32 0.0625, %v1222_v42  ;;  %v1265_v35 = vsub.f32 %v4345_v13, %v1229_v41 }
 0xb1c   : > { %v1239_v43 = vpop.xlane.xlu0 %1238 }
 0xb1d   : > { %v1249_v46 = vmul.f32 0.0625, %v1239_v43  ;;  %v1254_v54 = vmul.f32 %v1230_v45, %v1230_v45  ;;  %v1266_v34 = vsub.f32 %v4351_v59, %v1230_v45 }
 0xb1f   : > { %v1257_v47 = vsub.f32 %v1249_v46, %v1253_v44 }
 0xb20   : > { %v1242_v52 = vpop.xlane.xlu0 %1241  ;;  %v1225_v53 = vpop.xlane.xlu1 %1224 }
 0xb21   : > { %v1261_v55 = vmax.f32 %v1257_v47, 0.0  ;;  %v1250_v50 = vmul.f32 0.0625, %v1242_v52  ;;  %v1231_v51 = vmul.f32 0.0625, %v1225_v53 }
 0xb23   : > { %v1269_v56 = vadd.f32 1e-05, %v1261_v55  ;;  %v1258_v48 = vsub.f32 %v1250_v50, %v1254_v54  ;;  %v1255_v49 = vmul.f32 %v1231_v51, %v1231_v51  ;;  %v1267_v0 = vsub.f32 %v4358_v15, %v1231_v51 }
 0xb24   : > { %v1245_v57 = vpop.xlane.xlu1 %1244  ;;  %v1228_v58 = vpop.xlane.xlu0 %1227 }
 0xb25   : > { %3675 = vrsqrt.f32 %v1269_v56  ;;  %v1262_v10 = vmax.f32 %v1258_v48, 0.0  ;;  %v1251_v4 = vmul.f32 0.0625, %v1245_v57  ;;  %v1232_v8 = vmul.f32 0.0625, %v1228_v58 }
 0xb27   : > { %v1270_v19 = vadd.f32 1e-05, %v1262_v10  ;;  %v1259_v20 = vsub.f32 %v1251_v4, %v1255_v49  ;;  %v1256_v2 = vmul.f32 %v1232_v8, %v1232_v8  ;;  %v1268_v24 = vsub.f32 %v1213_v26, %v1232_v8  ;;  %v3633_v10 = vld [vmem:[#allocation3 + $0x5c] ss:$8 sps:$4 sm:$0xff]  }
 0xb28   : > { %v1248_v17 = vpop.xlane.xlu0 %1247  ;;  %2947 = vmatprep.mubr.msk.bf16.mxu1 %vm1161_vm14, %v3633_v10 }
 0xb29   : > { %3677 = vrsqrt.f32 %v1270_v19  ;;  %v1263_v18 = vmax.f32 %v1259_v20, 0.0  ;;  %v1252_v21 = vmul.f32 0.0625, %v1248_v17 }
 0xb2b   : > { %v1271_v22 = vadd.f32 1e-05, %v1263_v18  ;;  %v1260_v3 = vsub.f32 %v1252_v21, %v1256_v2 }
 0xb2d   : > { %3679 = vrsqrt.f32 %v1271_v22  ;;  %v1264_v5 = vmax.f32 %v1260_v3, 0.0 }
 0xb2f   : > { %v3676_v7 = vpop.eup %3675  ;;  %v1272_v38 = vadd.f32 1e-05, %v1264_v5 }
 0xb30   : > { %v1277_v1 = vmul.f32 %v3676_v7, %v1265_v35 }
 0xb31   : > { %3681 = vrsqrt.f32 %v1272_v38 }
 0xb32   : > { %v4370_v60 = vmax.f32 %v1277_v1, 0.0 }
 0xb33   : > { %v3678_v12 = vpop.eup %3677 }
 0xb34   : > { %v1278_v33 = vmul.f32 %v3678_v12, %v1266_v34 }
 0xb36   : > { %v4372_v61 = vmax.f32 %v1278_v33, 0.0 }
 0xb37   : > { %v3680_v63 = vpop.eup %3679 }
 0xb38   : > { %v3365_v16 = vpack.i.bf16 %v4372_v61, %v4370_v60  ;;  %v1279_v23 = vmul.f32 %v3680_v63, %v1267_v0 }
 0xb3a   : > { %3366 = vrot.lane.b32.xlu1 %v3365_v16, %s3824_s6  ;;  %v4378_v59 = vmax.f32 %v1279_v23, 0.0 }
 0xb3b   : > { %v3682_v13 = vpop.eup %3681 }
 0xb3c   : > { %v1280_v25 = vmul.f32 %v3682_v13, %v1268_v24 }
 0xb3e   : > { %v4380_v27 = vmax.f32 %v1280_v25, 0.0 }
 0xb40   : > { %v3370_v28 = vpack.i.bf16 %v4380_v27, %v4378_v59 }
 0xb42   : > { %3371 = vrot.lane.b32.xlu0 %v3370_v28, %s3824_s6 }
 0xbac   : > { %v3367_v29 = vpop.permute.xlu1 %3366 }
 0xbad   : > { %v3369_v15 = vunpack.i.h.bf16 %v3367_v29  ;;  %v3368_v32 = vunpack.i.l.bf16 %v3367_v29 }
 0xbaf   : > { %v1287_v36 = vsel %vm961_vm13, %v3368_v32, %v4370_v60  ;;  %v1290_v26 = vsel %vm961_vm13, %v3369_v15, %v4372_v61 }
 0xbb0   : > { %v3375_v40 = vpack.i.bf16 %v1290_v26, %v1287_v36 }
 0xbb2   : > { %3376 = vrot.lane.b32.xlu1 %v3375_v40, %s3824_s6 }
 0xbb4   : > { %v3372_v41 = vpop.permute.xlu0 %3371 }
 0xbb5   : > { %v3374_v42 = vunpack.i.h.bf16 %v3372_v41  ;;  %v3373_v43 = vunpack.i.l.bf16 %v3372_v41 }
 0xbb7   : > { %v1293_v44 = vsel %vm961_vm13, %v3373_v43, %v4378_v59  ;;  %v1296_v45 = vsel %vm961_vm13, %v3374_v42, %v4380_v27 }
 0xbb8   : > { %v3380_v46 = vpack.i.bf16 %v1296_v45, %v1293_v44 }
 0xbba   : > { %3381 = vrot.lane.b32.xlu1 %v3380_v46, %s3824_s6 }
 0xc24   : > { %v3377_v47 = vpop.permute.xlu1 %3376 }
 0xc25   : > { %v3379_v52 = vunpack.i.h.bf16 %v3377_v47  ;;  %v3378_v53 = vunpack.i.l.bf16 %v3377_v47 }
 0xc27   : > { %v1306_v54 = vsel %vm961_vm13, %v3379_v52, %v4372_v61  ;;  %v1305_v55 = vsel %vm961_vm13, %v3378_v53, %v4370_v60 }
 0xc28   : > { %v3385_v50 = vpack.i.bf16 %v1306_v54, %v1305_v55 }
 0xc2a   : > { %3386 = vrot.lane.b32.xlu0 %v3385_v50, %s3815_s25  ;;  %3391 = vrot.lane.b32.xlu1 %v3385_v50, %s3825_s7 }
 0xc2c   : > { %v3382_v51 = vpop.permute.xlu1 %3381 }
 0xc2d   : > { %v3384_v56 = vunpack.i.h.bf16 %v3382_v51  ;;  %v3383_v48 = vunpack.i.l.bf16 %v3382_v51 }
 0xc2e   : > { %3396 = vrot.lane.b32.xlu0 %v3385_v50, %s3818_s29  ;;  %3401 = vrot.lane.b32.xlu1 %v3385_v50, %s3827_s8 }
 0xc2f   : > { %v1308_v49 = vsel %vm961_vm13, %v3384_v56, %v4380_v27  ;;  %v1307_v57 = vsel %vm961_vm13, %v3383_v48, %v4378_v59 }
 0xc30   : > { %v3410_v58 = vpack.i.bf16 %v1308_v49, %v1307_v57 }
 0xc32   : > { %3411 = vrot.lane.b32.xlu1 %v3410_v58, %s3825_s7  ;;  %3406 = vrot.lane.b32.xlu0 %v3410_v58, %s3815_s25 }
 0xc36   : > { %3426 = vrot.lane.b32.xlu1 %v3410_v58, %s3827_s8  ;;  %3416 = vrot.lane.b32.xlu0 %v3410_v58, %s3818_s29 }
 0xc3a   : > { %3431 = vrot.lane.b32.xlu1 %v3385_v50, %s3828_s9  ;;  %3421 = vrot.lane.b32.xlu0 %v3385_v50, %s3816_s27 }
 0xc3e   : > { %3441 = vrot.lane.b32.xlu1 %v3410_v58, %s3828_s9  ;;  %3436 = vrot.lane.b32.xlu0 %v3410_v58, %s3816_s27 }
 0xc9c   : > { %v4416_v4 = vpop.permute.xlu0 %3386  ;;  %v4418_v8 = vpop.permute.xlu1 %3391 }
 0xc9d   : > { %v3389_v19 = vunpack.i.h.bf16 %v4416_v4  ;;  %v3388_v20 = vunpack.i.l.bf16 %v4416_v4  ;;  %v3394_v17 = vunpack.i.h.bf16 %v4418_v8  ;;  %v3393_v18 = vunpack.i.l.bf16 %v4418_v8 }
 0xc9f   : > { %v1338_v38 = vsel %vm190_vm2, %v3389_v19, %v3394_v17  ;;  %v1337_v35 = vsel %vm190_vm2, %v3388_v20, %v3393_v18 }
 0xca0   : > { %v3397_v2 = vpop.permute.xlu0 %3396  ;;  %v3402_v21 = vpop.permute.xlu1 %3401 }
 0xca1   : > { %v4424_v22 = vunpack.i.h.bf16 %v3397_v2  ;;  %v4426_v3 = vunpack.i.l.bf16 %v3397_v2  ;;  %v4428_v5 = vunpack.i.h.bf16 %v3402_v21  ;;  %v4430_v7 = vunpack.i.l.bf16 %v3402_v21 }
 0xca3   : > { %v1353_v34 = vsel %vm199_vm3, %v4426_v3, %v1337_v35  ;;  %v1354_v1 = vsel %vm199_vm3, %v4424_v22, %v1338_v38 }
 0xca4   : > { %v4450_v12 = vpop.permute.xlu1 %3411  ;;  %v4452_v33 = vpop.permute.xlu0 %3406  ;;  %v1369_v63 = vsel %vm204_vm6, %v4430_v7, %v1353_v34  ;;  %v1370_v0 = vsel %vm204_vm6, %v4428_v5, %v1354_v1 }
 0xca5   : > { %v3414_v16 = vunpack.i.h.bf16 %v4450_v12  ;;  %v3413_v23 = vunpack.i.l.bf16 %v4450_v12  ;;  %v3409_v24 = vunpack.i.h.bf16 %v4452_v33  ;;  %v3408_v13 = vunpack.i.l.bf16 %v4452_v33 }
 0xca6   : > { %v1437_v25 = vpack.c.bf16 %v1370_v0, %v1369_v63 }
 0xca7   : > { %v1340_v40 = vsel %vm190_vm2, %v3409_v24, %v3414_v16  ;;  %v1339_v41 = vsel %vm190_vm2, %v3408_v13, %v3413_v23 }
 0xca8   : > { %1476 = vmatpush1.bf16.msra.mxu1 %v1437_v25  ;;  %v3427_v28 = vpop.permute.xlu1 %3426  ;;  %v3417_v29 = vpop.permute.xlu0 %3416 }
 0xca9   : > { %v4464_v15 = vunpack.i.h.bf16 %v3427_v28  ;;  %v4466_v32 = vunpack.i.l.bf16 %v3427_v28  ;;  %v4468_v36 = vunpack.i.h.bf16 %v3417_v29  ;;  %v4470_v26 = vunpack.i.l.bf16 %v3417_v29  ;;  %1477 = vmatprep.subr.bf16.mxu1 %v3826_v62 }
 0xcaa   : > { %v1405_v28 = vsel %vm190_vm2, %v4426_v3, %v4430_v7  ;;  %v1406_v29 = vsel %vm190_vm2, %v4424_v22, %v4428_v5 }
 0xcab   : > { %v1355_v42 = vsel %vm199_vm3, %v4470_v26, %v1339_v41  ;;  %v1356_v43 = vsel %vm199_vm3, %v4468_v36, %v1340_v40  ;;  %v1441_v40 = vpack.c.bf16 %v1406_v29, %v1405_v28  ;;  %v1407_v41 = vsel %vm190_vm2, %v4470_v26, %v4466_v32 }
 0xcac   : > { %v3432_v44 = vpop.permute.xlu1 %3431  ;;  %v3422_v45 = vpop.permute.xlu0 %3421  ;;  %v1371_v46 = vsel %vm204_vm6, %v4466_v32, %v1355_v42  ;;  %v1372_v47 = vsel %vm204_vm6, %v4464_v15, %v1356_v43  ;;  %v1408_v42 = vsel %vm190_vm2, %v4468_v36, %v4464_v15 }
 0xcad   : > { %v3434_v52 = vunpack.i.h.bf16 %v3432_v44  ;;  %v3433_v53 = vunpack.i.l.bf16 %v3432_v44  ;;  %v3424_v54 = vunpack.i.h.bf16 %v3422_v45  ;;  %v3423_v55 = vunpack.i.l.bf16 %v3422_v45 }
 0xcae   : > { %v1438_v50 = vpack.c.bf16 %v1372_v47, %v1371_v46  ;;  %v1442_v43 = vpack.c.bf16 %v1408_v42, %v1407_v41  ;;  %v1443_v44 = vpack.c.bf16 %v4372_v61, %v4370_v60  ;;  %v1444_v45 = vpack.c.bf16 %v4380_v27, %v4378_v59 }
 0xcaf   : > { %v1398_v51 = vsel %vm190_vm2, %v3424_v54, %v3434_v52  ;;  %v1397_v56 = vsel %vm190_vm2, %v3423_v55, %v3433_v53  ;;  %v1409_v46 = vsel %vm1092_vm8, %v4430_v7, %v4426_v3  ;;  %v1410_v47 = vsel %vm1092_vm8, %v4428_v5, %v4424_v22 }
 0xcb0   : > { %1478 = vmatpush1.bf16.msra.mxu1 %v1438_v50  ;;  %v3442_v48 = vpop.permute.xlu1 %3441  ;;  %v3437_v49 = vpop.permute.xlu0 %3436  ;;  %v1401_v57 = vsel %vm199_vm3, %v4370_v60, %v1397_v56  ;;  %v1402_v58 = vsel %vm199_vm3, %v4372_v61, %v1398_v51  ;;  %v1445_v50 = vpack.c.bf16 %v1410_v47, %v1409_v46  ;;  %v1411_v51 = vsel %vm1092_vm8, %v4466_v32, %v4470_v26 }
 0xcb1   : > { %v3444_v10 = vunpack.i.h.bf16 %v3442_v48  ;;  %v3443_v2 = vunpack.i.l.bf16 %v3442_v48  ;;  %v3439_v21 = vunpack.i.h.bf16 %v3437_v49  ;;  %v3438_v38 = vunpack.i.l.bf16 %v3437_v49  ;;  %1479 = vmatprep.subr.bf16.mxu1 %v3826_v62 }
 0xcb2   : > { %v1439_v35 = vpack.c.bf16 %v1402_v58, %v1401_v57  ;;  %v1412_v56 = vsel %vm1092_vm8, %v4464_v15, %v4468_v36  ;;  %v1414_v48 = vsel %vm1099_vm11, %v4372_v61, %v3424_v54  ;;  %v1413_v49 = vsel %vm1099_vm11, %v4370_v60, %v3423_v55 }
 0xcb3   : > { %v1400_v34 = vsel %vm190_vm2, %v3439_v21, %v3444_v10  ;;  %v1399_v1 = vsel %vm190_vm2, %v3438_v38, %v3443_v2  ;;  %v1446_v57 = vpack.c.bf16 %v1412_v56, %v1411_v51  ;;  %v1417_v58 = vsel %vm1092_vm8, %v3433_v53, %v1413_v49 }
 0xcb4   : > { %1480 = vmatpush1.bf16.msra.mxu1 %v1439_v35  ;;  %v1403_v63 = vsel %vm199_vm3, %v4378_v59, %v1399_v1  ;;  %v1404_v0 = vsel %vm199_vm3, %v4380_v27, %v1400_v34  ;;  %v1418_v35 = vsel %vm1092_vm8, %v3434_v52, %v1414_v48  ;;  %v1416_v34 = vsel %vm1099_vm11, %v4380_v27, %v3439_v21 }
 0xcb5   : > { %1481 = vmatprep.subr.bf16.mxu1 %v3826_v62  ;;  %v1440_v25 = vpack.c.bf16 %v1404_v0, %v1403_v63  ;;  %v1415_v61 = vsel %vm1099_vm11, %v4378_v59, %v3438_v38  ;;  %v1421_v60 = vsel %vm1110_vm7, %v4426_v3, %v3388_v20  ;;  %v1422_v52 = vsel %vm1110_vm7, %v4424_v22, %v3389_v19 }
 0xcb6   : > { %v1447_v27 = vpack.c.bf16 %v1418_v35, %v1417_v58  ;;  %v1419_v53 = vsel %vm1092_vm8, %v3443_v2, %v1415_v61  ;;  %v1420_v59 = vsel %vm1092_vm8, %v3444_v10, %v1416_v34  ;;  %v1426_v54 = vsel %vm1099_vm11, %v4428_v5, %v1422_v52 }
 0xcb7   : > { %v1425_v4 = vsel %vm1099_vm11, %v4430_v7, %v1421_v60  ;;  %v1423_v19 = vsel %vm1110_vm7, %v4470_v26, %v3408_v13  ;;  %v1424_v20 = vsel %vm1110_vm7, %v4468_v36, %v3409_v24  ;;  %v1448_v22 = vpack.c.bf16 %v1420_v59, %v1419_v53  ;;  %v3635_v13 = vld [vmem:[#allocation3 + $0x58] ss:$8 sps:$4 sm:$0xff]  }
 0xcb8   : > { %1482 = vmatpush1.bf16.msra.mxu1 %v1440_v25  ;;  %v1429_v3 = vsel %vm1092_vm8, %v3393_v18, %v1425_v4  ;;  %v1430_v5 = vsel %vm1092_vm8, %v3394_v17, %v1426_v54  ;;  %v1427_v7 = vsel %vm1099_vm11, %v4466_v32, %v1423_v19  ;;  %v1428_v33 = vsel %vm1099_vm11, %v4464_v15, %v1424_v20  ;;  %v3636_v15 = vld [vmem:[#allocation3 + $0x6c] ss:$8 sps:$4 sm:$0xff]   ;;  %v3638_v32 = vld [vmem:[#allocation3 + $0x68] ss:$8 sps:$4 sm:$0xff]  }
 0xcb9   : > { %1483 = vmatprep.subr.bf16.mxu1 %v3826_v62  ;;  %v1449_v24 = vpack.c.bf16 %v1430_v5, %v1429_v3  ;;  %v1431_v8 = vsel %vm1092_vm8, %v3413_v23, %v1427_v7  ;;  %v1432_v17 = vsel %vm1092_vm8, %v3414_v16, %v1428_v33 }
 0xcba   : > { %v1450_v18 = vpack.c.bf16 %v1432_v17, %v1431_v8 }
 0xcbc   : > { %1484 = vmatpush1.bf16.msra.mxu1 %v1441_v40 }
 0xcbd   : > { %1485 = vmatprep.subr.bf16.mxu1 %v3826_v62 }
 0xcc0   : > { %1486 = vmatpush1.bf16.msra.mxu1 %v1442_v43 }
 0xcc1   : > { %1487 = vmatprep.subr.bf16.mxu1 %v3826_v62 }
 0xcc4   : > { %1488 = vmatpush1.bf16.msra.mxu1 %v1443_v44 }
 0xcc5   : > { %1489 = vmatprep.subr.bf16.mxu1 %v3826_v62 }
 0xcc8   : > { %1490 = vmatpush1.bf16.msra.mxu1 %v1444_v45 }
 0xcc9   : > { %1491 = vmatprep.subr.bf16.mxu1 %v3826_v62 }
 0xccc   : > { %1492 = vmatpush1.bf16.msra.mxu1 %v1445_v50 }
 0xccd   : > { %1493 = vmatprep.subr.bf16.mxu1 %v3826_v62 }
 0xcd0   : > { %1494 = vmatpush1.bf16.msra.mxu1 %v1446_v57 }
 0xcd1   : > { %1495 = vmatprep.subr.bf16.mxu1 %v3826_v62 }
 0xcd4   : > { %1496 = vmatpush1.bf16.msra.mxu1 %v1447_v27 }
 0xcd5   : > { %1497 = vmatprep.subr.bf16.mxu1 %v3826_v62 }
 0xcd8   : > { %1498 = vmatpush1.bf16.msra.mxu1 %v1448_v22 }
 0xcd9   : > { %1499 = vmatprep.subr.bf16.mxu1 %v3826_v62 }
 0xcdc   : > { %1500 = vmatpush1.bf16.msra.mxu1 %v1449_v24 }
 0xcdd   : > { %1501 = vmatprep.subr.bf16.mxu1 %v3826_v62 }
 0xce0   : > { %1502 = vmatpush1.bf16.msra.mxu1 %v1450_v18 }
 0xce1   : > { %2089 = vmatprep.subr.bf16.mxu1 %v3826_v62 }
 0xce3   : > { %1508 = vmatmul.mubr.bf16.vlgmr.msra.gmra.mrb[16].mxu1 %v3635_v13 }
 0xce4   : > { %2948 = vmatprep.mubr.msk.bf16.mxu1 %vm1161_vm14, %v3636_v15 }
 0xceb   : > { %1516 = vmatmul.mubr.bf16.gmra.mrb[20].mxu1 %v3638_v32 }
 0xdb6   : > { %v4635_v23 = vpop.f32.mrb[16].mxu1 }
 0xdb7   : > { %v1511_v12 = vpop.f32.mrb[17].mxu1  ;;  %v1524_v16 = vsel %vm891_vm12, %v4635_v23, 0.0  ;;  %v1540_v36 = vmul.f32 %v4635_v23, %v4635_v23 }
 0xdb8   : > { %1525 = vadd.xlane.f32.xlu0 %v1524_v16  ;;  %v4641_v26 = vpop.f32.mrb[18].mxu1 }
 0xdb9   : > { %v1514_v55 = vpop.f32.mrb[19].mxu1  ;;  %v1527_v10 = vsel %vm891_vm12, %v4641_v26, 0.0  ;;  %v1544_v2 = vsel %vm891_vm12, %v1540_v36, 0.0  ;;  %v1541_v21 = vmul.f32 %v4641_v26, %v4641_v26 }
 0xdba   : > { %1528 = vadd.xlane.f32.xlu1 %v1527_v10 }
 0xdbb   : > { %v1547_v63 = vsel %vm891_vm12, %v1541_v21, 0.0 }
 0xdbc   : > { %1545 = vadd.xlane.f32.xlu0 %v1544_v2 }
 0xdbe   : > { %v4648_v38 = vpop.f32.mrb[20].mxu1 }
 0xdbf   : > { %v1519_v1 = vpop.f32.mrb[21].mxu1  ;;  %v1530_v0 = vsel %vm891_vm12, %v4648_v38, 0.0  ;;  %v1542_v25 = vmul.f32 %v4648_v38, %v4648_v38 }
 0xdc0   : > { %1548 = vadd.xlane.f32.xlu0 %v1547_v63  ;;  %1531 = vadd.xlane.f32.xlu1 %v1530_v0  ;;  %v1520_v28 = vpop.f32.mrb[22].mxu1 }
 0xdc1   : > { %v1522_v29 = vpop.f32.mrb[23].mxu1  ;;  %v1550_v40 = vsel %vm891_vm12, %v1542_v25, 0.0  ;;  %v1533_v41 = vsel %vm891_vm12, %v1520_v28, 0.0  ;;  %v1543_v42 = vmul.f32 %v1520_v28, %v1520_v28 }
 0xdc3   : > { %v1553_v43 = vsel %vm891_vm12, %v1543_v42, 0.0 }
 0xdc4   : > { %1551 = vadd.xlane.f32.xlu1 %v1550_v40  ;;  %1534 = vadd.xlane.f32.xlu0 %v1533_v41 }
 0xdc8   : > { %1554 = vadd.xlane.f32.xlu0 %v1553_v43 }
 0xe45   : > { %v1526_v44 = vpop.xlane.xlu0 %1525 }
 0xe46   : > { %v1536_v45 = vmul.f32 0.0625, %v1526_v44 }
 0xe47   : > { %v1529_v46 = vpop.xlane.xlu1 %1528 }
 0xe48   : > { %v1560_v50 = vmul.f32 %v1536_v45, %v1536_v45  ;;  %v1537_v51 = vmul.f32 0.0625, %v1529_v46  ;;  %v1572_v15 = vsub.f32 %v4635_v23, %v1536_v45 }
 0xe49   : > { %v1546_v47 = vpop.xlane.xlu0 %1545 }
 0xe4a   : > { %v1556_v56 = vmul.f32 0.0625, %v1546_v47  ;;  %v1561_v58 = vmul.f32 %v1537_v51, %v1537_v51  ;;  %v1573_v32 = vsub.f32 %v4641_v26, %v1537_v51 }
 0xe4c   : > { %v1564_v48 = vsub.f32 %v1556_v56, %v1560_v50 }
 0xe4d   : > { %v1549_v49 = vpop.xlane.xlu0 %1548  ;;  %v1532_v57 = vpop.xlane.xlu1 %1531 }
 0xe4e   : > { %v1568_v35 = vmax.f32 %v1564_v48, 0.0  ;;  %v1557_v34 = vmul.f32 0.0625, %v1549_v49  ;;  %v1538_v61 = vmul.f32 0.0625, %v1532_v57 }
 0xe50   : > { %v1576_v60 = vadd.f32 1e-05, %v1568_v35  ;;  %v1565_v52 = vsub.f32 %v1557_v34, %v1561_v58  ;;  %v1562_v27 = vmul.f32 %v1538_v61, %v1538_v61  ;;  %v1574_v21 = vsub.f32 %v4648_v38, %v1538_v61 }
 0xe51   : > { %v1552_v53 = vpop.xlane.xlu1 %1551  ;;  %v1535_v59 = vpop.xlane.xlu0 %1534 }
 0xe52   : > { %3683 = vrsqrt.f32 %v1576_v60  ;;  %v1569_v54 = vmax.f32 %v1565_v52, 0.0  ;;  %v1558_v4 = vmul.f32 0.0625, %v1552_v53  ;;  %v1539_v19 = vmul.f32 0.0625, %v1535_v59  ;;  %v3641_v52 = vld [vmem:[#allocation3 + $0x7c] ss:$8 sps:$4 sm:$0xff]  }
 0xe53   : > { %2953 = vmatprep.mubr.msk.bf16.mxu0 %vm1161_vm14, %v3641_v52 }
 0xe54   : > { %v1577_v20 = vadd.f32 1e-05, %v1569_v54  ;;  %v1566_v22 = vsub.f32 %v1558_v4, %v1562_v27  ;;  %v1563_v7 = vmul.f32 %v1539_v19, %v1539_v19  ;;  %v1575_v23 = vsub.f32 %v1520_v28, %v1539_v19 }
 0xe55   : > { %v1555_v3 = vpop.xlane.xlu0 %1554 }
 0xe56   : > { %3685 = vrsqrt.f32 %v1577_v20  ;;  %v1570_v5 = vmax.f32 %v1566_v22, 0.0  ;;  %v1559_v33 = vmul.f32 0.0625, %v1555_v3 }
 0xe58   : > { %v1578_v24 = vadd.f32 1e-05, %v1570_v5  ;;  %v1567_v8 = vsub.f32 %v1559_v33, %v1563_v7 }
 0xe5a   : > { %3687 = vrsqrt.f32 %v1578_v24  ;;  %v1571_v17 = vmax.f32 %v1567_v8, 0.0 }
 0xe5c   : > { %v3684_v18 = vpop.eup %3683  ;;  %v1579_v13 = vadd.f32 1e-05, %v1571_v17 }
 0xe5d   : > { %v1584_v12 = vmul.f32 %v3684_v18, %v1572_v15 }
 0xe5e   : > { %3689 = vrsqrt.f32 %v1579_v13 }
 0xe5f   : > { %v4661_v55 = vadd.f32 %v1584_v12, %v4071_v30 }
 0xe60   : > { %v3686_v16 = vpop.eup %3685 }
 0xe61   : > { %v1585_v36 = vmul.f32 %v3686_v16, %v1573_v32 }
 0xe63   : > { %v4664_v10 = vadd.f32 %v1585_v36, %v4073_v31 }
 0xe64   : > { %v3688_v2 = vpop.eup %3687 }
 0xe65   : > { %v3445_v1 = vpack.i.bf16 %v4664_v10, %v4661_v55  ;;  %v1586_v63 = vmul.f32 %v3688_v2, %v1574_v21 }
 0xe67   : > { %3446 = vrot.lane.b32.xlu1 %v3445_v1, %s3824_s6  ;;  %v4671_v25 = vadd.f32 %v1586_v63, %v4077_v39 }
 0xe68   : > { %v3690_v26 = vpop.eup %3689 }
 0xe69   : > { %v1587_v0 = vmul.f32 %v3690_v26, %v1575_v23 }
 0xe6b   : > { %v4674_v30 = vadd.f32 %v1587_v0, %v4079_v37 }
 0xe6d   : > { %v3450_v31 = vpack.i.bf16 %v4674_v30, %v4671_v25 }
 0xe6f   : > { %3451 = vrot.lane.b32.xlu0 %v3450_v31, %s3824_s6 }
 0xed9   : > { %v3447_v38 = vpop.permute.xlu1 %3446 }
 0xeda   : > { %v3449_v29 = vunpack.i.h.bf16 %v3447_v38  ;;  %v3448_v40 = vunpack.i.l.bf16 %v3447_v38 }
 0xedc   : > { %v1594_v28 = vsel %vm961_vm13, %v3448_v40, %v4661_v55  ;;  %v1597_v41 = vsel %vm961_vm13, %v3449_v29, %v4664_v10 }
 0xedd   : > { %v3455_v42 = vpack.i.bf16 %v1597_v41, %v1594_v28 }
 0xedf   : > { %3456 = vrot.lane.b32.xlu1 %v3455_v42, %s3824_s6 }
 0xee1   : > { %v3452_v39 = vpop.permute.xlu0 %3451 }
 0xee2   : > { %v3454_v37 = vunpack.i.h.bf16 %v3452_v39  ;;  %v3453_v43 = vunpack.i.l.bf16 %v3452_v39 }
 0xee4   : > { %v1600_v44 = vsel %vm961_vm13, %v3453_v43, %v4671_v25  ;;  %v1603_v45 = vsel %vm961_vm13, %v3454_v37, %v4674_v30 }
 0xee5   : > { %v3460_v46 = vpack.i.bf16 %v1603_v45, %v1600_v44 }
 0xee7   : > { %3461 = vrot.lane.b32.xlu1 %v3460_v46, %s3824_s6 }
 0xf51   : > { %v3457_v47 = vpop.permute.xlu1 %3456 }
 0xf52   : > { %v3459_v50 = vunpack.i.h.bf16 %v3457_v47  ;;  %v3458_v51 = vunpack.i.l.bf16 %v3457_v47 }
 0xf54   : > { %v1613_v56 = vsel %vm961_vm13, %v3459_v50, %v4664_v10  ;;  %v1612_v48 = vsel %vm961_vm13, %v3458_v51, %v4661_v55 }
 0xf55   : > { %v3465_v49 = vpack.i.bf16 %v1613_v56, %v1612_v48 }
 0xf57   : > { %3466 = vrot.lane.b32.xlu0 %v3465_v49, %s3815_s25  ;;  %3471 = vrot.lane.b32.xlu1 %v3465_v49, %s3825_s7 }
 0xf59   : > { %v3462_v57 = vpop.permute.xlu1 %3461 }
 0xf5a   : > { %v3464_v58 = vunpack.i.h.bf16 %v3462_v57  ;;  %v3463_v35 = vunpack.i.l.bf16 %v3462_v57 }
 0xf5b   : > { %3476 = vrot.lane.b32.xlu0 %v3465_v49, %s3818_s29  ;;  %3481 = vrot.lane.b32.xlu1 %v3465_v49, %s3827_s8 }
 0xf5c   : > { %v1615_v34 = vsel %vm961_vm13, %v3464_v58, %v4674_v30  ;;  %v1614_v61 = vsel %vm961_vm13, %v3463_v35, %v4671_v25 }
 0xf5d   : > { %v3490_v60 = vpack.i.bf16 %v1615_v34, %v1614_v61 }
 0xf5f   : > { %3491 = vrot.lane.b32.xlu1 %v3490_v60, %s3825_s7  ;;  %3486 = vrot.lane.b32.xlu0 %v3490_v60, %s3815_s25 }
 0xf63   : > { %3506 = vrot.lane.b32.xlu1 %v3490_v60, %s3827_s8  ;;  %3496 = vrot.lane.b32.xlu0 %v3490_v60, %s3818_s29 }
 0xf67   : > { %3511 = vrot.lane.b32.xlu1 %v3465_v49, %s3828_s9  ;;  %3501 = vrot.lane.b32.xlu0 %v3465_v49, %s3816_s27 }
 0xf6b   : > { %3521 = vrot.lane.b32.xlu1 %v3490_v60, %s3828_s9  ;;  %3516 = vrot.lane.b32.xlu0 %v3490_v60, %s3816_s27 }
 0xfc9   : > { %v4710_v27 = vpop.permute.xlu0 %3466  ;;  %v4712_v53 = vpop.permute.xlu1 %3471 }
 0xfca   : > { %v3469_v59 = vunpack.i.h.bf16 %v4710_v27  ;;  %v3468_v54 = vunpack.i.l.bf16 %v4710_v27  ;;  %v3474_v4 = vunpack.i.h.bf16 %v4712_v53  ;;  %v3473_v19 = vunpack.i.l.bf16 %v4712_v53 }
 0xfcc   : > { %v1645_v24 = vsel %vm190_vm2, %v3469_v59, %v3474_v4  ;;  %v1644_v8 = vsel %vm190_vm2, %v3468_v54, %v3473_v19 }
 0xfcd   : > { %v3477_v20 = vpop.permute.xlu0 %3476  ;;  %v3482_v22 = vpop.permute.xlu1 %3481 }
 0xfce   : > { %v4718_v3 = vunpack.i.h.bf16 %v3477_v20  ;;  %v4720_v5 = vunpack.i.l.bf16 %v3477_v20  ;;  %v4722_v7 = vunpack.i.h.bf16 %v3482_v22  ;;  %v4724_v33 = vunpack.i.l.bf16 %v3482_v22 }
 0xfd0   : > { %v1660_v17 = vsel %vm199_vm3, %v4720_v5, %v1644_v8  ;;  %v1661_v18 = vsel %vm199_vm3, %v4718_v3, %v1645_v24 }
 0xfd1   : > { %v4744_v13 = vpop.permute.xlu1 %3491  ;;  %v4746_v15 = vpop.permute.xlu0 %3486  ;;  %v1676_v32 = vsel %vm204_vm6, %v4724_v33, %v1660_v17  ;;  %v1677_v12 = vsel %vm204_vm6, %v4722_v7, %v1661_v18  ;;  %v1712_v18 = vsel %vm190_vm2, %v4720_v5, %v4724_v33 }
 0xfd2   : > { %v3494_v16 = vunpack.i.h.bf16 %v4744_v13  ;;  %v3493_v36 = vunpack.i.l.bf16 %v4744_v13  ;;  %v3489_v2 = vunpack.i.h.bf16 %v4746_v15  ;;  %v3488_v21 = vunpack.i.l.bf16 %v4746_v15 }
 0xfd3   : > { %v1744_v1 = vpack.c.bf16 %v1677_v12, %v1676_v32  ;;  %v1713_v32 = vsel %vm190_vm2, %v4718_v3, %v4722_v7 }
 0xfd4   : > { %v1647_v29 = vsel %vm190_vm2, %v3489_v2, %v3494_v16  ;;  %v1646_v40 = vsel %vm190_vm2, %v3488_v21, %v3493_v36  ;;  %v1748_v12 = vpack.c.bf16 %v1713_v32, %v1712_v18 }
 0xfd5   : > { %1783 = vmatpush1.bf16.msra.mxu0 %v1744_v1  ;;  %v3507_v63 = vpop.permute.xlu1 %3506  ;;  %v3497_v23 = vpop.permute.xlu0 %3496 }
 0xfd6   : > { %v4758_v26 = vunpack.i.h.bf16 %v3507_v63  ;;  %v4760_v0 = vunpack.i.l.bf16 %v3507_v63  ;;  %v4762_v31 = vunpack.i.h.bf16 %v3497_v23  ;;  %v4764_v38 = vunpack.i.l.bf16 %v3497_v23  ;;  %1784 = vmatprep.subr.bf16.mxu0 %v3826_v62 }
 0xfd8   : > { %v1662_v28 = vsel %vm199_vm3, %v4764_v38, %v1646_v40  ;;  %v1663_v41 = vsel %vm199_vm3, %v4762_v31, %v1647_v29  ;;  %v1714_v1 = vsel %vm190_vm2, %v4764_v38, %v4760_v0  ;;  %v1715_v63 = vsel %vm190_vm2, %v4762_v31, %v4758_v26 }
 0xfd9   : > { %v3512_v42 = vpop.permute.xlu1 %3511  ;;  %v3502_v39 = vpop.permute.xlu0 %3501  ;;  %v1678_v37 = vsel %vm204_vm6, %v4760_v0, %v1662_v28  ;;  %v1679_v43 = vsel %vm204_vm6, %v4758_v26, %v1663_v41  ;;  %v1749_v23 = vpack.c.bf16 %v1715_v63, %v1714_v1  ;;  %v1750_v29 = vpack.c.bf16 %v4664_v10, %v4661_v55 }
 0xfda   : > { %v3514_v44 = vunpack.i.h.bf16 %v3512_v42  ;;  %v3513_v45 = vunpack.i.l.bf16 %v3512_v42  ;;  %v3504_v46 = vunpack.i.h.bf16 %v3502_v39  ;;  %v3503_v47 = vunpack.i.l.bf16 %v3502_v39 }
 0xfdb   : > { %v1745_v50 = vpack.c.bf16 %v1679_v43, %v1678_v37  ;;  %v1751_v40 = vpack.c.bf16 %v4674_v30, %v4671_v25  ;;  %v1716_v28 = vsel %vm1092_vm8, %v4724_v33, %v4720_v5  ;;  %v1717_v41 = vsel %vm1092_vm8, %v4722_v7, %v4718_v3 }
 0xfdc   : > { %v1705_v51 = vsel %vm190_vm2, %v3504_v46, %v3514_v44  ;;  %v1704_v56 = vsel %vm190_vm2, %v3503_v47, %v3513_v45  ;;  %v1752_v42 = vpack.c.bf16 %v1717_v41, %v1716_v28  ;;  %v1718_v39 = vsel %vm1092_vm8, %v4760_v0, %v4764_v38 }
 0xfdd   : > { %1785 = vmatpush1.bf16.msra.mxu0 %v1745_v50  ;;  %v3522_v48 = vpop.permute.xlu1 %3521  ;;  %v3517_v49 = vpop.permute.xlu0 %3516  ;;  %v1708_v57 = vsel %vm199_vm3, %v4661_v55, %v1704_v56  ;;  %v1709_v58 = vsel %vm199_vm3, %v4664_v10, %v1705_v51  ;;  %v1719_v37 = vsel %vm1092_vm8, %v4758_v26, %v4762_v31  ;;  %v1721_v43 = vsel %vm1099_vm11, %v4664_v10, %v3504_v46 }
 0xfde   : > { %v3524_v35 = vunpack.i.h.bf16 %v3522_v48  ;;  %v3523_v34 = vunpack.i.l.bf16 %v3522_v48  ;;  %v3519_v61 = vunpack.i.h.bf16 %v3517_v49  ;;  %v3518_v60 = vunpack.i.l.bf16 %v3517_v49  ;;  %1786 = vmatprep.subr.bf16.mxu0 %v3826_v62 }
 0xfdf   : > { %v1746_v52 = vpack.c.bf16 %v1709_v58, %v1708_v57  ;;  %v1720_v50 = vsel %vm1099_vm11, %v4661_v55, %v3503_v47  ;;  %v1753_v51 = vpack.c.bf16 %v1719_v37, %v1718_v39  ;;  %v1725_v48 = vsel %vm1092_vm8, %v3514_v44, %v1721_v43 }
 0xfe0   : > { %v1707_v20 = vsel %vm190_vm2, %v3519_v61, %v3524_v35  ;;  %v1706_v22 = vsel %vm190_vm2, %v3518_v60, %v3523_v34  ;;  %v1724_v56 = vsel %vm1092_vm8, %v3513_v45, %v1720_v50  ;;  %v1723_v49 = vsel %vm1099_vm11, %v4674_v30, %v3519_v61 }
 0xfe1   : > { %1787 = vmatpush1.bf16.msra.mxu0 %v1746_v52  ;;  %v1710_v24 = vsel %vm199_vm3, %v4671_v25, %v1706_v22  ;;  %v1711_v8 = vsel %vm199_vm3, %v4674_v30, %v1707_v20  ;;  %v1722_v46 = vsel %vm1099_vm11, %v4671_v25, %v3518_v60  ;;  %v1728_v47 = vsel %vm1110_vm7, %v4720_v5, %v3468_v54 }
 0xfe2   : > { %1788 = vmatprep.subr.bf16.mxu0 %v3826_v62  ;;  %v1747_v17 = vpack.c.bf16 %v1711_v8, %v1710_v24  ;;  %v1729_v44 = vsel %vm1110_vm7, %v4718_v3, %v3469_v59  ;;  %v1754_v45 = vpack.c.bf16 %v1725_v48, %v1724_v56  ;;  %v1726_v57 = vsel %vm1092_vm8, %v3523_v34, %v1722_v46 }
 0xfe3   : > { %v1727_v58 = vsel %vm1092_vm8, %v3524_v35, %v1723_v49  ;;  %v1733_v61 = vsel %vm1099_vm11, %v4722_v7, %v1729_v44  ;;  %v1732_v27 = vsel %vm1099_vm11, %v4724_v33, %v1728_v47  ;;  %v1730_v59 = vsel %vm1110_vm7, %v4764_v38, %v3488_v21  ;;  %v3639_v21 = vld [vmem:[#allocation3 + $0x78] ss:$8 sps:$4 sm:$0xff]  }
 0xfe4   : > { %v1731_v54 = vsel %vm1110_vm7, %v4762_v31, %v3489_v2  ;;  %v1755_v3 = vpack.c.bf16 %v1727_v58, %v1726_v57  ;;  %v1736_v5 = vsel %vm1092_vm8, %v3473_v19, %v1732_v27  ;;  %v1737_v7 = vsel %vm1092_vm8, %v3474_v4, %v1733_v61 }
 0xfe5   : > { %1789 = vmatpush1.bf16.msra.mxu0 %v1747_v17  ;;  %v1734_v33 = vsel %vm1099_vm11, %v4760_v0, %v1730_v59  ;;  %v1735_v15 = vsel %vm1099_vm11, %v4758_v26, %v1731_v54  ;;  %v1756_v2 = vpack.c.bf16 %v1737_v7, %v1736_v5  ;;  %v3642_v26 = vld [vmem:[#allocation3 + $0x8c] ss:$8 sps:$4 sm:$0xff]   ;;  %v3644_v0 = vld [vmem:[#allocation3 + $0x88] ss:$8 sps:$4 sm:$0xff]  }
 0xfe6   : > { %1790 = vmatprep.subr.bf16.mxu0 %v3826_v62  ;;  %v1738_v53 = vsel %vm1092_vm8, %v3493_v36, %v1734_v33  ;;  %v1739_v4 = vsel %vm1092_vm8, %v3494_v16, %v1735_v15 }
 0xfe7   : > { %v1757_v19 = vpack.c.bf16 %v1739_v4, %v1738_v53 }
 0xfe9   : > { %1791 = vmatpush1.bf16.msra.mxu0 %v1748_v12 }
 0xfea   : > { %1792 = vmatprep.subr.bf16.mxu0 %v3826_v62 }
 0xfed   : > { %1793 = vmatpush1.bf16.msra.mxu0 %v1749_v23 }
 0xfee   : > { %1794 = vmatprep.subr.bf16.mxu0 %v3826_v62 }
 0xff1   : > { %1795 = vmatpush1.bf16.msra.mxu0 %v1750_v29 }
 0xff2   : > { %1796 = vmatprep.subr.bf16.mxu0 %v3826_v62 }
 0xff5   : > { %1797 = vmatpush1.bf16.msra.mxu0 %v1751_v40 }
 0xff6   : > { %1798 = vmatprep.subr.bf16.mxu0 %v3826_v62 }
 0xff9   : > { %1799 = vmatpush1.bf16.msra.mxu0 %v1752_v42 }
 0xffa   : > { %1800 = vmatprep.subr.bf16.mxu0 %v3826_v62 }
 0xffd   : > { %1801 = vmatpush1.bf16.msra.mxu0 %v1753_v51 }
 0xffe   : > { %1802 = vmatprep.subr.bf16.mxu0 %v3826_v62 }
0x1001   : > { %1803 = vmatpush1.bf16.msra.mxu0 %v1754_v45 }
0x1002   : > { %1804 = vmatprep.subr.bf16.mxu0 %v3826_v62 }
0x1005   : > { %1805 = vmatpush1.bf16.msra.mxu0 %v1755_v3 }
0x1006   : > { %1806 = vmatprep.subr.bf16.mxu0 %v3826_v62 }
0x1009   : > { %1807 = vmatpush1.bf16.msra.mxu0 %v1756_v2 }
0x100a   : > { %1808 = vmatprep.subr.bf16.mxu0 %v3826_v62 }
0x100d   : > { %1809 = vmatpush1.bf16.msra.mxu0 %v1757_v19 }
0x1010   : > { %1815 = vmatmul.mubr.bf16.vlgmr.msra.gmra.mrb[28].mxu0 %v3639_v21 }
0x1011   : > { %2954 = vmatprep.mubr.msk.bf16.mxu0 %vm1161_vm14, %v3642_v26 }
0x1018   : > { %1823 = vmatmul.mubr.bf16.gmra.mrb[32].mxu0 %v3644_v0 }
0x10e3   : > { %v4928_v31 = vpop.f32.mrb[28].mxu0 }
0x10e4   : > { %v1818_v36 = vpop.f32.mrb[29].mxu0  ;;  %v1831_v13 = vsel %vm891_vm12, %v4928_v31, 0.0  ;;  %v1847_v16 = vmul.f32 %v4928_v31, %v4928_v31 }
0x10e5   : > { %1832 = vadd.xlane.f32.xlu0 %v1831_v13  ;;  %v4934_v38 = vpop.f32.mrb[30].mxu0 }
0x10e6   : > { %v1821_v35 = vpop.f32.mrb[31].mxu0  ;;  %v1834_v34 = vsel %vm891_vm12, %v4934_v38, 0.0  ;;  %v1851_v60 = vsel %vm891_vm12, %v1847_v16, 0.0  ;;  %v1848_v52 = vmul.f32 %v4934_v38, %v4934_v38 }
0x10e7   : > { %1835 = vadd.xlane.f32.xlu1 %v1834_v34 }
0x10e8   : > { %v1854_v24 = vsel %vm891_vm12, %v1848_v52, 0.0 }
0x10e9   : > { %1852 = vadd.xlane.f32.xlu0 %v1851_v60 }
0x10eb   : > { %v4941_v20 = vpop.f32.mrb[32].mxu0 }
0x10ec   : > { %v1826_v22 = vpop.f32.mrb[33].mxu0  ;;  %v1837_v8 = vsel %vm891_vm12, %v4941_v20, 0.0  ;;  %v1849_v17 = vmul.f32 %v4941_v20, %v4941_v20 }
0x10ed   : > { %1855 = vadd.xlane.f32.xlu0 %v1854_v24  ;;  %1838 = vadd.xlane.f32.xlu1 %v1837_v8  ;;  %v1827_v18 = vpop.f32.mrb[34].mxu0 }
0x10ee   : > { %v1829_v32 = vpop.f32.mrb[35].mxu0  ;;  %v1857_v12 = vsel %vm891_vm12, %v1849_v17, 0.0  ;;  %v1840_v1 = vsel %vm891_vm12, %v1827_v18, 0.0  ;;  %v1850_v63 = vmul.f32 %v1827_v18, %v1827_v18 }
0x10f0   : > { %v1860_v23 = vsel %vm891_vm12, %v1850_v63, 0.0 }
0x10f1   : > { %1858 = vadd.xlane.f32.xlu1 %v1857_v12  ;;  %1841 = vadd.xlane.f32.xlu0 %v1840_v1 }
0x10f5   : > { %1861 = vadd.xlane.f32.xlu0 %v1860_v23 }
0x1172   : > { %v1833_v29 = vpop.xlane.xlu0 %1832 }
0x1173   : > { %v1843_v40 = vmul.f32 0.0625, %v1833_v29 }
0x1174   : > { %v1836_v28 = vpop.xlane.xlu1 %1835 }
0x1175   : > { %v1867_v42 = vmul.f32 %v1843_v40, %v1843_v40  ;;  %v1844_v39 = vmul.f32 0.0625, %v1836_v28  ;;  %v1879_v26 = vsub.f32 %v4928_v31, %v1843_v40 }
0x1176   : > { %v1853_v41 = vpop.xlane.xlu0 %1852 }
0x1177   : > { %v1863_v37 = vmul.f32 0.0625, %v1853_v41  ;;  %v1868_v56 = vmul.f32 %v1844_v39, %v1844_v39  ;;  %v1880_v0 = vsub.f32 %v4934_v38, %v1844_v39 }
0x1179   : > { %v1871_v43 = vsub.f32 %v1863_v37, %v1867_v42 }
0x117a   : > { %v1856_v50 = vpop.xlane.xlu0 %1855  ;;  %v1839_v51 = vpop.xlane.xlu1 %1838 }
0x117b   : > { %v1875_v48 = vmax.f32 %v1871_v43, 0.0  ;;  %v1864_v49 = vmul.f32 0.0625, %v1856_v50  ;;  %v1845_v46 = vmul.f32 0.0625, %v1839_v51 }
0x117d   : > { %v1883_v47 = vadd.f32 1e-05, %v1875_v48  ;;  %v1872_v44 = vsub.f32 %v1864_v49, %v1868_v56  ;;  %v1869_v45 = vmul.f32 %v1845_v46, %v1845_v46  ;;  %v1881_v52 = vsub.f32 %v4941_v20, %v1845_v46 }
0x117e   : > { %v1859_v57 = vpop.xlane.xlu1 %1858  ;;  %v1842_v58 = vpop.xlane.xlu0 %1841 }
0x117f   : > { %3691 = vrsqrt.f32 %v1883_v47  ;;  %v1876_v61 = vmax.f32 %v1872_v44, 0.0  ;;  %v1865_v27 = vmul.f32 0.0625, %v1859_v57  ;;  %v1846_v59 = vmul.f32 0.0625, %v1842_v58 }
0x1181   : > { %v1884_v54 = vadd.f32 1e-05, %v1876_v61  ;;  %v1873_v3 = vsub.f32 %v1865_v27, %v1869_v45  ;;  %v1870_v33 = vmul.f32 %v1846_v59, %v1846_v59  ;;  %v1882_v8 = vsub.f32 %v1827_v18, %v1846_v59  ;;  %v3647_v61 = vld [vmem:[#allocation3 + $0x9c] ss:$8 sps:$4 sm:$0xff]  }
0x1182   : > { %v1862_v5 = vpop.xlane.xlu0 %1861  ;;  %2959 = vmatprep.mubr.msk.bf16.mxu1 %vm1161_vm14, %v3647_v61 }
0x1183   : > { %3693 = vrsqrt.f32 %v1884_v54  ;;  %v1877_v7 = vmax.f32 %v1873_v3, 0.0  ;;  %v1866_v15 = vmul.f32 0.0625, %v1862_v5 }
0x1185   : > { %v1885_v2 = vadd.f32 1e-05, %v1877_v7  ;;  %v1874_v53 = vsub.f32 %v1866_v15, %v1870_v33 }
0x1187   : > { %3695 = vrsqrt.f32 %v1885_v2  ;;  %v1878_v4 = vmax.f32 %v1874_v53, 0.0 }
0x1189   : > { %v3692_v19 = vpop.eup %3691  ;;  %v1886_v21 = vadd.f32 1e-05, %v1878_v4 }
0x118a   : > { %v1891_v36 = vmul.f32 %v3692_v19, %v1879_v26 }
0x118b   : > { %3697 = vrsqrt.f32 %v1886_v21 }
0x118c   : > { %v4953_v35 = vmax.f32 %v1891_v36, 0.0 }
0x118d   : > { %v3694_v13 = vpop.eup %3693 }
0x118e   : > { %v1892_v16 = vmul.f32 %v3694_v13, %v1880_v0 }
0x1190   : > { %v4955_v34 = vmax.f32 %v1892_v16, 0.0 }
0x1191   : > { %v3696_v60 = vpop.eup %3695 }
0x1192   : > { %v3525_v22 = vpack.i.bf16 %v4955_v34, %v4953_v35  ;;  %v1893_v24 = vmul.f32 %v3696_v60, %v1881_v52 }
0x1194   : > { %3526 = vrot.lane.b32.xlu1 %v3525_v22, %s3824_s6  ;;  %v4961_v38 = vmax.f32 %v1893_v24, 0.0 }
0x1195   : > { %v3698_v31 = vpop.eup %3697 }
0x1196   : > { %v1894_v17 = vmul.f32 %v3698_v31, %v1882_v8 }
0x1198   : > { %v4963_v32 = vmax.f32 %v1894_v17, 0.0 }
0x119a   : > { %v3530_v12 = vpack.i.bf16 %v4963_v32, %v4961_v38 }
0x119c   : > { %3531 = vrot.lane.b32.xlu0 %v3530_v12, %s3824_s6 }
0x1206   : > { %v3527_v1 = vpop.permute.xlu1 %3526 }
0x1207   : > { %v3529_v20 = vunpack.i.h.bf16 %v3527_v1  ;;  %v3528_v63 = vunpack.i.l.bf16 %v3527_v1 }
0x1209   : > { %v1901_v23 = vsel %vm961_vm13, %v3528_v63, %v4953_v35  ;;  %v1904_v18 = vsel %vm961_vm13, %v3529_v20, %v4955_v34 }
0x120a   : > { %v3535_v29 = vpack.i.bf16 %v1904_v18, %v1901_v23 }
0x120c   : > { %3536 = vrot.lane.b32.xlu1 %v3535_v29, %s3824_s6 }
0x120e   : > { %v3532_v40 = vpop.permute.xlu0 %3531 }
0x120f   : > { %v3534_v28 = vunpack.i.h.bf16 %v3532_v40  ;;  %v3533_v41 = vunpack.i.l.bf16 %v3532_v40 }
0x1211   : > { %v1907_v42 = vsel %vm961_vm13, %v3533_v41, %v4961_v38  ;;  %v1910_v39 = vsel %vm961_vm13, %v3534_v28, %v4963_v32 }
0x1212   : > { %v3540_v37 = vpack.i.bf16 %v1910_v39, %v1907_v42 }
0x1214   : > { %3541 = vrot.lane.b32.xlu1 %v3540_v37, %s3824_s6 }
0x127e   : > { %v3537_v43 = vpop.permute.xlu1 %3536 }
0x127f   : > { %v3539_v50 = vunpack.i.h.bf16 %v3537_v43  ;;  %v3538_v51 = vunpack.i.l.bf16 %v3537_v43 }
0x1281   : > { %v1920_v56 = vsel %vm961_vm13, %v3539_v50, %v4955_v34  ;;  %v1919_v48 = vsel %vm961_vm13, %v3538_v51, %v4953_v35 }
0x1282   : > { %v3545_v49 = vpack.i.bf16 %v1920_v56, %v1919_v48 }
0x1284   : > { %3546 = vrot.lane.b32.xlu0 %v3545_v49, %s3815_s25  ;;  %3551 = vrot.lane.b32.xlu1 %v3545_v49, %s3825_s7 }
0x1286   : > { %v3542_v46 = vpop.permute.xlu1 %3541 }
0x1287   : > { %v3544_v47 = vunpack.i.h.bf16 %v3542_v46  ;;  %v3543_v44 = vunpack.i.l.bf16 %v3542_v46 }
0x1288   : > { %3556 = vrot.lane.b32.xlu0 %v3545_v49, %s3818_s29  ;;  %3561 = vrot.lane.b32.xlu1 %v3545_v49, %s3827_s8 }
0x1289   : > { %v1922_v45 = vsel %vm961_vm13, %v3544_v47, %v4963_v32  ;;  %v1921_v57 = vsel %vm961_vm13, %v3543_v44, %v4961_v38 }
0x128a   : > { %v3570_v58 = vpack.i.bf16 %v1922_v45, %v1921_v57 }
0x128c   : > { %3571 = vrot.lane.b32.xlu1 %v3570_v58, %s3825_s7  ;;  %3566 = vrot.lane.b32.xlu0 %v3570_v58, %s3815_s25 }
0x1290   : > { %3586 = vrot.lane.b32.xlu1 %v3570_v58, %s3827_s8  ;;  %3576 = vrot.lane.b32.xlu0 %v3570_v58, %s3818_s29 }
0x1294   : > { %3591 = vrot.lane.b32.xlu1 %v3545_v49, %s3828_s9  ;;  %3581 = vrot.lane.b32.xlu0 %v3545_v49, %s3816_s27 }
0x1298   : > { %3601 = vrot.lane.b32.xlu1 %v3570_v58, %s3828_s9  ;;  %3596 = vrot.lane.b32.xlu0 %v3570_v58, %s3816_s27 }
0x12f6   : > { %v4999_v27 = vpop.permute.xlu0 %3546  ;;  %v5001_v59 = vpop.permute.xlu1 %3551 }
0x12f7   : > { %v3549_v54 = vunpack.i.h.bf16 %v4999_v27  ;;  %v3548_v3 = vunpack.i.l.bf16 %v4999_v27  ;;  %v3554_v5 = vunpack.i.h.bf16 %v5001_v59  ;;  %v3553_v7 = vunpack.i.l.bf16 %v5001_v59 }
0x12f9   : > { %v1952_v21 = vsel %vm190_vm2, %v3549_v54, %v3554_v5  ;;  %v1951_v26 = vsel %vm190_vm2, %v3548_v3, %v3553_v7 }
0x12fa   : > { %v3557_v33 = vpop.permute.xlu0 %3556  ;;  %v3562_v15 = vpop.permute.xlu1 %3561 }
0x12fb   : > { %v5007_v2 = vunpack.i.h.bf16 %v3557_v33  ;;  %v5009_v53 = vunpack.i.l.bf16 %v3557_v33  ;;  %v5011_v4 = vunpack.i.h.bf16 %v3562_v15  ;;  %v5013_v19 = vunpack.i.l.bf16 %v3562_v15 }
0x12fd   : > { %v1967_v0 = vsel %vm199_vm3, %v5009_v53, %v1951_v26  ;;  %v1968_v36 = vsel %vm199_vm3, %v5007_v2, %v1952_v21 }
0x12fe   : > { %v5033_v13 = vpop.permute.xlu1 %3571  ;;  %v5035_v16 = vpop.permute.xlu0 %3566  ;;  %v1983_v60 = vsel %vm204_vm6, %v5013_v19, %v1967_v0  ;;  %v1984_v52 = vsel %vm204_vm6, %v5011_v4, %v1968_v36 }
0x12ff   : > { %v3574_v22 = vunpack.i.h.bf16 %v5033_v13  ;;  %v3573_v24 = vunpack.i.l.bf16 %v5033_v13  ;;  %v3569_v8 = vunpack.i.h.bf16 %v5035_v16  ;;  %v3568_v31 = vunpack.i.l.bf16 %v5035_v16 }
0x1300   : > { %v2051_v17 = vpack.c.bf16 %v1984_v52, %v1983_v60 }
0x1301   : > { %v1954_v29 = vsel %vm190_vm2, %v3569_v8, %v3574_v22  ;;  %v1953_v40 = vsel %vm190_vm2, %v3568_v31, %v3573_v24 }
0x1302   : > { %2090 = vmatpush1.bf16.msra.mxu1 %v2051_v17  ;;  %v3587_v12 = vpop.permute.xlu1 %3586  ;;  %v3577_v1 = vpop.permute.xlu0 %3576 }
0x1303   : > { %v5047_v20 = vunpack.i.h.bf16 %v3587_v12  ;;  %v5049_v63 = vunpack.i.l.bf16 %v3587_v12  ;;  %v5051_v23 = vunpack.i.h.bf16 %v3577_v1  ;;  %v5053_v18 = vunpack.i.l.bf16 %v3577_v1  ;;  %2091 = vmatprep.subr.bf16.mxu1 %v3826_v62 }
0x1304   : > { %v2019_v12 = vsel %vm190_vm2, %v5009_v53, %v5013_v19  ;;  %v2020_v1 = vsel %vm190_vm2, %v5007_v2, %v5011_v4 }
0x1305   : > { %v1969_v28 = vsel %vm199_vm3, %v5053_v18, %v1953_v40  ;;  %v1970_v41 = vsel %vm199_vm3, %v5051_v23, %v1954_v29  ;;  %v2055_v29 = vpack.c.bf16 %v2020_v1, %v2019_v12  ;;  %v2021_v40 = vsel %vm190_vm2, %v5053_v18, %v5049_v63 }
0x1306   : > { %v3592_v42 = vpop.permute.xlu1 %3591  ;;  %v3582_v39 = vpop.permute.xlu0 %3581  ;;  %v1985_v37 = vsel %vm204_vm6, %v5049_v63, %v1969_v28  ;;  %v1986_v43 = vsel %vm204_vm6, %v5047_v20, %v1970_v41  ;;  %v2022_v28 = vsel %vm190_vm2, %v5051_v23, %v5047_v20 }
0x1307   : > { %v3594_v50 = vunpack.i.h.bf16 %v3592_v42  ;;  %v3593_v51 = vunpack.i.l.bf16 %v3592_v42  ;;  %v3584_v56 = vunpack.i.h.bf16 %v3582_v39  ;;  %v3583_v48 = vunpack.i.l.bf16 %v3582_v39 }
0x1308   : > { %v2052_v49 = vpack.c.bf16 %v1986_v43, %v1985_v37  ;;  %v2056_v41 = vpack.c.bf16 %v2022_v28, %v2021_v40  ;;  %v2057_v42 = vpack.c.bf16 %v4955_v34, %v4953_v35  ;;  %v2058_v39 = vpack.c.bf16 %v4963_v32, %v4961_v38 }
0x1309   : > { %v2012_v46 = vsel %vm190_vm2, %v3584_v56, %v3594_v50  ;;  %v2011_v47 = vsel %vm190_vm2, %v3583_v48, %v3593_v51  ;;  %v2023_v37 = vsel %vm1092_vm8, %v5013_v19, %v5009_v53  ;;  %v2024_v43 = vsel %vm1092_vm8, %v5011_v4, %v5007_v2 }
0x130a   : > { %2092 = vmatpush1.bf16.msra.mxu1 %v2052_v49  ;;  %v3602_v44 = vpop.permute.xlu1 %3601  ;;  %v3597_v45 = vpop.permute.xlu0 %3596  ;;  %v2015_v57 = vsel %vm199_vm3, %v4953_v35, %v2011_v47  ;;  %v2016_v58 = vsel %vm199_vm3, %v4955_v34, %v2012_v46  ;;  %v2059_v49 = vpack.c.bf16 %v2024_v43, %v2023_v37  ;;  %v2025_v46 = vsel %vm1092_vm8, %v5049_v63, %v5053_v18 }
0x130b   : > { %v3604_v61 = vunpack.i.h.bf16 %v3602_v44  ;;  %v3603_v33 = vunpack.i.l.bf16 %v3602_v44  ;;  %v3599_v15 = vunpack.i.h.bf16 %v3597_v45  ;;  %v3598_v21 = vunpack.i.l.bf16 %v3597_v45  ;;  %2093 = vmatprep.subr.bf16.mxu1 %v3826_v62 }
0x130c   : > { %v2053_v26 = vpack.c.bf16 %v2016_v58, %v2015_v57  ;;  %v2026_v47 = vsel %vm1092_vm8, %v5047_v20, %v5051_v23  ;;  %v2028_v44 = vsel %vm1099_vm11, %v4955_v34, %v3584_v56  ;;  %v2027_v45 = vsel %vm1099_vm11, %v4953_v35, %v3583_v48 }
0x130d   : > { %v2014_v0 = vsel %vm190_vm2, %v3599_v15, %v3604_v61  ;;  %v2013_v36 = vsel %vm190_vm2, %v3598_v21, %v3603_v33  ;;  %v2060_v57 = vpack.c.bf16 %v2026_v47, %v2025_v46  ;;  %v2031_v58 = vsel %vm1092_vm8, %v3593_v51, %v2027_v45 }
0x130e   : > { %2094 = vmatpush1.bf16.msra.mxu1 %v2053_v26  ;;  %v2017_v60 = vsel %vm199_vm3, %v4961_v38, %v2013_v36  ;;  %v2018_v52 = vsel %vm199_vm3, %v4963_v32, %v2014_v0  ;;  %v2032_v26 = vsel %vm1092_vm8, %v3594_v50, %v2028_v44  ;;  %v2030_v0 = vsel %vm1099_vm11, %v4963_v32, %v3599_v15 }
0x130f   : > { %2095 = vmatprep.subr.bf16.mxu1 %v3826_v62  ;;  %v2054_v17 = vpack.c.bf16 %v2018_v52, %v2017_v60  ;;  %v2029_v34 = vsel %vm1099_vm11, %v4961_v38, %v3598_v21  ;;  %v2035_v35 = vsel %vm1110_vm7, %v5009_v53, %v3548_v3  ;;  %v2036_v50 = vsel %vm1110_vm7, %v5007_v2, %v3549_v54 }
0x1310   : > { %v2061_v32 = vpack.c.bf16 %v2032_v26, %v2031_v58  ;;  %v2033_v51 = vsel %vm1092_vm8, %v3603_v33, %v2029_v34  ;;  %v2034_v38 = vsel %vm1092_vm8, %v3604_v61, %v2030_v0  ;;  %v2040_v56 = vsel %vm1099_vm11, %v5011_v4, %v2036_v50 }
0x1311   : > { %v2039_v27 = vsel %vm1099_vm11, %v5013_v19, %v2035_v35  ;;  %v2037_v54 = vsel %vm1110_vm7, %v5053_v18, %v3568_v31  ;;  %v2038_v3 = vsel %vm1110_vm7, %v5051_v23, %v3569_v8  ;;  %v2062_v2 = vpack.c.bf16 %v2034_v38, %v2033_v51  ;;  %v3645_v31 = vld [vmem:[#allocation3 + $0x98] ss:$8 sps:$4 sm:$0xff]  }
0x1312   : > { %2096 = vmatpush1.bf16.msra.mxu1 %v2054_v17  ;;  %v2043_v53 = vsel %vm1092_vm8, %v3553_v7, %v2039_v27  ;;  %v2044_v4 = vsel %vm1092_vm8, %v3554_v5, %v2040_v56  ;;  %v2041_v19 = vsel %vm1099_vm11, %v5049_v63, %v2037_v54  ;;  %v2042_v16 = vsel %vm1099_vm11, %v5047_v20, %v2038_v3  ;;  %v3648_v20 = vld [vmem:[#allocation3 + $0xac] ss:$8 sps:$4 sm:$0xff]   ;;  %v3650_v63 = vld [vmem:[#allocation3 + $0xa8] ss:$8 sps:$4 sm:$0xff]  }
0x1313   : > { %2097 = vmatprep.subr.bf16.mxu1 %v3826_v62  ;;  %v2063_v8 = vpack.c.bf16 %v2044_v4, %v2043_v53  ;;  %v2045_v59 = vsel %vm1092_vm8, %v3573_v24, %v2041_v19  ;;  %v2046_v5 = vsel %vm1092_vm8, %v3574_v22, %v2042_v16 }
0x1314   : > { %v2064_v7 = vpack.c.bf16 %v2046_v5, %v2045_v59 }
0x1316   : > { %2098 = vmatpush1.bf16.msra.mxu1 %v2055_v29 }
0x1317   : > { %2099 = vmatprep.subr.bf16.mxu1 %v3826_v62 }
0x131a   : > { %2100 = vmatpush1.bf16.msra.mxu1 %v2056_v41  ;;  %v3651_v41 = vld [vmem:[#allocation3 + $0x1f8] ss:$8 sps:$4 sm:$0xff]  }
0x131b   : > { %2101 = vmatprep.subr.bf16.mxu1 %v3826_v62  ;;  %3138 = vmatprep.subr.bf16.mxu0 %v3651_v41 }
0x131c   : > { %3139 = vmatpush3.bf16.msra.mxu0 %v3651_v41 }
0x131e   : > { %2102 = vmatpush1.bf16.msra.mxu1 %v2057_v42  ;;  %v3652_v42 = vld [vmem:[#allocation3 + $0x218] ss:$8 sps:$4 sm:$0xff]  }
0x131f   : > { %2103 = vmatprep.subr.bf16.mxu1 %v3826_v62 }
0x1322   : > { %2104 = vmatpush1.bf16.msra.mxu1 %v2058_v39  ;;  %v3653_v39 = vld [vmem:[#allocation3 + $0x208] ss:$8 sps:$4 sm:$0xff]  }
0x1323   : > { %2105 = vmatprep.subr.bf16.mxu1 %v3826_v62  ;;  %3144 = vmatprep.subr.bf16.mxu0 %v3653_v39 }
0x1326   : > { %2106 = vmatpush1.bf16.msra.mxu1 %v2059_v49 }
0x1327   : > { %2107 = vmatprep.subr.bf16.mxu1 %v3826_v62 }
0x132a   : > { %2108 = vmatpush1.bf16.msra.mxu1 %v2060_v57 }
0x132b   : > { %2109 = vmatprep.subr.bf16.mxu1 %v3826_v62 }
0x132e   : > { %2110 = vmatpush1.bf16.msra.mxu1 %v2061_v32 }
0x132f   : > { %2111 = vmatprep.subr.bf16.mxu1 %v3826_v62 }
0x1332   : > { %2112 = vmatpush1.bf16.msra.mxu1 %v2062_v2 }
0x1333   : > { %2113 = vmatprep.subr.bf16.mxu1 %v3826_v62 }
0x1336   : > { %2114 = vmatpush1.bf16.msra.mxu1 %v2063_v8 }
0x1337   : > { %2115 = vmatprep.subr.bf16.mxu1 %v3826_v62 }
0x133a   : > { %2116 = vmatpush1.bf16.msra.mxu1 %v2064_v7 }
0x133b   : > { %3150 = vmatprep.subr.bf16.mxu1 %v3652_v42 }
0x133d   : > { %2122 = vmatmul.mubr.bf16.vlgmr.msra.gmra.mrb[24].mxu1 %v3645_v31 }
0x133e   : > { %2960 = vmatprep.mubr.msk.bf16.mxu1 %vm1161_vm14, %v3648_v20  ;;  %3151 = vmatpush3.bf16.msra.mxu1 %v3652_v42 }
0x133f   : > { %3172 = vmatprep.subr.bf16.mxu1 %v3817_v6 }
0x1345   : > { %2130 = vmatmul.mubr.bf16.gmra.mrb[28].mxu1 %v3650_v63 }
0x1410   : > { %v5217_v23 = vpop.f32.mrb[24].mxu1 }
0x1411   : > { %v2125_v24 = vpop.f32.mrb[25].mxu1  ;;  %v2138_v13 = vsel %vm891_vm12, %v5217_v23, 0.0  ;;  %v2154_v62 = vmul.f32 %v5217_v23, %v5217_v23 }
0x1412   : > { %2139 = vadd.xlane.f32.xlu0 %v2138_v13  ;;  %v5221_v22 = vpop.f32.mrb[26].mxu1 }
0x1413   : > { %v2155_v18 = vmul.f32 %v5221_v22, %v5221_v22  ;;  %v2128_v48 = vpop.f32.mrb[27].mxu1  ;;  %v2141_v61 = vsel %vm891_vm12, %v5221_v22, 0.0  ;;  %v2158_v15 = vsel %vm891_vm12, %v2154_v62, 0.0 }
0x1414   : > { %2142 = vadd.xlane.f32.xlu1 %v2141_v61 }
0x1415   : > { %v2161_v33 = vsel %vm891_vm12, %v2155_v18, 0.0 }
0x1416   : > { %2162 = vadd.xlane.f32.xlu0 %v2161_v33 }
0x1418   : > { %2159 = vadd.xlane.f32.xlu1 %v2158_v15  ;;  %v5231_v21 = vpop.f32.mrb[28].mxu1 }
0x1419   : > { %v2156_v36 = vmul.f32 %v5231_v21, %v5231_v21  ;;  %v2133_v60 = vpop.f32.mrb[29].mxu1  ;;  %v2144_v52 = vsel %vm891_vm12, %v5231_v21, 0.0 }
0x141a   : > { %2145 = vadd.xlane.f32.xlu0 %v2144_v52  ;;  %v5237_v17 = vpop.f32.mrb[30].mxu1 }
0x141b   : > { %v2136_v12 = vpop.f32.mrb[31].mxu1  ;;  %v2164_v1 = vsel %vm891_vm12, %v2156_v36, 0.0  ;;  %v2157_v29 = vmul.f32 %v5237_v17, %v5237_v17  ;;  %v2147_v40 = vsel %vm891_vm12, %v5237_v17, 0.0 }
0x141c   : > { %2165 = vadd.xlane.f32.xlu1 %v2164_v1 }
0x141d   : > { %v2167_v28 = vsel %vm891_vm12, %v2157_v29, 0.0 }
0x141e   : > { %2148 = vadd.xlane.f32.xlu0 %v2147_v40 }
0x1422   : > { %2168 = vadd.xlane.f32.xlu0 %v2167_v28 }
0x149f   : > { %v2140_v37 = vpop.xlane.xlu0 %2139 }
0x14a0   : > { %v2150_v49 = vmul.f32 0.0625, %v2140_v37 }
0x14a1   : > { %v2143_v43 = vpop.xlane.xlu1 %2142 }
0x14a2   : > { %v2151_v46 = vmul.f32 0.0625, %v2143_v43  ;;  %v2174_v58 = vmul.f32 %v2150_v49, %v2150_v49  ;;  %v2186_v13 = vsub.f32 %v5217_v23, %v2150_v49 }
0x14a3   : > { %v2163_v47 = vpop.xlane.xlu0 %2162 }
0x14a4   : > { %v2175_v44 = vmul.f32 %v2151_v46, %v2151_v46  ;;  %v2171_v45 = vmul.f32 0.0625, %v2163_v47  ;;  %v2187_v20 = vsub.f32 %v5221_v22, %v2151_v46 }
0x14a5   : > { %v2160_v57 = vpop.xlane.xlu1 %2159 }
0x14a6   : > { %v2179_v26 = vsub.f32 %v2171_v45, %v2175_v44  ;;  %v2170_v0 = vmul.f32 0.0625, %v2160_v57 }
0x14a7   : > { %v2146_v34 = vpop.xlane.xlu0 %2145 }
0x14a8   : > { %v2183_v35 = vmax.f32 %v2179_v26, 0.0  ;;  %v2178_v50 = vsub.f32 %v2170_v0, %v2174_v58  ;;  %v2152_v32 = vmul.f32 0.0625, %v2146_v34  ;;  %v3654_v58 = vld [vmem:[#allocation3 + $0xb8] ss:$8 sps:$4 sm:$0xff]  }
0x14a9   : > { %v2166_v51 = vpop.xlane.xlu1 %2165 }
0x14aa   : > { %v2191_v38 = vadd.f32 1e-05, %v2183_v35  ;;  %v2182_v56 = vmax.f32 %v2178_v50, 0.0  ;;  %v2176_v27 = vmul.f32 %v2152_v32, %v2152_v32  ;;  %v2172_v54 = vmul.f32 0.0625, %v2166_v51 }
0x14ab   : > { %v2149_v3 = vpop.xlane.xlu0 %2148  ;;  %v2188_v60 = vsub.f32 %v5231_v21, %v2152_v32 }
0x14ac   : > { %3699 = vrsqrt.f32 %v2191_v38  ;;  %v2190_v2 = vadd.f32 1e-05, %v2182_v56  ;;  %v2153_v53 = vmul.f32 0.0625, %v2149_v3  ;;  %v2180_v4 = vsub.f32 %v2172_v54, %v2176_v27  ;;  %v3655_v54 = vld [vmem:[#allocation3 + $0x228] ss:$8 sps:$4 sm:$0xff]  }
0x14ad   : > { %v3656_v3 = vld [vmem:[#allocation3 + $0x238] ss:$8 sps:$4 sm:$0xff]  }
0x14ae   : > { %3701 = vrsqrt.f32 %v2190_v2  ;;  %v2184_v19 = vmax.f32 %v2180_v4, 0.0  ;;  %v2177_v8 = vmul.f32 %v2153_v53, %v2153_v53  ;;  %v2189_v52 = vsub.f32 %v5237_v17, %v2153_v53 }
0x14af   : > { %v2169_v16 = vpop.xlane.xlu0 %2168 }
0x14b0   : > { %v2173_v59 = vmul.f32 0.0625, %v2169_v16  ;;  %v2192_v5 = vadd.f32 1e-05, %v2184_v19 }
0x14b2   : > { %v2181_v7 = vsub.f32 %v2173_v59, %v2177_v8  ;;  %3703 = vrsqrt.f32 %v2192_v5 }
0x14b4   : > { %v2185_v31 = vmax.f32 %v2181_v7, 0.0 }
0x14b6   : > { %v3700_v63 = vpop.eup %3699  ;;  %v2193_v24 = vadd.f32 1e-05, %v2185_v31 }
0x14b7   : > { %v2199_v62 = vmul.f32 %v3700_v63, %v2187_v20 }
0x14b8   : > { %v3702_v18 = vpop.eup %3701  ;;  %3705 = vrsqrt.f32 %v2193_v24 }
0x14b9   : > { %v2198_v48 = vmul.f32 %v3702_v18, %v2186_v13  ;;  %v2203_v33 = vadd.f32 %v2199_v62, %v4664_v10 }
0x14bb   : > { %v2202_v61 = vadd.f32 %v2198_v48, %v4661_v55 }
0x14bc   : > { %v3704_v36 = vpop.eup %3703 }
0x14bd   : > { %v2206_v15 = vpack.c.bf16 %v2203_v33, %v2202_v61  ;;  %v2200_v22 = vmul.f32 %v3704_v36, %v2188_v60 }
0x14bf   : > { %3140 = vmatprep.mubr.msk.bf16.mxu0 %vm891_vm12, %v2206_v15  ;;  %3152 = vmatprep.mubr.msk.bf16.mxu1 %vm891_vm12, %v2206_v15  ;;  %v2204_v1 = vadd.f32 %v2200_v22, %v4671_v25 }
0x14c2   : > { %v3706_v23 = vpop.eup %3705 }
0x14c3   : > { %v2201_v12 = vmul.f32 %v3706_v23, %v2189_v52  ;;  %v3657_v23 = vld [vmem:[#allocation3 + $0x248] ss:$8 sps:$4 sm:$0xff]  }
0x14c5   : > { %v2205_v29 = vadd.f32 %v2201_v12, %v4674_v30 }
0x14c7   : > { %v2207_v55 = vpack.c.bf16 %v2205_v29, %v2204_v1  ;;  %v3658_v1 = vld [vmem:[#allocation3 + $0x258] ss:$8 sps:$4 sm:$0xff]   ;;  %v3659_v29 = vld [vmem:[#allocation3 + $0x268] ss:$8 sps:$4 sm:$0xff]  }
0x14c9   : > { %3141 = vmatmul.mubr.msk.bf16.vlgmr.msra.gmra.mrb[36].mxu0 %vm891_vm12, %v2207_v55  ;;  %3153 = vmatmul.mubr.msk.bf16.vlgmr.msra.gmra.mrb[32].mxu1 %vm891_vm12, %v2207_v55 }
0x14ca   : > { %3145 = vmatpush3.bf16.msra.mxu0 %v3653_v39  ;;  %3146 = vmatprep.mubr.msk.bf16.mxu0 %vm891_vm12, %v2206_v15 }
0x14cb   : > { %3156 = vmatprep.subr.bf16.mxu0 %v3817_v6  ;;  %3176 = vmatprep.mubr.msk.bf16.mxu1 %vm3822_vm1, %v3817_v6 }
0x14cc   : > { %3173 = vmatpush3.bf16.msra.mxu1 %v3655_v54 }
0x14cd   : > { %3174 = vmatprep.subr.bf16.mxu1 %v3817_v6 }
0x14d0   : > { %3175 = vmatpush3.bf16.msra.mxu1 %v3656_v3 }
0x14d1   : > { %3147 = vmatmul.mubr.msk.bf16.vlgmr.msra.gmra.mrb[40].mxu0 %vm891_vm12, %v2207_v55  ;;  %3180 = vmatprep.subr.bf16.mxu1 %v3817_v6  ;;  %v3660_v55 = vld [vmem:[#allocation3 + $0x278] ss:$8 sps:$4 sm:$0xff]  }
0x14d2   : > { %3168 = vmatprep.mubr.msk.bf16.mxu0 %vm3822_vm1, %v3817_v6 }
0x159c   : > { %v3142_v10 = vpop.f32.mrb[36].mxu0  ;;  %v3154_v25 = vpop.f32.mrb[32].mxu1 }
0x159d   : > { %v2256_v30 = vpop.f32.mrb[37].mxu0  ;;  %v2370_v21 = vpop.f32.mrb[33].mxu1 }
0x159e   : > { %v3143_v17 = vpop.f32.mrb[38].mxu0  ;;  %v3155_v40 = vpop.f32.mrb[34].mxu1 }
0x159f   : > { %v2388_v28 = vpack.c.bf16 %v3143_v17, %v3142_v10  ;;  %v2392_v41 = vpack.c.bf16 %v3155_v40, %v3154_v25  ;;  %v2259_v42 = vpop.f32.mrb[39].mxu0  ;;  %v2373_v39 = vpop.f32.mrb[35].mxu1 }
0x15a0   : > { %v2387_v37 = vpack.c.bf16 %v2259_v42, %v2256_v30  ;;  %v2391_v43 = vpack.c.bf16 %v2373_v39, %v2370_v21 }
0x15a2   : > { %3157 = vmatpush3.bf16.msra.mxu0 %v2387_v37 }
0x15a3   : > { %3158 = vmatprep.subr.bf16.mxu0 %v3817_v6 }
0x15a4   : > { %v3148_v49 = vpop.f32.mrb[40].mxu0 }
0x15a5   : > { %v2313_v46 = vpop.f32.mrb[41].mxu0 }
0x15a6   : > { %v3149_v47 = vpop.f32.mrb[42].mxu0  ;;  %3159 = vmatpush3.bf16.msra.mxu0 %v2388_v28 }
0x15a7   : > { %v2390_v44 = vpack.c.bf16 %v3149_v47, %v3148_v49  ;;  %v2316_v45 = vpop.f32.mrb[43].mxu0  ;;  %3160 = vmatprep.subr.bf16.mxu0 %v3817_v6 }
0x15a8   : > { %v2389_v57 = vpack.c.bf16 %v2316_v45, %v2313_v46 }
0x15aa   : > { %3161 = vmatpush3.bf16.msra.mxu0 %v2389_v57 }
0x15ab   : > { %3162 = vmatprep.subr.bf16.mxu0 %v3817_v6 }
0x15ae   : > { %3163 = vmatpush3.bf16.msra.mxu0 %v2390_v44  ;;  %v2651_v44 = vld [vmem:[#allocation3 + $0xc8] sm:$0xf] }
0x15af   : > { %3164 = vmatprep.subr.bf16.mxu0 %v3817_v6 }
0x15b2   : > { %3165 = vmatpush3.bf16.msra.mxu0 %v2391_v43 }
0x15b3   : > { %3166 = vmatprep.subr.bf16.mxu0 %v3817_v6 }
0x15b6   : > { %3167 = vmatpush3.bf16.msra.mxu0 %v2392_v41 }
0x15b7   : > { %3196 = vmatprep.subr.bf16.mxu0 %v3817_v6 }
0x15b9   : > { %3169 = vmatmul.mubr.msk.bf16.vlgmr.msra.gmra.mrb[44].mxu0 %vm1161_vm14, %v3654_v58 }
0x15ba   : > { %3202 = vmatprep.mubr.msk.bf16.mxu0 %vm3822_vm1, %v3817_v6 }
0x168c   : > { %v2435_v26 = vpop.f32.mrb[44].mxu0 }
0x168d   : > { %v2450_v0 = vmul.f32 %v2435_v26, %v2435_v26  ;;  %v3170_v34 = vpop.f32.mrb[45].mxu0  ;;  %v2442_v35 = vsel %vm607_vm9, %v2435_v26, 0.0 }
0x168e   : > { %2443 = vadd.xlane.f32.xlu1 %v2442_v35  ;;  %v2438_v50 = vpop.f32.mrb[46].mxu0 }
0x168f   : > { %v2451_v32 = vmul.f32 %v2438_v50, %v2438_v50  ;;  %v3171_v51 = vpop.f32.mrb[47].mxu0  ;;  %v2445_v38 = vsel %vm607_vm9, %v2438_v50, 0.0  ;;  %v2452_v56 = vsel %vm607_vm9, %v2450_v0, 0.0 }
0x1690   : > { %2446 = vadd.xlane.f32.xlu0 %v2445_v38 }
0x1691   : > { %v2455_v27 = vsel %vm607_vm9, %v2451_v32, 0.0 }
0x1692   : > { %2453 = vadd.xlane.f32.xlu1 %v2452_v56 }
0x1694   : > { %2456 = vadd.xlane.f32.xlu0 %v2455_v27 }
0x171b   : > { %v2444_v2 = vpop.xlane.xlu1 %2443 }
0x171c   : > { %v2448_v53 = vmul.f32 0.03125, %v2444_v2 }
0x171d   : > { %v2447_v4 = vpop.xlane.xlu0 %2446 }
0x171e   : > { %v2449_v19 = vmul.f32 0.03125, %v2447_v4  ;;  %v2460_v8 = vmul.f32 %v2448_v53, %v2448_v53  ;;  %v2466_v48 = vsub.f32 %v2435_v26, %v2448_v53 }
0x171f   : > { %v2454_v16 = vpop.xlane.xlu1 %2453 }
0x1720   : > { %v2458_v59 = vmul.f32 0.03125, %v2454_v16  ;;  %v2461_v7 = vmul.f32 %v2449_v19, %v2449_v19  ;;  %v2467_v33 = vsub.f32 %v2438_v50, %v2449_v19 }
0x1721   : > { %v2457_v5 = vpop.xlane.xlu0 %2456 }
0x1722   : > { %v2462_v31 = vsub.f32 %v2458_v59, %v2460_v8  ;;  %v2459_v20 = vmul.f32 0.03125, %v2457_v5 }
0x1724   : > { %v2464_v63 = vmax.f32 %v2462_v31, 0.0  ;;  %v2463_v24 = vsub.f32 %v2459_v20, %v2461_v7  ;;  %v2763_v7 = vld [vmem:[#allocation2] sm:$0x1] }
0x1726   : > { %v2468_v13 = vadd.f32 1e-05, %v2464_v63  ;;  %v2465_v62 = vmax.f32 %v2463_v24, 0.0 }
0x1728   : > { %3707 = vrsqrt.f32 %v2468_v13  ;;  %v2469_v18 = vadd.f32 1e-05, %v2465_v62 }
0x172a   : > { %3709 = vrsqrt.f32 %v2469_v18 }
0x1732   : > { %v3708_v61 = vpop.eup %3707 }
0x1733   : > { %v2472_v15 = vmul.f32 %v3708_v61, %v2466_v48 }
0x1734   : > { %v3710_v36 = vpop.eup %3709 }
0x1735   : > { %v2473_v60 = vmul.f32 %v3710_v36, %v2467_v33  ;;  %v2474_v22 = vmax.f32 %v2472_v15, 0.0 }
0x1737   : > { %v2475_v52 = vmax.f32 %v2473_v60, 0.0 }
0x1739   : > { %v2476_v12 = vpack.c.bf16 %v2475_v52, %v2474_v22 }
0x173b   : > { %3177 = vmatmul.mubr.msk.bf16.vlgmr.msra.gmra.mrb[36].mxu1 %vm607_vm9, %v2476_v12 }
0x173c   : > { %3181 = vmatpush3.bf16.msra.mxu1 %v3657_v23  ;;  %3184 = vmatprep.mubr.msk.bf16.mxu1 %vm3822_vm1, %v3817_v6 }
0x173d   : > { %3182 = vmatprep.subr.bf16.mxu1 %v3817_v6 }
0x1740   : > { %3183 = vmatpush3.bf16.msra.mxu1 %v3658_v1 }
0x1741   : > { %3188 = vmatprep.subr.bf16.mxu1 %v3817_v6 }
0x1743   : > { %3185 = vmatmul.mubr.msk.bf16.vlgmr.msra.gmra.mrb[40].mxu1 %vm607_vm9, %v2476_v12 }
0x1744   : > { %3189 = vmatpush3.bf16.msra.mxu1 %v3659_v29  ;;  %3192 = vmatprep.mubr.msk.bf16.mxu1 %vm3822_vm1, %v3817_v6 }
0x1745   : > { %3190 = vmatprep.subr.bf16.mxu1 %v3817_v6 }
0x1748   : > { %3191 = vmatpush3.bf16.msra.mxu1 %v3660_v55 }
0x1749   : > { %3206 = vmatprep.subr.bf16.mxu1 %v3817_v6 }
0x174b   : > { %3193 = vmatmul.mubr.msk.bf16.vlgmr.msra.gmra.mrb[44].mxu1 %vm607_vm9, %v2476_v12 }
0x174c   : > { %3214 = vmatprep.mubr.msk.bf16.mxu1 %vm3822_vm1, %v3817_v6 }
0x180e   : > { %v2530_v10 = vpop.f32.mrb[36].mxu1 }
0x180f   : > { %v3178_v25 = vpop.f32.mrb[37].mxu1 }
0x1810   : > { %v2533_v30 = vpop.f32.mrb[38].mxu1 }
0x1811   : > { %v2652_v21 = vpack.c.bf16 %v2533_v30, %v2530_v10  ;;  %v3179_v17 = vpop.f32.mrb[39].mxu1 }
0x1813   : > { %3197 = vmatpush3.bf16.msra.mxu0 %v2652_v21  ;;  %v2758_v21 = vld [vmem:[#allocation3 + $0xd0] sm:$0x1] }
0x1814   : > { %3198 = vmatprep.subr.bf16.mxu0 %v3817_v6 }
0x1816   : > { %v2587_v40 = vpop.f32.mrb[40].mxu1 }
0x1817   : > { %v3186_v28 = vpop.f32.mrb[41].mxu1 }
0x1818   : > { %v2590_v41 = vpop.f32.mrb[42].mxu1 }
0x1819   : > { %v2653_v42 = vpack.c.bf16 %v2590_v41, %v2587_v40  ;;  %v3187_v39 = vpop.f32.mrb[43].mxu1 }
0x181b   : > { %3199 = vmatpush3.bf16.msra.mxu0 %v2653_v42 }
0x181c   : > { %3200 = vmatprep.subr.bf16.mxu0 %v3817_v6 }
0x181e   : > { %v2644_v37 = vpop.f32.mrb[44].mxu1 }
0x181f   : > { %v3194_v43 = vpop.f32.mrb[45].mxu1 }
0x1820   : > { %v2647_v49 = vpop.f32.mrb[46].mxu1 }
0x1821   : > { %v2654_v46 = vpack.c.bf16 %v2647_v49, %v2644_v37  ;;  %v3195_v47 = vpop.f32.mrb[47].mxu1 }
0x1823   : > { %3201 = vmatpush3.bf16.msra.mxu0 %v2654_v46 }
0x1826   : > { %3203 = vmatmul.mubr.msk.bf16.vlgmr.msra.gmra.mrb[48].mxu0 %vm835_vm10, %v2651_v44 }
0x18f9   : > { %v2692_v45 = vpop.f32.mrb[48].mxu0 }
0x18fa   : > { %v2702_v57 = vmul.f32 %v2692_v45, %v2692_v45  ;;  %v3204_v58 = vpop.f32.mrb[49].mxu0  ;;  %v2698_v26 = vsel %vm311_vm15, %v2692_v45, 0.0 }
0x18fb   : > { %2699 = vadd.xlane.f32.xlu1 %v2698_v26  ;;  %v2695_v0 = vpop.f32.mrb[50].mxu0 }
0x18fc   : > { %v3205_v34 = vpop.f32.mrb[51].mxu0  ;;  %v2703_v35 = vsel %vm311_vm15, %v2702_v57, 0.0 }
0x18fd   : > { %2704 = vadd.xlane.f32.xlu0 %v2703_v35 }
0x1988   : > { %v2700_v50 = vpop.xlane.xlu1 %2699 }
0x1989   : > { %v2701_v32 = vmul.f32 0.015625, %v2700_v50 }
0x198a   : > { %v2705_v51 = vpop.xlane.xlu0 %2704 }
0x198b   : > { %v2707_v38 = vmul.f32 %v2701_v32, %v2701_v32  ;;  %v2706_v56 = vmul.f32 0.015625, %v2705_v51  ;;  %v2710_v2 = vsub.f32 %v2692_v45, %v2701_v32 }
0x198d   : > { %v2708_v27 = vsub.f32 %v2706_v56, %v2707_v38 }
0x198f   : > { %v2709_v54 = vmax.f32 %v2708_v27, 0.0 }
0x1991   : > { %v2711_v3 = vadd.f32 1e-05, %v2709_v54 }
0x1993   : > { %3711 = vrsqrt.f32 %v2711_v3 }
0x199d   : > { %v3712_v53 = vpop.eup %3711 }
0x199e   : > { %v2713_v4 = vmul.f32 %v3712_v53, %v2710_v2 }
0x19a0   : > { %v2714_v19 = vmax.f32 %v2713_v4, 0.0 }
0x19a2   : > { %2715 = vrot.lane.b32.xlu1 %v2714_v19, %s3814_s28 }
0x1a14   : > { %v2716_v16 = vpop.permute.xlu1 %2715 }
0x1a15   : > { %v2717_v8 = vsel %vm181_vm0, %v2716_v16, %v2714_v19 }
0x1a16   : > { %2718 = vrot.lane.b32.xlu0 %v2717_v8, %s3814_s28  ;;  %s3743_s28 = scalar_lea.vmem %s5345_s13, 16 }
0x1a17   : > { %p3744_p6 = scmp.ne.s32.totalorder %s5345_s13, %s3743_s28 }
0x1a19   : > { %p3745_p10 = pnand %p3744_p6, %p5405_p9 }
0x1a1b   : > { %p3746_p12 = pneg %p3745_p10 }
0x1a88   : > { %v2719_v59 = vpop.permute.xlu0 %2718 }
0x1a89   : > { %v2720_v5 = vsel %vm181_vm0, %v2719_v59, %v2714_v19  ;;  %vm5401_vm0 = vcmp.eq.s32.totalorder %v3957_v9, 63 }
0x1a8a   : > { %2729 = vrot.lane.b32.xlu0 %v2720_v5, %s3818_s29  ;;  %2722 = vrot.lane.b32.xlu1 %v2720_v5, %s3815_s25  ;;  %vm5402_vm1 = vmmov %vm5401_vm0  ;;  %s3747_s25 = sshll.u32 %s3829_s2, 4  ;;  %s3748_s25 = int_to_ptr.vmem [resolvable:$false] %s3747_s25 }
0x1a8b   : > { %p3750_p2 = scmp.lt.s32.totalorder %s5345_s13, %s3748_s25 }
0x1a8e   : > { %2740 = vrot.lane.b32.xlu0 %v2720_v5, %s3819_s30  ;;  %2725 = vrot.lane.b32.xlu1 %v2720_v5, %s3820_s4 }
0x1a92   : > { %2737 = vrot.lane.b32.xlu1 %v2720_v5, %s3816_s27  ;;  %2766 = vperm.xlu0 %3605, %v2763_v7   ;;  %s3749_s27 = scalar_lea.vmem %s3748_s25, 32 }
0x1a93   : > { %p3751_p3 = scmp.lt.s32.totalorder %s3749_s27, %s3743_s28 }
0x1a95   : > { %p3752_p4 = por %p3751_p3, %p3750_p2 }
0x1a96   : > { %2733 = vrot.lane.b32.xlu1 %v2720_v5, %s3821_s5 }
0x1a97   : > { %p3753_p7 = pnand %p3752_p4, %p3746_p12 }
0x1afc   : > { %v2723_v31 = vpop.permute.xlu1 %2722  ;;  %v2730_v20 = vpop.permute.xlu0 %2729 }
0x1afd   : > { %v2755_v22 = vsel %vm223_vm5, %v2730_v20, %v2723_v31  ;;  %vm2821_vm5 = vcmask 516096  }
0x1b00   : > { %v2726_v63 = vpop.permute.xlu1 %2725  ;;  %v2741_v13 = vpop.permute.xlu0 %2740 }
0x1b01   : > { %v2728_v62 = vsel %vm190_vm2, %v2723_v31, %v2726_v63 }
0x1b02   : > { %v2732_v48 = vsel %vm199_vm3, %v2730_v20, %v2728_v62 }
0x1b04   : > { %v2738_v24 = vpop.permute.xlu1 %2737 }
0x1b05   : > { %v2743_v18 = vsel %vm190_vm2, %v2738_v24, %v2741_v13  ;;  %v2751_v23 = vsel %vm220_vm4, %v2714_v19, %v2738_v24 }
0x1b06   : > { %v2744_v33 = vsel %vm199_vm3, %v2714_v19, %v2743_v18  ;;  %vm5404_vm3 = vcmask 1043456  }
0x1b08   : > { %v2734_v61 = vpop.permute.xlu1 %2733 }
0x1b09   : > { %v2736_v15 = vsel %vm204_vm6, %v2734_v61, %v2732_v48  ;;  %v2745_v60 = vsel %vm190_vm2, %v2730_v20, %v2734_v61  ;;  %v2756_v52 = vsel %vm220_vm4, %v2734_v61, %v2755_v22  ;;  %v2748_v1 = vsel %vm5401_vm0, %v2734_v61, %v2730_v20  ;;  %vm5403_vm2 = vmmov %vm5401_vm0 }
0x1b0a   : > { %v2759_v36 = vpack.c.bf16 %v2744_v33, %v2736_v15  ;;  %v2760_v12 = vpack.c.bf16 %v2714_v19, %v2745_v60  ;;  %v2757_v29 = vsel %vm5402_vm1, %v2726_v63, %v2756_v52  ;;  %v2752_v55 = vsel %vm5403_vm2, %v2741_v13, %v2751_v23 }
0x1b0b   : > { %v2761_v10 = vpack.c.bf16 %v2752_v55, %v2748_v1  ;;  %v2762_v25 = vpack.c.bf16 %v2757_v29, %v2757_v29  ;;  %vm2773_vm4 = vcmask 457728  }
0x1b0c   : > { %3207 = vmatpush3.bf16.msra.mxu1 %v2759_v36 }
0x1b0d   : > { %3208 = vmatprep.subr.bf16.mxu1 %v3817_v6  ;;  %v2778_v30 = vsel %vm5404_vm3, %v2762_v25, 0 }
0x1b10   : > { %3209 = vmatpush3.bf16.msra.mxu1 %v2760_v12 }
0x1b11   : > { %3210 = vmatprep.subr.bf16.mxu1 %v3817_v6  ;;  %v2767_v17 = vpop.permute.xlu0 %2766 }
0x1b12   : > { %v2772_v9 = vrot.slane %v2767_v17, %v236_v14 }
0x1b14   : > { %3211 = vmatpush3.bf16.msra.mxu1 %v2761_v10 }
0x1b15   : > { %3212 = vmatprep.subr.bf16.mxu1 %v3817_v6 }
0x1b18   : > { %3213 = vmatpush3.bf16.msra.mxu1 %v2778_v30 }
0x1b1b   : > { %3215 = vmatmul.mubr.msk.bf16.vlgmr.msra.gmra.mrb[48].mxu1 %vm2773_vm4, %v2758_v21 }
0x1bee   : > { %v2814_v40 = vpop.f32.mrb[48].mxu1 }
0x1bef   : > { %v2815_v28 = vadd.f32 %v2814_v40, %v2772_v9  ;;  %v3216_v41 = vpop.f32.mrb[49].mxu1 }
0x1bf0   : > { %v2817_v42 = vpop.f32.mrb[50].mxu1 }
0x1bf1   : > { %3713 = vtanh.f32 %v2815_v28  ;;  %v3217_v39 = vpop.f32.mrb[51].mxu1 }
0x1bfb   : > { %v3714_v6 = vpop.eup %3713 }
0x1bfc   : > { %2822 = vst.msk [vmem:[%s175_s12] sm:$0x1] %vm2821_vm5, %v3714_v6 }
0x1bfd   : > { %3756 = shalt.err (!%p3753_p7)
}
0x1bfe   : > { %s3757_s29 = scalar_lea.hbm %s5343_s21, 16  ;;  %s3761_s5 = scalar_lea.hbm %s5388_s3, 32 }
0x1bff   : > { %p3758_p8 = scmp.ne.s32.totalorder %s5343_s21, %s3757_s29  ;;  %p3762_p1 = scmp.lt.u32.totalorder %s5343_s21, %s5388_s3 }
0x1c00   : > { %p3763_p0 = scmp.lt.u32.totalorder %s3761_s5, %s3757_s29  ;;  %p3765_p6 = scmp.lt.u32.totalorder %s3757_s29, %s5343_s21 }
0x1c01   : > { %p3759_p11 = pnand %p3758_p8, %p5405_p9 }
0x1c02   : > { %p3764_p5 = por %p3763_p0, %p3762_p1 }
0x1c03   : > { %p3760_p13 = pneg %p3759_p11 }
0x1c04   : > { %p3766_p10 = por %p3765_p6, %p3764_p5 }
0x1c06   : > { %p3767_p12 = pnand %p3766_p10, %p3760_p13 }
0x1c08   : > { %3770 = shalt.err (!%p3767_p12)
}
0x1c09   : > { %3222 = dma.vmem_to_hbm [thread:$0]  (%p5405_p9), %s5345_s13, 16, %s5343_s21, %s2824_s26  }
0x1c0a PF: > { %p3234_p2 = scmp.ge.s32.totalorder %s3809_s17, 2  ;;  %s2848_s8 = sand.u32 1, %s3797_s14  }
0x1c0b   : > { %p5406_p3 = scmp.ne.s32.totalorder %s5395_s24, 0  ;;  %s2849_s9 = scalar_lea.sflag [#allocation5], %s2848_s8 }
0x1c0d   : > { %p3229_p4 = pnand %p3234_p2, %p5406_p3 }
0x1c0f   : > { %3792 = dma.done.wait (!%p3229_p4), %s2849_s9, 16  }
0x1c10   : > { %3794 = vsyncadd (!%p3229_p4), %s2849_s9, 4294967280  ;;  %p16_p7 = scmp.ge.s32.totalorder %s3878_s19, 4   ;;  %s5407_s14 = smov %s3801_s15 }
0x1c11   : > { %s5408_s15 = smov %s3805_s16  ;;  %s5409_s16 = smov %s3889_s22 }
0x1c12   : > { %s5410_s17 = smov %s3878_s19  ;;  %18 = sbr.rel (!%p16_p7) target bundleno = 7 (0x7), region = 72 }
0x1c19   :  { %2853 = vsyncpa [#allocation4], 1 }
0x1c1a   :  { %2855 = vsyncpa [#allocation4 + $0x1], 1 }
0x1c1b   :  { %2856 = vsyncpa [#allocation5], 1 }
0x1c1c   :  { %2858 = vsyncpa [#allocation5 + $0x1], 1 }

</bundles_post_ra>
